<compile_context>
chip_gen: v6e
topology: v6e:2x2x1
jax: 0.10.0
libtpu: 0.0.40
codegen_flags: <defaults>
</compile_context>

<pallas_src>
import functools
import math

import jax
import jax.numpy as jnp
from jax.experimental import pallas as pl
from jax.experimental.pallas import tpu as pltpu


def _layernorm(x, g, b, eps=1e-5):
    mu = jnp.mean(x, axis=-1, keepdims=True)
    var = jnp.mean((x - mu) ** 2, axis=-1, keepdims=True)
    return (x - mu) * jax.lax.rsqrt(var + eps) * g + b


# --------------------------------------------------------------------------
# Fused kernel: cross-attn transformer layer + seq-len mask + GRU final hidden
# --------------------------------------------------------------------------
def _fused_kernel(seq_ref,                      # scalar prefetch: [B] int32 radical lengths (SMEM)
                  rad_ref, patch_ref,           # (1, bb*Nr, D), (1, bb*Np, D)
                  wq_ref, bq_ref, wkv_ref, bkv_ref, wo_ref, bo_ref,
                  ln1_g_ref, ln1_b_ref,
                  w1_ref, b1_ref, w2_ref, b2_ref,
                  ln2_g_ref, ln2_b_ref,
                  wih_ref, whh_ref, gi_b_ref, bhn_ref,
                  h_out_ref,                    # (1, bb, D)
                  gi_ref,                       # VMEM scratch (Nr, bb, 3D) f32 (time-major)
                  *, num_heads, bb, n_rad, n_patch):
    D = rad_ref.shape[-1]
    hd = D // num_heads
    scale = 1.0 / math.sqrt(hd)
    bf16, f32 = jnp.bfloat16, jnp.float32

    x2 = rad_ref[0].astype(f32)                 # (bb*Nr, D) residual path (f32)
    x2b = rad_ref[0].astype(bf16)               # matmul operands in bf16
    kv2b = patch_ref[0].astype(bf16)

    wq = wq_ref[...]                            # bf16 weights (loaded once)
    wkv = wkv_ref[...]
    wo = wo_ref[...]
    bq = bq_ref[...]                            # f32 biases
    bkv = bkv_ref[...]

    # ---------- block-diagonal additive softmax bias (only needed if bb > 1) ----------
    # One broadcasted 2-D compare of row-batch-id vs col-batch-id; ids are built
    # division-free from O(bb) tiny 1-D compares.  Score/bias math stays f32.
    if bb > 1:
        r_idx = jax.lax.broadcasted_iota(jnp.int32, (bb * n_rad, 1), 0)
        c_idx = jax.lax.broadcasted_iota(jnp.int32, (1, bb * n_patch), 1)
        r_bid = jnp.zeros_like(r_idx)
        c_bid = jnp.zeros_like(c_idx)
        for b in range(1, bb):
            r_bid = r_bid + (r_idx >= b * n_rad).astype(jnp.int32)
            c_bid = c_bid + (c_idx >= b * n_patch).astype(jnp.int32)
        attn_bias = jnp.where(r_bid == c_bid, 0.0, -1e30).astype(f32)
    else:
        attn_bias = None

    # ---------- cross multi-head attention (batch folded into the M dim) ----------
    # Per-head projections slice the WEIGHTS (columns of wq/wkv, rows of wo),
    # not the activations; head outputs accumulate via wo row-blocks -> no
    # lane-dim concatenate.  All matmuls bf16 x bf16 -> f32 accumulate.
    attn2 = None
    for h in range(num_heads):                  # static, tiny head count
        q_sl = slice(h * hd, (h + 1) * hd)
        v_sl = slice(D + h * hd, D + (h + 1) * hd)
        qh = jnp.dot(x2b, wq[:, q_sl], preferred_element_type=f32) + bq[:, q_sl]
        kh = jnp.dot(kv2b, wkv[:, q_sl], preferred_element_type=f32) + bkv[:, q_sl]
        vh = jnp.dot(kv2b, wkv[:, v_sl], preferred_element_type=f32) + bkv[:, v_sl]
        s = jnp.dot(qh.astype(bf16), kh.astype(bf16).T,
                    preferred_element_type=f32) * scale      # scores stay f32
        if attn_bias is not None:
            s = s + attn_bias
        s = s - jnp.max(s, axis=-1, keepdims=True)
        p = jnp.exp(s)
        p = p * pl.reciprocal(jnp.sum(p, axis=-1, keepdims=True), approx=True)
        oh = jnp.dot(p.astype(bf16), vh.astype(bf16), preferred_element_type=f32)
        contrib = jnp.dot(oh.astype(bf16), wo[q_sl, :], preferred_element_type=f32)
        attn2 = contrib if attn2 is None else attn2 + contrib
    attn2 = attn2 + bo_ref[...]

    # post-process: add & norm (f32)
    y2 = _layernorm(x2 + attn2, ln1_g_ref[...], ln1_b_ref[...])

    # position-wise feed-forward (ReLU), then add & norm
    ffh = jnp.maximum(
        jnp.dot(y2.astype(bf16), w1_ref[...], preferred_element_type=f32) + b1_ref[...], 0.0)
    ff2 = jnp.dot(ffh.astype(bf16), w2_ref[...], preferred_element_type=f32) + b2_ref[...]
    z2 = _layernorm(y2 + ff2, ln2_g_ref[...], ln2_b_ref[...])          # (bb*Nr, D)

    # ---------- seq_len_to_mask + masked_fill(mask==0, 0), mask built in-kernel ----------
    i0 = pl.program_id(0) * bb
    t_iota = jax.lax.broadcasted_iota(jnp.int32, (n_rad, 1), 0)
    rows = [(t_iota < seq_ref[i0 + b]).astype(f32) for b in range(bb)]
    mask2 = jnp.concatenate(rows, axis=0) if bb > 1 else rows[0]       # (bb*Nr, 1)
    xm2 = z2 * mask2

    # ---------- GRU (gate order r, z, n), final hidden only ----------
    # Input projection hoisted out of the recurrence as ONE (D,3D) matmul;
    # r/z hidden biases already folded into gi_b (host side).  Result parked
    # time-major in VMEM scratch so each step only loads a (bb,3D) slab.
    gi = jnp.dot(xm2.astype(bf16), wih_ref[...], preferred_element_type=f32) + gi_b_ref[...]
    for b in range(bb):                         # static, sublane-aligned slices (Nr % 8 == 0 typical)
        gi_ref[:, b, :] = gi[b * n_rad:(b + 1) * n_rad, :]

    whh = whh_ref[...]                                       # (D, 3D) bf16, loaded once
    bhn = jnp.broadcast_to(bhn_ref[...], (bb, D))            # pre-broadcast (no per-step bcast)

    def gru_step(t, h):
        gh = jnp.dot(h.astype(bf16), whh, preferred_element_type=f32)   # one matmul / step
        gi_t = gi_ref[t]                                                 # (bb, 3D)
        r = jax.nn.sigmoid(gi_t[:, :D] + gh[:, :D])
        z = jax.nn.sigmoid(gi_t[:, D:2 * D] + gh[:, D:2 * D])
        n = jnp.tanh(gi_t[:, 2 * D:] + r * (gh[:, 2 * D:] + bhn))       # b_hn inside r*(.)
        return (1.0 - z) * n + z * h

    h0 = jnp.zeros((bb, D), f32)
    if n_rad <= 16:
        # short recurrence: full unroll gives the LLO scheduler visibility
        h_state = h0
        for t in range(n_rad):
            h_state = gru_step(t, h_state)
    else:
        # long recurrence: fori_loop bounds live ranges (no unrolled temporaries)
        h_state = jax.lax.fori_loop(0, n_rad, gru_step, h0)

    h_out_ref[0, :, :] = h_state.astype(h_out_ref.dtype)


# --------------------------------------------------------------------------
# Wrapper
# --------------------------------------------------------------------------
def _is_two_core_chip():
    """True on chips with 2 TensorCores sharing HBM (v7x); best-effort query."""
    try:
        kind = jax.devices()[0].device_kind.lower()
    except Exception:
        return False
    return ("v7" in kind) or ("7x" in kind)


def _prepare_kernel_params(p):
    """One-time host-side layout/dtype prep: bf16 matmul weights, merged GRU
    gate weights (r|z|n), r/z hidden biases folded into the input-proj bias."""
    bf, f32 = jnp.bfloat16, jnp.float32
    wih = jnp.concatenate([p["wih_r"], p["wih_z"], p["wih_n"]], axis=1).astype(bf)   # (D,3D)
    whh = jnp.concatenate([p["whh_r"], p["whh_z"], p["whh_n"]], axis=1).astype(bf)   # (D,3D)
    gi_b = jnp.concatenate([p["bih_r"] + p["bhh_r"],
                            p["bih_z"] + p["bhh_z"],
                            p["bih_n"]], axis=1).astype(f32)                         # (1,3D)
    bhn = p["bhh_n"].astype(f32)                                                     # (1,D)
    return [p["wq"].astype(bf), p["bq"].astype(f32),
            p["wkv"].astype(bf), p["bkv"].astype(f32),
            p["wo"].astype(bf), p["bo"].astype(f32),
            p["ln1_g"].astype(f32), p["ln1_b"].astype(f32),
            p["w1"].astype(bf), p["b1"].astype(f32),
            p["w2"].astype(bf), p["b2"].astype(f32),
            p["ln2_g"].astype(f32), p["ln2_b"].astype(f32),
            wih, whh, gi_b, bhn]


def radical_encoder_layer(patch_emb, radical_emb, seq_lens, params, num_heads,
                          num_batch_blocks=None):
    """patch_emb: [B, Np, D], radical_emb: [B, Nr, D], seq_lens: [B] int -> [B, D]."""
    B, Nr, D = radical_emb.shape
    _, Np, _ = patch_emb.shape
    assert D % num_heads == 0

    two_core = _is_two_core_chip()
    if num_batch_blocks is None:
        # Split the batch across grid blocks ONLY on two-TensorCore chips (v7x)
        # and only when each block keeps a healthy sublane fill (bb >= 8).
        # On single-TC v5e/v6e a 2nd block just runs the serial GRU tail twice.
        num_batch_blocks = 2 if (two_core and B % 2 == 0 and B >= 16) else 1
    assert B % num_batch_blocks == 0
    bb = B // num_batch_blocks
    # NOTE: attention does O(bb^2) work on cross-batch scores killed by the
    # bias; pass a larger num_batch_blocks to cap bb if bb*Np grows very large.

    # Fold the batch chunk into the row (sublane) dim outside the kernel (free
    # HBM reshape) so all in-kernel matmuls are plain 2-D.
    rad_f = radical_emb.reshape(num_batch_blocks, bb * Nr, D)
    pat_f = patch_emb.reshape(num_batch_blocks, bb * Np, D)
    seq_lens = seq_lens.astype(jnp.int32)

    weights = _prepare_kernel_params(params)
    # All weights are 2-D and grid-invariant; index_maps take (grid_idx, prefetch_ref).
    # TODO(synk): weights could be single-buffered (pipeline_mode) since their
    # index_map is constant; left at default buffering for compile robustness.
    w_specs = [pl.BlockSpec(w.shape, lambda i, s: (0, 0)) for w in weights]

    grid_spec = pltpu.PrefetchScalarGridSpec(
        num_scalar_prefetch=1,
        grid=(num_batch_blocks,),
        in_specs=[pl.BlockSpec((1, bb * Nr, D), lambda i, s: (i, 0, 0)),
                  pl.BlockSpec((1, bb * Np, D), lambda i, s: (i, 0, 0))] + w_specs,
        out_specs=pl.BlockSpec((1, bb, D), lambda i, s: (i, 0, 0)),
        scratch_shapes=[pltpu.VMEM((Nr, bb, 3 * D), jnp.float32)],   # time-major GRU gi
    )

    out = pl.pallas_call(
        functools.partial(_fused_kernel, num_heads=num_heads, bb=bb,
                          n_rad=Nr, n_patch=Np),
        out_shape=jax.ShapeDtypeStruct((num_batch_blocks, bb, D), radical_emb.dtype),
        grid_spec=grid_spec,
        compiler_params=pltpu.CompilerParams(
            dimension_semantics=("parallel",),
            # Above all default scoped limits (16/32 MiB), below v7x's 64 MiB
            # physical VMEM; raise further on v5e/v6e (128 MiB physical) if needed.
            vmem_limit_bytes=48 * 1024 * 1024),
    )(seq_lens, rad_f, pat_f, *weights)
    return out.reshape(B, D)


# --------------------------------------------------------------------------
# Deterministic parameter init (shapes per the module's __init__)
# --------------------------------------------------------------------------
def _uniform(key, shape, fan_in):
    bound = 1.0 / math.sqrt(fan_in)
    return jax.random.uniform(key, shape, jnp.float32, -bound, bound)


def init_params(key, D, FF):
    ks = iter(jax.random.split(key, 32))
    p = {}
    # attention projections (K and V merged into one (D, 2D) weight)
    p["wq"] = _uniform(next(ks), (D, D), D)
    p["bq"] = _uniform(next(ks), (1, D), D)
    p["wkv"] = _uniform(next(ks), (D, 2 * D), D)
    p["bkv"] = _uniform(next(ks), (1, 2 * D), D)
    p["wo"] = _uniform(next(ks), (D, D), D)
    p["bo"] = _uniform(next(ks), (1, D), D)
    # layer norms
    p["ln1_g"] = jnp.ones((1, D), jnp.float32)
    p["ln1_b"] = jnp.zeros((1, D), jnp.float32)
    p["ln2_g"] = jnp.ones((1, D), jnp.float32)
    p["ln2_b"] = jnp.zeros((1, D), jnp.float32)
    # feed-forward
    p["w1"] = _uniform(next(ks), (D, FF), D)
    p["b1"] = _uniform(next(ks), (1, FF), D)
    p["w2"] = _uniform(next(ks), (FF, D), FF)
    p["b2"] = _uniform(next(ks), (1, D), FF)
    # GRU (PyTorch layout is [3D, D] with gate order r,z,n; stored transposed,
    # per gate; the wrapper merges them into (D,3D) and folds r/z hidden biases)
    for g in ("r", "z", "n"):
        p[f"wih_{g}"] = _uniform(next(ks), (D, D), D)
        p[f"whh_{g}"] = _uniform(next(ks), (D, D), D)
        p[f"bih_{g}"] = _uniform(next(ks), (1, D), D)
        p[f"bhh_{g}"] = _uniform(next(ks), (1, D), D)
    return p


if __name__ == "__main__":
    B, Np, Nr, D, H = 4, 6, 8, 32, 4     # batch*seq_len, patch_num, radical_num, patch_dim, heads
    FF = D                                # ff_size == -1 -> defaults to patch_dim

    key = jax.random.PRNGKey(0)
    k_patch, k_rad, k_par = jax.random.split(key, 3)
    patch_emb = jax.random.normal(k_patch, (B, Np, D), jnp.float32)
    radical_emb = jax.random.normal(k_rad, (B, Nr, D), jnp.float32)
    seq_lens = jnp.array([8, 5, 3, 7], jnp.int32)   # radical lengths per element

    params = init_params(k_par, D, FF)

    out = radical_encoder_layer(patch_emb, radical_emb, seq_lens, params, H)
    out = jax.block_until_ready(out)
    assert out.shape == (B, D) and out.dtype == jnp.float32
    print("KERNEL_OK")
</pallas_src>

<mosaic_0001>
module attributes {stable_mosaic.version = 11 : i64} {
  func.func @_fused_kernel(%arg0: i32, %arg1: memref<4xi32, #tpu.memory_space<smem>>, %arg2: memref<1x32x32xf32, #tpu.memory_space<vmem>>, %arg3: memref<1x24x32xf32, #tpu.memory_space<vmem>>, %arg4: memref<32x32xbf16, #tpu.memory_space<vmem>>, %arg5: memref<1x32xf32, #tpu.memory_space<vmem>>, %arg6: memref<32x64xbf16, #tpu.memory_space<vmem>>, %arg7: memref<1x64xf32, #tpu.memory_space<vmem>>, %arg8: memref<32x32xbf16, #tpu.memory_space<vmem>>, %arg9: memref<1x32xf32, #tpu.memory_space<vmem>>, %arg10: memref<1x32xf32, #tpu.memory_space<vmem>>, %arg11: memref<1x32xf32, #tpu.memory_space<vmem>>, %arg12: memref<32x32xbf16, #tpu.memory_space<vmem>>, %arg13: memref<1x32xf32, #tpu.memory_space<vmem>>, %arg14: memref<32x32xbf16, #tpu.memory_space<vmem>>, %arg15: memref<1x32xf32, #tpu.memory_space<vmem>>, %arg16: memref<1x32xf32, #tpu.memory_space<vmem>>, %arg17: memref<1x32xf32, #tpu.memory_space<vmem>>, %arg18: memref<32x96xbf16, #tpu.memory_space<vmem>>, %arg19: memref<32x96xbf16, #tpu.memory_space<vmem>>, %arg20: memref<1x96xf32, #tpu.memory_space<vmem>>, %arg21: memref<1x32xf32, #tpu.memory_space<vmem>>, %arg22: memref<1x4x32xf32, #tpu.memory_space<vmem>>, %arg23: memref<8x4x96xf32, #tpu.memory_space<vmem>>) attributes {dimension_semantics = [#tpu.dimension_semantics<parallel>], iteration_bounds = array<i64: 1>, scalar_prefetch = 1 : i64, scratch_operands = 1 : i64, tpu.core_type = #tpu.core_type<tc>, window_params = [{transform_indices = @transform_0, window_bounds = array<i64: 1, 32, 32>}, {transform_indices = @transform_1, window_bounds = array<i64: 1, 24, 32>}, {pipeline_mode = #tpu.pipeline_mode<synchronous>, transform_indices = @transform_2, window_bounds = array<i64: 32, 32>}, {pipeline_mode = #tpu.pipeline_mode<synchronous>, transform_indices = @transform_3, window_bounds = array<i64: 1, 32>}, {pipeline_mode = #tpu.pipeline_mode<synchronous>, transform_indices = @transform_4, window_bounds = array<i64: 32, 64>}, {pipeline_mode = #tpu.pipeline_mode<synchronous>, transform_indices = @transform_5, window_bounds = array<i64: 1, 64>}, {pipeline_mode = #tpu.pipeline_mode<synchronous>, transform_indices = @transform_6, window_bounds = array<i64: 32, 32>}, {pipeline_mode = #tpu.pipeline_mode<synchronous>, transform_indices = @transform_7, window_bounds = array<i64: 1, 32>}, {pipeline_mode = #tpu.pipeline_mode<synchronous>, transform_indices = @transform_8, window_bounds = array<i64: 1, 32>}, {pipeline_mode = #tpu.pipeline_mode<synchronous>, transform_indices = @transform_9, window_bounds = array<i64: 1, 32>}, {pipeline_mode = #tpu.pipeline_mode<synchronous>, transform_indices = @transform_10, window_bounds = array<i64: 32, 32>}, {pipeline_mode = #tpu.pipeline_mode<synchronous>, transform_indices = @transform_11, window_bounds = array<i64: 1, 32>}, {pipeline_mode = #tpu.pipeline_mode<synchronous>, transform_indices = @transform_12, window_bounds = array<i64: 32, 32>}, {pipeline_mode = #tpu.pipeline_mode<synchronous>, transform_indices = @transform_13, window_bounds = array<i64: 1, 32>}, {pipeline_mode = #tpu.pipeline_mode<synchronous>, transform_indices = @transform_14, window_bounds = array<i64: 1, 32>}, {pipeline_mode = #tpu.pipeline_mode<synchronous>, transform_indices = @transform_15, window_bounds = array<i64: 1, 32>}, {pipeline_mode = #tpu.pipeline_mode<synchronous>, transform_indices = @transform_16, window_bounds = array<i64: 32, 96>}, {pipeline_mode = #tpu.pipeline_mode<synchronous>, transform_indices = @transform_17, window_bounds = array<i64: 32, 96>}, {pipeline_mode = #tpu.pipeline_mode<synchronous>, transform_indices = @transform_18, window_bounds = array<i64: 1, 96>}, {pipeline_mode = #tpu.pipeline_mode<synchronous>, transform_indices = @transform_19, window_bounds = array<i64: 1, 32>}, {transform_indices = @transform_20, window_bounds = array<i64: 1, 4, 32>}]} {
    %c0 = arith.constant 0 : index
    %c0_0 = arith.constant 0 : index
    %c0_1 = arith.constant 0 : index
    %0 = vector.load %arg2[%c0, %c0_0, %c0_1] : memref<1x32x32xf32, #tpu.memory_space<vmem>>, vector<1x32x32xf32>
    %1 = vector.shape_cast %0 : vector<1x32x32xf32> to vector<32x32xf32>
    %c0_2 = arith.constant 0 : index
    %c0_3 = arith.constant 0 : index
    %c0_4 = arith.constant 0 : index
    %2 = vector.load %arg2[%c0_2, %c0_3, %c0_4] : memref<1x32x32xf32, #tpu.memory_space<vmem>>, vector<1x32x32xf32>
    %3 = vector.shape_cast %2 : vector<1x32x32xf32> to vector<32x32xf32>
    %4 = arith.truncf %3 : vector<32x32xf32> to vector<32x32xbf16>
    %c0_5 = arith.constant 0 : index
    %c0_6 = arith.constant 0 : index
    %c0_7 = arith.constant 0 : index
    %5 = vector.load %arg3[%c0_5, %c0_6, %c0_7] : memref<1x24x32xf32, #tpu.memory_space<vmem>>, vector<1x24x32xf32>
    %6 = vector.shape_cast %5 : vector<1x24x32xf32> to vector<24x32xf32>
    %7 = arith.truncf %6 : vector<24x32xf32> to vector<24x32xbf16>
    %c0_8 = arith.constant 0 : index
    %c0_9 = arith.constant 0 : index
    %8 = vector.load %arg4[%c0_8, %c0_9] : memref<32x32xbf16, #tpu.memory_space<vmem>>, vector<32x32xbf16>
    %c0_10 = arith.constant 0 : index
    %c0_11 = arith.constant 0 : index
    %9 = vector.load %arg6[%c0_10, %c0_11] : memref<32x64xbf16, #tpu.memory_space<vmem>>, vector<32x64xbf16>
    %c0_12 = arith.constant 0 : index
    %c0_13 = arith.constant 0 : index
    %10 = vector.load %arg8[%c0_12, %c0_13] : memref<32x32xbf16, #tpu.memory_space<vmem>>, vector<32x32xbf16>
    %c0_14 = arith.constant 0 : index
    %c0_15 = arith.constant 0 : index
    %11 = vector.load %arg5[%c0_14, %c0_15] : memref<1x32xf32, #tpu.memory_space<vmem>>, vector<1x32xf32>
    %c0_16 = arith.constant 0 : index
    %c0_17 = arith.constant 0 : index
    %12 = vector.load %arg7[%c0_16, %c0_17] : memref<1x64xf32, #tpu.memory_space<vmem>>, vector<1x64xf32>
    %13 = tpu.iota {dimensions = array<i32: 0>} : vector<32x1xi32>
    %14 = tpu.iota {dimensions = array<i32: 1>} : vector<1x24xi32>
    %c0_i32 = arith.constant 0 : i32
    %15 = vector.broadcast %c0_i32 : i32 to vector<32x1xi32>
    %c0_i32_18 = arith.constant 0 : i32
    %16 = vector.broadcast %c0_i32_18 : i32 to vector<1x24xi32>
    %c8_i32 = arith.constant 8 : i32
    %17 = vector.broadcast %c8_i32 : i32 to vector<32x1xi32>
    %18 = arith.cmpi sge, %13, %17 : vector<32x1xi32>
    %19 = arith.extui %18 : vector<32x1xi1> to vector<32x1xi32>
    %20 = arith.addi %15, %19 : vector<32x1xi32>
    %c6_i32 = arith.constant 6 : i32
    %21 = vector.broadcast %c6_i32 : i32 to vector<1x24xi32>
    %22 = arith.cmpi sge, %14, %21 : vector<1x24xi32>
    %23 = arith.extui %22 : vector<1x24xi1> to vector<1x24xi32>
    %24 = arith.addi %16, %23 : vector<1x24xi32>
    %c16_i32 = arith.constant 16 : i32
    %25 = vector.broadcast %c16_i32 : i32 to vector<32x1xi32>
    %26 = arith.cmpi sge, %13, %25 : vector<32x1xi32>
    %27 = arith.extui %26 : vector<32x1xi1> to vector<32x1xi32>
    %28 = arith.addi %20, %27 : vector<32x1xi32>
    %c12_i32 = arith.constant 12 : i32
    %29 = vector.broadcast %c12_i32 : i32 to vector<1x24xi32>
    %30 = arith.cmpi sge, %14, %29 : vector<1x24xi32>
    %31 = arith.extui %30 : vector<1x24xi1> to vector<1x24xi32>
    %32 = arith.addi %24, %31 : vector<1x24xi32>
    %c24_i32 = arith.constant 24 : i32
    %33 = vector.broadcast %c24_i32 : i32 to vector<32x1xi32>
    %34 = arith.cmpi sge, %13, %33 : vector<32x1xi32>
    %35 = arith.extui %34 : vector<32x1xi1> to vector<32x1xi32>
    %36 = arith.addi %28, %35 : vector<32x1xi32>
    %c18_i32 = arith.constant 18 : i32
    %37 = vector.broadcast %c18_i32 : i32 to vector<1x24xi32>
    %38 = arith.cmpi sge, %14, %37 : vector<1x24xi32>
    %39 = arith.extui %38 : vector<1x24xi1> to vector<1x24xi32>
    %40 = arith.addi %32, %39 : vector<1x24xi32>
    %41 = vector.broadcast %36 : vector<32x1xi32> to vector<32x24xi32>
    %42 = vector.broadcast %40 : vector<1x24xi32> to vector<32x24xi32>
    %43 = arith.cmpi eq, %41, %42 : vector<32x24xi32>
    %cst = arith.constant 0.000000e+00 : f32
    %cst_19 = arith.constant -1.000000e+30 : f32
    %44 = vector.broadcast %cst : f32 to vector<32x24xf32>
    %45 = vector.broadcast %cst_19 : f32 to vector<32x24xf32>
    %46 = arith.select %43, %44, %45 : vector<32x24xi1>, vector<32x24xf32>
    %47 = vector.extract_strided_slice %8 {offsets = [0, 0], sizes = [32, 8], strides = [1, 1]} : vector<32x32xbf16> to vector<32x8xbf16>
    %cst_20 = arith.constant dense<0.000000e+00> : vector<32x8xf32>
    %48 = tpu.matmul %4, %47, %cst_20 {dimension_numbers = #tpu.dot_dimension_numbers<[1], [0], [0], [1], [0, 0, 1, 1], [], []>} : vector<32x32xbf16>, vector<32x8xbf16>, vector<32x8xf32> -> vector<32x8xf32>
    %49 = vector.extract_strided_slice %11 {offsets = [0, 0], sizes = [1, 8], strides = [1, 1]} : vector<1x32xf32> to vector<1x8xf32>
    %50 = vector.broadcast %49 : vector<1x8xf32> to vector<32x8xf32>
    %51 = arith.addf %48, %50 : vector<32x8xf32>
    %52 = vector.extract_strided_slice %9 {offsets = [0, 0], sizes = [32, 8], strides = [1, 1]} : vector<32x64xbf16> to vector<32x8xbf16>
    %cst_21 = arith.constant dense<0.000000e+00> : vector<24x8xf32>
    %53 = tpu.matmul %7, %52, %cst_21 {dimension_numbers = #tpu.dot_dimension_numbers<[1], [0], [0], [1], [0, 0, 1, 1], [], []>} : vector<24x32xbf16>, vector<32x8xbf16>, vector<24x8xf32> -> vector<24x8xf32>
    %54 = vector.extract_strided_slice %12 {offsets = [0, 0], sizes = [1, 8], strides = [1, 1]} : vector<1x64xf32> to vector<1x8xf32>
    %55 = vector.broadcast %54 : vector<1x8xf32> to vector<24x8xf32>
    %56 = arith.addf %53, %55 : vector<24x8xf32>
    %57 = vector.extract_strided_slice %9 {offsets = [0, 32], sizes = [32, 8], strides = [1, 1]} : vector<32x64xbf16> to vector<32x8xbf16>
    %cst_22 = arith.constant dense<0.000000e+00> : vector<24x8xf32>
    %58 = tpu.matmul %7, %57, %cst_22 {dimension_numbers = #tpu.dot_dimension_numbers<[1], [0], [0], [1], [0, 0, 1, 1], [], []>} : vector<24x32xbf16>, vector<32x8xbf16>, vector<24x8xf32> -> vector<24x8xf32>
    %59 = vector.extract_strided_slice %12 {offsets = [0, 32], sizes = [1, 8], strides = [1, 1]} : vector<1x64xf32> to vector<1x8xf32>
    %60 = vector.broadcast %59 : vector<1x8xf32> to vector<24x8xf32>
    %61 = arith.addf %58, %60 : vector<24x8xf32>
    %62 = arith.truncf %51 : vector<32x8xf32> to vector<32x8xbf16>
    %63 = arith.truncf %56 : vector<24x8xf32> to vector<24x8xbf16>
    %64 = tpu.transpose %63, [1, 0] : vector<24x8xbf16> -> vector<8x24xbf16>
    %cst_23 = arith.constant dense<0.000000e+00> : vector<32x24xf32>
    %65 = tpu.matmul %62, %64, %cst_23 {dimension_numbers = #tpu.dot_dimension_numbers<[1], [0], [0], [1], [0, 0, 1, 1], [], []>} : vector<32x8xbf16>, vector<8x24xbf16>, vector<32x24xf32> -> vector<32x24xf32>
    %cst_24 = arith.constant 0.353553385 : f32
    %66 = vector.broadcast %cst_24 : f32 to vector<32x24xf32>
    %67 = arith.mulf %65, %66 : vector<32x24xf32>
    %68 = arith.addf %67, %46 : vector<32x24xf32>
    %cst_25 = arith.constant dense<0xFF800000> : vector<32xf32>
    %69 = vector.multi_reduction <maximumf>, %68, %cst_25 [1] : vector<32x24xf32> to vector<32xf32>
    %70 = vector.shape_cast %69 : vector<32xf32> to vector<32x1xf32>
    %71 = vector.broadcast %70 : vector<32x1xf32> to vector<32x24xf32>
    %72 = arith.subf %68, %71 : vector<32x24xf32>
    %73 = math.exp %72 : vector<32x24xf32>
    %cst_26 = arith.constant dense<0.000000e+00> : vector<32xf32>
    %74 = vector.multi_reduction <add>, %73, %cst_26 [1] : vector<32x24xf32> to vector<32xf32>
    %75 = vector.shape_cast %74 : vector<32xf32> to vector<32x1xf32>
    %76 = tpu.reciprocal %75 {approx = true} : vector<32x1xf32> -> vector<32x1xf32>
    %77 = vector.broadcast %76 : vector<32x1xf32> to vector<32x24xf32>
    %78 = arith.mulf %73, %77 : vector<32x24xf32>
    %79 = arith.truncf %78 : vector<32x24xf32> to vector<32x24xbf16>
    %80 = arith.truncf %61 : vector<24x8xf32> to vector<24x8xbf16>
    %cst_27 = arith.constant dense<0.000000e+00> : vector<32x8xf32>
    %81 = tpu.matmul %79, %80, %cst_27 {dimension_numbers = #tpu.dot_dimension_numbers<[1], [0], [0], [1], [0, 0, 1, 1], [], []>} : vector<32x24xbf16>, vector<24x8xbf16>, vector<32x8xf32> -> vector<32x8xf32>
    %82 = arith.truncf %81 : vector<32x8xf32> to vector<32x8xbf16>
    %83 = vector.extract_strided_slice %10 {offsets = [0, 0], sizes = [8, 32], strides = [1, 1]} : vector<32x32xbf16> to vector<8x32xbf16>
    %cst_28 = arith.constant dense<0.000000e+00> : vector<32x32xf32>
    %84 = tpu.matmul %82, %83, %cst_28 {dimension_numbers = #tpu.dot_dimension_numbers<[1], [0], [0], [1], [0, 0, 1, 1], [], []>} : vector<32x8xbf16>, vector<8x32xbf16>, vector<32x32xf32> -> vector<32x32xf32>
    %85 = vector.extract_strided_slice %8 {offsets = [0, 8], sizes = [32, 8], strides = [1, 1]} : vector<32x32xbf16> to vector<32x8xbf16>
    %cst_29 = arith.constant dense<0.000000e+00> : vector<32x8xf32>
    %86 = tpu.matmul %4, %85, %cst_29 {dimension_numbers = #tpu.dot_dimension_numbers<[1], [0], [0], [1], [0, 0, 1, 1], [], []>} : vector<32x32xbf16>, vector<32x8xbf16>, vector<32x8xf32> -> vector<32x8xf32>
    %87 = vector.extract_strided_slice %11 {offsets = [0, 8], sizes = [1, 8], strides = [1, 1]} : vector<1x32xf32> to vector<1x8xf32>
    %88 = vector.broadcast %87 : vector<1x8xf32> to vector<32x8xf32>
    %89 = arith.addf %86, %88 : vector<32x8xf32>
    %90 = vector.extract_strided_slice %9 {offsets = [0, 8], sizes = [32, 8], strides = [1, 1]} : vector<32x64xbf16> to vector<32x8xbf16>
    %cst_30 = arith.constant dense<0.000000e+00> : vector<24x8xf32>
    %91 = tpu.matmul %7, %90, %cst_30 {dimension_numbers = #tpu.dot_dimension_numbers<[1], [0], [0], [1], [0, 0, 1, 1], [], []>} : vector<24x32xbf16>, vector<32x8xbf16>, vector<24x8xf32> -> vector<24x8xf32>
    %92 = vector.extract_strided_slice %12 {offsets = [0, 8], sizes = [1, 8], strides = [1, 1]} : vector<1x64xf32> to vector<1x8xf32>
    %93 = vector.broadcast %92 : vector<1x8xf32> to vector<24x8xf32>
    %94 = arith.addf %91, %93 : vector<24x8xf32>
    %95 = vector.extract_strided_slice %9 {offsets = [0, 40], sizes = [32, 8], strides = [1, 1]} : vector<32x64xbf16> to vector<32x8xbf16>
    %cst_31 = arith.constant dense<0.000000e+00> : vector<24x8xf32>
    %96 = tpu.matmul %7, %95, %cst_31 {dimension_numbers = #tpu.dot_dimension_numbers<[1], [0], [0], [1], [0, 0, 1, 1], [], []>} : vector<24x32xbf16>, vector<32x8xbf16>, vector<24x8xf32> -> vector<24x8xf32>
    %97 = vector.extract_strided_slice %12 {offsets = [0, 40], sizes = [1, 8], strides = [1, 1]} : vector<1x64xf32> to vector<1x8xf32>
    %98 = vector.broadcast %97 : vector<1x8xf32> to vector<24x8xf32>
    %99 = arith.addf %96, %98 : vector<24x8xf32>
    %100 = arith.truncf %89 : vector<32x8xf32> to vector<32x8xbf16>
    %101 = arith.truncf %94 : vector<24x8xf32> to vector<24x8xbf16>
    %102 = tpu.transpose %101, [1, 0] : vector<24x8xbf16> -> vector<8x24xbf16>
    %cst_32 = arith.constant dense<0.000000e+00> : vector<32x24xf32>
    %103 = tpu.matmul %100, %102, %cst_32 {dimension_numbers = #tpu.dot_dimension_numbers<[1], [0], [0], [1], [0, 0, 1, 1], [], []>} : vector<32x8xbf16>, vector<8x24xbf16>, vector<32x24xf32> -> vector<32x24xf32>
    %cst_33 = arith.constant 0.353553385 : f32
    %104 = vector.broadcast %cst_33 : f32 to vector<32x24xf32>
    %105 = arith.mulf %103, %104 : vector<32x24xf32>
    %106 = arith.addf %105, %46 : vector<32x24xf32>
    %cst_34 = arith.constant dense<0xFF800000> : vector<32xf32>
    %107 = vector.multi_reduction <maximumf>, %106, %cst_34 [1] : vector<32x24xf32> to vector<32xf32>
    %108 = vector.shape_cast %107 : vector<32xf32> to vector<32x1xf32>
    %109 = vector.broadcast %108 : vector<32x1xf32> to vector<32x24xf32>
    %110 = arith.subf %106, %109 : vector<32x24xf32>
    %111 = math.exp %110 : vector<32x24xf32>
    %cst_35 = arith.constant dense<0.000000e+00> : vector<32xf32>
    %112 = vector.multi_reduction <add>, %111, %cst_35 [1] : vector<32x24xf32> to vector<32xf32>
    %113 = vector.shape_cast %112 : vector<32xf32> to vector<32x1xf32>
    %114 = tpu.reciprocal %113 {approx = true} : vector<32x1xf32> -> vector<32x1xf32>
    %115 = vector.broadcast %114 : vector<32x1xf32> to vector<32x24xf32>
    %116 = arith.mulf %111, %115 : vector<32x24xf32>
    %117 = arith.truncf %116 : vector<32x24xf32> to vector<32x24xbf16>
    %118 = arith.truncf %99 : vector<24x8xf32> to vector<24x8xbf16>
    %cst_36 = arith.constant dense<0.000000e+00> : vector<32x8xf32>
    %119 = tpu.matmul %117, %118, %cst_36 {dimension_numbers = #tpu.dot_dimension_numbers<[1], [0], [0], [1], [0, 0, 1, 1], [], []>} : vector<32x24xbf16>, vector<24x8xbf16>, vector<32x8xf32> -> vector<32x8xf32>
    %120 = arith.truncf %119 : vector<32x8xf32> to vector<32x8xbf16>
    %121 = vector.extract_strided_slice %10 {offsets = [8, 0], sizes = [8, 32], strides = [1, 1]} : vector<32x32xbf16> to vector<8x32xbf16>
    %cst_37 = arith.constant dense<0.000000e+00> : vector<32x32xf32>
    %122 = tpu.matmul %120, %121, %cst_37 {dimension_numbers = #tpu.dot_dimension_numbers<[1], [0], [0], [1], [0, 0, 1, 1], [], []>} : vector<32x8xbf16>, vector<8x32xbf16>, vector<32x32xf32> -> vector<32x32xf32>
    %123 = arith.addf %84, %122 : vector<32x32xf32>
    %124 = vector.extract_strided_slice %8 {offsets = [0, 16], sizes = [32, 8], strides = [1, 1]} : vector<32x32xbf16> to vector<32x8xbf16>
    %cst_38 = arith.constant dense<0.000000e+00> : vector<32x8xf32>
    %125 = tpu.matmul %4, %124, %cst_38 {dimension_numbers = #tpu.dot_dimension_numbers<[1], [0], [0], [1], [0, 0, 1, 1], [], []>} : vector<32x32xbf16>, vector<32x8xbf16>, vector<32x8xf32> -> vector<32x8xf32>
    %126 = vector.extract_strided_slice %11 {offsets = [0, 16], sizes = [1, 8], strides = [1, 1]} : vector<1x32xf32> to vector<1x8xf32>
    %127 = vector.broadcast %126 : vector<1x8xf32> to vector<32x8xf32>
    %128 = arith.addf %125, %127 : vector<32x8xf32>
    %129 = vector.extract_strided_slice %9 {offsets = [0, 16], sizes = [32, 8], strides = [1, 1]} : vector<32x64xbf16> to vector<32x8xbf16>
    %cst_39 = arith.constant dense<0.000000e+00> : vector<24x8xf32>
    %130 = tpu.matmul %7, %129, %cst_39 {dimension_numbers = #tpu.dot_dimension_numbers<[1], [0], [0], [1], [0, 0, 1, 1], [], []>} : vector<24x32xbf16>, vector<32x8xbf16>, vector<24x8xf32> -> vector<24x8xf32>
    %131 = vector.extract_strided_slice %12 {offsets = [0, 16], sizes = [1, 8], strides = [1, 1]} : vector<1x64xf32> to vector<1x8xf32>
    %132 = vector.broadcast %131 : vector<1x8xf32> to vector<24x8xf32>
    %133 = arith.addf %130, %132 : vector<24x8xf32>
    %134 = vector.extract_strided_slice %9 {offsets = [0, 48], sizes = [32, 8], strides = [1, 1]} : vector<32x64xbf16> to vector<32x8xbf16>
    %cst_40 = arith.constant dense<0.000000e+00> : vector<24x8xf32>
    %135 = tpu.matmul %7, %134, %cst_40 {dimension_numbers = #tpu.dot_dimension_numbers<[1], [0], [0], [1], [0, 0, 1, 1], [], []>} : vector<24x32xbf16>, vector<32x8xbf16>, vector<24x8xf32> -> vector<24x8xf32>
    %136 = vector.extract_strided_slice %12 {offsets = [0, 48], sizes = [1, 8], strides = [1, 1]} : vector<1x64xf32> to vector<1x8xf32>
    %137 = vector.broadcast %136 : vector<1x8xf32> to vector<24x8xf32>
    %138 = arith.addf %135, %137 : vector<24x8xf32>
    %139 = arith.truncf %128 : vector<32x8xf32> to vector<32x8xbf16>
    %140 = arith.truncf %133 : vector<24x8xf32> to vector<24x8xbf16>
    %141 = tpu.transpose %140, [1, 0] : vector<24x8xbf16> -> vector<8x24xbf16>
    %cst_41 = arith.constant dense<0.000000e+00> : vector<32x24xf32>
    %142 = tpu.matmul %139, %141, %cst_41 {dimension_numbers = #tpu.dot_dimension_numbers<[1], [0], [0], [1], [0, 0, 1, 1], [], []>} : vector<32x8xbf16>, vector<8x24xbf16>, vector<32x24xf32> -> vector<32x24xf32>
    %cst_42 = arith.constant 0.353553385 : f32
    %143 = vector.broadcast %cst_42 : f32 to vector<32x24xf32>
    %144 = arith.mulf %142, %143 : vector<32x24xf32>
    %145 = arith.addf %144, %46 : vector<32x24xf32>
    %cst_43 = arith.constant dense<0xFF800000> : vector<32xf32>
    %146 = vector.multi_reduction <maximumf>, %145, %cst_43 [1] : vector<32x24xf32> to vector<32xf32>
    %147 = vector.shape_cast %146 : vector<32xf32> to vector<32x1xf32>
    %148 = vector.broadcast %147 : vector<32x1xf32> to vector<32x24xf32>
    %149 = arith.subf %145, %148 : vector<32x24xf32>
    %150 = math.exp %149 : vector<32x24xf32>
    %cst_44 = arith.constant dense<0.000000e+00> : vector<32xf32>
    %151 = vector.multi_reduction <add>, %150, %cst_44 [1] : vector<32x24xf32> to vector<32xf32>
    %152 = vector.shape_cast %151 : vector<32xf32> to vector<32x1xf32>
    %153 = tpu.reciprocal %152 {approx = true} : vector<32x1xf32> -> vector<32x1xf32>
    %154 = vector.broadcast %153 : vector<32x1xf32> to vector<32x24xf32>
    %155 = arith.mulf %150, %154 : vector<32x24xf32>
    %156 = arith.truncf %155 : vector<32x24xf32> to vector<32x24xbf16>
    %157 = arith.truncf %138 : vector<24x8xf32> to vector<24x8xbf16>
    %cst_45 = arith.constant dense<0.000000e+00> : vector<32x8xf32>
    %158 = tpu.matmul %156, %157, %cst_45 {dimension_numbers = #tpu.dot_dimension_numbers<[1], [0], [0], [1], [0, 0, 1, 1], [], []>} : vector<32x24xbf16>, vector<24x8xbf16>, vector<32x8xf32> -> vector<32x8xf32>
    %159 = arith.truncf %158 : vector<32x8xf32> to vector<32x8xbf16>
    %160 = vector.extract_strided_slice %10 {offsets = [16, 0], sizes = [8, 32], strides = [1, 1]} : vector<32x32xbf16> to vector<8x32xbf16>
    %cst_46 = arith.constant dense<0.000000e+00> : vector<32x32xf32>
    %161 = tpu.matmul %159, %160, %cst_46 {dimension_numbers = #tpu.dot_dimension_numbers<[1], [0], [0], [1], [0, 0, 1, 1], [], []>} : vector<32x8xbf16>, vector<8x32xbf16>, vector<32x32xf32> -> vector<32x32xf32>
    %162 = arith.addf %123, %161 : vector<32x32xf32>
    %163 = vector.extract_strided_slice %8 {offsets = [0, 24], sizes = [32, 8], strides = [1, 1]} : vector<32x32xbf16> to vector<32x8xbf16>
    %cst_47 = arith.constant dense<0.000000e+00> : vector<32x8xf32>
    %164 = tpu.matmul %4, %163, %cst_47 {dimension_numbers = #tpu.dot_dimension_numbers<[1], [0], [0], [1], [0, 0, 1, 1], [], []>} : vector<32x32xbf16>, vector<32x8xbf16>, vector<32x8xf32> -> vector<32x8xf32>
    %165 = vector.extract_strided_slice %11 {offsets = [0, 24], sizes = [1, 8], strides = [1, 1]} : vector<1x32xf32> to vector<1x8xf32>
    %166 = vector.broadcast %165 : vector<1x8xf32> to vector<32x8xf32>
    %167 = arith.addf %164, %166 : vector<32x8xf32>
    %168 = vector.extract_strided_slice %9 {offsets = [0, 24], sizes = [32, 8], strides = [1, 1]} : vector<32x64xbf16> to vector<32x8xbf16>
    %cst_48 = arith.constant dense<0.000000e+00> : vector<24x8xf32>
    %169 = tpu.matmul %7, %168, %cst_48 {dimension_numbers = #tpu.dot_dimension_numbers<[1], [0], [0], [1], [0, 0, 1, 1], [], []>} : vector<24x32xbf16>, vector<32x8xbf16>, vector<24x8xf32> -> vector<24x8xf32>
    %170 = vector.extract_strided_slice %12 {offsets = [0, 24], sizes = [1, 8], strides = [1, 1]} : vector<1x64xf32> to vector<1x8xf32>
    %171 = vector.broadcast %170 : vector<1x8xf32> to vector<24x8xf32>
    %172 = arith.addf %169, %171 : vector<24x8xf32>
    %173 = vector.extract_strided_slice %9 {offsets = [0, 56], sizes = [32, 8], strides = [1, 1]} : vector<32x64xbf16> to vector<32x8xbf16>
    %cst_49 = arith.constant dense<0.000000e+00> : vector<24x8xf32>
    %174 = tpu.matmul %7, %173, %cst_49 {dimension_numbers = #tpu.dot_dimension_numbers<[1], [0], [0], [1], [0, 0, 1, 1], [], []>} : vector<24x32xbf16>, vector<32x8xbf16>, vector<24x8xf32> -> vector<24x8xf32>
    %175 = vector.extract_strided_slice %12 {offsets = [0, 56], sizes = [1, 8], strides = [1, 1]} : vector<1x64xf32> to vector<1x8xf32>
    %176 = vector.broadcast %175 : vector<1x8xf32> to vector<24x8xf32>
    %177 = arith.addf %174, %176 : vector<24x8xf32>
    %178 = arith.truncf %167 : vector<32x8xf32> to vector<32x8xbf16>
    %179 = arith.truncf %172 : vector<24x8xf32> to vector<24x8xbf16>
    %180 = tpu.transpose %179, [1, 0] : vector<24x8xbf16> -> vector<8x24xbf16>
    %cst_50 = arith.constant dense<0.000000e+00> : vector<32x24xf32>
    %181 = tpu.matmul %178, %180, %cst_50 {dimension_numbers = #tpu.dot_dimension_numbers<[1], [0], [0], [1], [0, 0, 1, 1], [], []>} : vector<32x8xbf16>, vector<8x24xbf16>, vector<32x24xf32> -> vector<32x24xf32>
    %cst_51 = arith.constant 0.353553385 : f32
    %182 = vector.broadcast %cst_51 : f32 to vector<32x24xf32>
    %183 = arith.mulf %181, %182 : vector<32x24xf32>
    %184 = arith.addf %183, %46 : vector<32x24xf32>
    %cst_52 = arith.constant dense<0xFF800000> : vector<32xf32>
    %185 = vector.multi_reduction <maximumf>, %184, %cst_52 [1] : vector<32x24xf32> to vector<32xf32>
    %186 = vector.shape_cast %185 : vector<32xf32> to vector<32x1xf32>
    %187 = vector.broadcast %186 : vector<32x1xf32> to vector<32x24xf32>
    %188 = arith.subf %184, %187 : vector<32x24xf32>
    %189 = math.exp %188 : vector<32x24xf32>
    %cst_53 = arith.constant dense<0.000000e+00> : vector<32xf32>
    %190 = vector.multi_reduction <add>, %189, %cst_53 [1] : vector<32x24xf32> to vector<32xf32>
    %191 = vector.shape_cast %190 : vector<32xf32> to vector<32x1xf32>
    %192 = tpu.reciprocal %191 {approx = true} : vector<32x1xf32> -> vector<32x1xf32>
    %193 = vector.broadcast %192 : vector<32x1xf32> to vector<32x24xf32>
    %194 = arith.mulf %189, %193 : vector<32x24xf32>
    %195 = arith.truncf %194 : vector<32x24xf32> to vector<32x24xbf16>
    %196 = arith.truncf %177 : vector<24x8xf32> to vector<24x8xbf16>
    %cst_54 = arith.constant dense<0.000000e+00> : vector<32x8xf32>
    %197 = tpu.matmul %195, %196, %cst_54 {dimension_numbers = #tpu.dot_dimension_numbers<[1], [0], [0], [1], [0, 0, 1, 1], [], []>} : vector<32x24xbf16>, vector<24x8xbf16>, vector<32x8xf32> -> vector<32x8xf32>
    %198 = arith.truncf %197 : vector<32x8xf32> to vector<32x8xbf16>
    %199 = vector.extract_strided_slice %10 {offsets = [24, 0], sizes = [8, 32], strides = [1, 1]} : vector<32x32xbf16> to vector<8x32xbf16>
    %cst_55 = arith.constant dense<0.000000e+00> : vector<32x32xf32>
    %200 = tpu.matmul %198, %199, %cst_55 {dimension_numbers = #tpu.dot_dimension_numbers<[1], [0], [0], [1], [0, 0, 1, 1], [], []>} : vector<32x8xbf16>, vector<8x32xbf16>, vector<32x32xf32> -> vector<32x32xf32>
    %201 = arith.addf %162, %200 : vector<32x32xf32>
    %c0_56 = arith.constant 0 : index
    %c0_57 = arith.constant 0 : index
    %202 = vector.load %arg9[%c0_56, %c0_57] : memref<1x32xf32, #tpu.memory_space<vmem>>, vector<1x32xf32>
    %203 = vector.broadcast %202 : vector<1x32xf32> to vector<32x32xf32>
    %204 = arith.addf %201, %203 : vector<32x32xf32>
    %205 = arith.addf %1, %204 : vector<32x32xf32>
    %c0_58 = arith.constant 0 : index
    %c0_59 = arith.constant 0 : index
    %206 = vector.load %arg10[%c0_58, %c0_59] : memref<1x32xf32, #tpu.memory_space<vmem>>, vector<1x32xf32>
    %c0_60 = arith.constant 0 : index
    %c0_61 = arith.constant 0 : index
    %207 = vector.load %arg11[%c0_60, %c0_61] : memref<1x32xf32, #tpu.memory_space<vmem>>, vector<1x32xf32>
    %cst_62 = arith.constant dense<0.000000e+00> : vector<32xf32>
    %208 = vector.multi_reduction <add>, %205, %cst_62 [1] : vector<32x32xf32> to vector<32xf32>
    %209 = vector.shape_cast %208 : vector<32xf32> to vector<32x1xf32>
    %cst_63 = arith.constant 3.200000e+01 : f32
    %210 = vector.broadcast %cst_63 : f32 to vector<32x1xf32>
    %211 = arith.divf %209, %210 : vector<32x1xf32>
    %212 = vector.broadcast %211 : vector<32x1xf32> to vector<32x32xf32>
    %213 = arith.subf %205, %212 : vector<32x32xf32>
    %214 = arith.mulf %213, %213 : vector<32x32xf32>
    %cst_64 = arith.constant dense<0.000000e+00> : vector<32xf32>
    %215 = vector.multi_reduction <add>, %214, %cst_64 [1] : vector<32x32xf32> to vector<32xf32>
    %216 = vector.shape_cast %215 : vector<32xf32> to vector<32x1xf32>
    %cst_65 = arith.constant 3.200000e+01 : f32
    %217 = vector.broadcast %cst_65 : f32 to vector<32x1xf32>
    %218 = arith.divf %216, %217 : vector<32x1xf32>
    %219 = vector.broadcast %211 : vector<32x1xf32> to vector<32x32xf32>
    %220 = arith.subf %205, %219 : vector<32x32xf32>
    %cst_66 = arith.constant 9.99999974E-6 : f32
    %221 = vector.broadcast %cst_66 : f32 to vector<32x1xf32>
    %222 = arith.addf %218, %221 : vector<32x1xf32>
    %223 = math.rsqrt %222 : vector<32x1xf32>
    %224 = vector.broadcast %223 : vector<32x1xf32> to vector<32x32xf32>
    %225 = arith.mulf %220, %224 : vector<32x32xf32>
    %226 = vector.broadcast %206 : vector<1x32xf32> to vector<32x32xf32>
    %227 = arith.mulf %225, %226 : vector<32x32xf32>
    %228 = vector.broadcast %207 : vector<1x32xf32> to vector<32x32xf32>
    %229 = arith.addf %227, %228 : vector<32x32xf32>
    %230 = arith.truncf %229 : vector<32x32xf32> to vector<32x32xbf16>
    %c0_67 = arith.constant 0 : index
    %c0_68 = arith.constant 0 : index
    %231 = vector.load %arg12[%c0_67, %c0_68] : memref<32x32xbf16, #tpu.memory_space<vmem>>, vector<32x32xbf16>
    %cst_69 = arith.constant dense<0.000000e+00> : vector<32x32xf32>
    %232 = tpu.matmul %230, %231, %cst_69 {dimension_numbers = #tpu.dot_dimension_numbers<[1], [0], [0], [1], [0, 0, 1, 1], [], []>} : vector<32x32xbf16>, vector<32x32xbf16>, vector<32x32xf32> -> vector<32x32xf32>
    %c0_70 = arith.constant 0 : index
    %c0_71 = arith.constant 0 : index
    %233 = vector.load %arg13[%c0_70, %c0_71] : memref<1x32xf32, #tpu.memory_space<vmem>>, vector<1x32xf32>
    %234 = vector.broadcast %233 : vector<1x32xf32> to vector<32x32xf32>
    %235 = arith.addf %232, %234 : vector<32x32xf32>
    %cst_72 = arith.constant 0.000000e+00 : f32
    %236 = vector.broadcast %cst_72 : f32 to vector<32x32xf32>
    %237 = arith.maximumf %235, %236 : vector<32x32xf32>
    %238 = arith.truncf %237 : vector<32x32xf32> to vector<32x32xbf16>
    %c0_73 = arith.constant 0 : index
    %c0_74 = arith.constant 0 : index
    %239 = vector.load %arg14[%c0_73, %c0_74] : memref<32x32xbf16, #tpu.memory_space<vmem>>, vector<32x32xbf16>
    %cst_75 = arith.constant dense<0.000000e+00> : vector<32x32xf32>
    %240 = tpu.matmul %238, %239, %cst_75 {dimension_numbers = #tpu.dot_dimension_numbers<[1], [0], [0], [1], [0, 0, 1, 1], [], []>} : vector<32x32xbf16>, vector<32x32xbf16>, vector<32x32xf32> -> vector<32x32xf32>
    %c0_76 = arith.constant 0 : index
    %c0_77 = arith.constant 0 : index
    %241 = vector.load %arg15[%c0_76, %c0_77] : memref<1x32xf32, #tpu.memory_space<vmem>>, vector<1x32xf32>
    %242 = vector.broadcast %241 : vector<1x32xf32> to vector<32x32xf32>
    %243 = arith.addf %240, %242 : vector<32x32xf32>
    %244 = arith.addf %229, %243 : vector<32x32xf32>
    %c0_78 = arith.constant 0 : index
    %c0_79 = arith.constant 0 : index
    %245 = vector.load %arg16[%c0_78, %c0_79] : memref<1x32xf32, #tpu.memory_space<vmem>>, vector<1x32xf32>
    %c0_80 = arith.constant 0 : index
    %c0_81 = arith.constant 0 : index
    %246 = vector.load %arg17[%c0_80, %c0_81] : memref<1x32xf32, #tpu.memory_space<vmem>>, vector<1x32xf32>
    %cst_82 = arith.constant dense<0.000000e+00> : vector<32xf32>
    %247 = vector.multi_reduction <add>, %244, %cst_82 [1] : vector<32x32xf32> to vector<32xf32>
    %248 = vector.shape_cast %247 : vector<32xf32> to vector<32x1xf32>
    %cst_83 = arith.constant 3.200000e+01 : f32
    %249 = vector.broadcast %cst_83 : f32 to vector<32x1xf32>
    %250 = arith.divf %248, %249 : vector<32x1xf32>
    %251 = vector.broadcast %250 : vector<32x1xf32> to vector<32x32xf32>
    %252 = arith.subf %244, %251 : vector<32x32xf32>
    %253 = arith.mulf %252, %252 : vector<32x32xf32>
    %cst_84 = arith.constant dense<0.000000e+00> : vector<32xf32>
    %254 = vector.multi_reduction <add>, %253, %cst_84 [1] : vector<32x32xf32> to vector<32xf32>
    %255 = vector.shape_cast %254 : vector<32xf32> to vector<32x1xf32>
    %cst_85 = arith.constant 3.200000e+01 : f32
    %256 = vector.broadcast %cst_85 : f32 to vector<32x1xf32>
    %257 = arith.divf %255, %256 : vector<32x1xf32>
    %258 = vector.broadcast %250 : vector<32x1xf32> to vector<32x32xf32>
    %259 = arith.subf %244, %258 : vector<32x32xf32>
    %cst_86 = arith.constant 9.99999974E-6 : f32
    %260 = vector.broadcast %cst_86 : f32 to vector<32x1xf32>
    %261 = arith.addf %257, %260 : vector<32x1xf32>
    %262 = math.rsqrt %261 : vector<32x1xf32>
    %263 = vector.broadcast %262 : vector<32x1xf32> to vector<32x32xf32>
    %264 = arith.mulf %259, %263 : vector<32x32xf32>
    %265 = vector.broadcast %245 : vector<1x32xf32> to vector<32x32xf32>
    %266 = arith.mulf %264, %265 : vector<32x32xf32>
    %267 = vector.broadcast %246 : vector<1x32xf32> to vector<32x32xf32>
    %268 = arith.addf %266, %267 : vector<32x32xf32>
    %c4_i32 = arith.constant 4 : i32
    %269 = arith.muli %arg0, %c4_i32 : i32
    %270 = tpu.iota {dimensions = array<i32: 0>} : vector<8x1xi32>
    %c0_i32_87 = arith.constant 0 : i32
    %271 = arith.addi %269, %c0_i32_87 : i32
    %272 = arith.index_cast %271 : i32 to index
    %273 = memref.load %arg1[%272] : memref<4xi32, #tpu.memory_space<smem>>
    %274 = vector.broadcast %273 : i32 to vector<8x1xi32>
    %275 = arith.cmpi slt, %270, %274 : vector<8x1xi32>
    %276 = arith.extui %275 : vector<8x1xi1> to vector<8x1xi32>
    %277 = arith.sitofp %276 : vector<8x1xi32> to vector<8x1xf32>
    %c1_i32 = arith.constant 1 : i32
    %278 = arith.addi %269, %c1_i32 : i32
    %279 = arith.index_cast %278 : i32 to index
    %280 = memref.load %arg1[%279] : memref<4xi32, #tpu.memory_space<smem>>
    %281 = vector.broadcast %280 : i32 to vector<8x1xi32>
    %282 = arith.cmpi slt, %270, %281 : vector<8x1xi32>
    %283 = arith.extui %282 : vector<8x1xi1> to vector<8x1xi32>
    %284 = arith.sitofp %283 : vector<8x1xi32> to vector<8x1xf32>
    %c2_i32 = arith.constant 2 : i32
    %285 = arith.addi %269, %c2_i32 : i32
    %286 = arith.index_cast %285 : i32 to index
    %287 = memref.load %arg1[%286] : memref<4xi32, #tpu.memory_space<smem>>
    %288 = vector.broadcast %287 : i32 to vector<8x1xi32>
    %289 = arith.cmpi slt, %270, %288 : vector<8x1xi32>
    %290 = arith.extui %289 : vector<8x1xi1> to vector<8x1xi32>
    %291 = arith.sitofp %290 : vector<8x1xi32> to vector<8x1xf32>
    %c3_i32 = arith.constant 3 : i32
    %292 = arith.addi %269, %c3_i32 : i32
    %293 = arith.index_cast %292 : i32 to index
    %294 = memref.load %arg1[%293] : memref<4xi32, #tpu.memory_space<smem>>
    %295 = vector.broadcast %294 : i32 to vector<8x1xi32>
    %296 = arith.cmpi slt, %270, %295 : vector<8x1xi32>
    %297 = arith.extui %296 : vector<8x1xi1> to vector<8x1xi32>
    %298 = arith.sitofp %297 : vector<8x1xi32> to vector<8x1xf32>
    %299 = tpu.concatenate %277, %284, %291, %298 in 0 : vector<8x1xf32>, vector<8x1xf32>, vector<8x1xf32>, vector<8x1xf32> -> vector<32x1xf32>
    %300 = vector.broadcast %299 : vector<32x1xf32> to vector<32x32xf32>
    %301 = arith.mulf %268, %300 : vector<32x32xf32>
    %302 = arith.truncf %301 : vector<32x32xf32> to vector<32x32xbf16>
    %c0_88 = arith.constant 0 : index
    %c0_89 = arith.constant 0 : index
    %303 = vector.load %arg18[%c0_88, %c0_89] : memref<32x96xbf16, #tpu.memory_space<vmem>>, vector<32x96xbf16>
    %cst_90 = arith.constant dense<0.000000e+00> : vector<32x96xf32>
    %304 = tpu.matmul %302, %303, %cst_90 {dimension_numbers = #tpu.dot_dimension_numbers<[1], [0], [0], [1], [0, 0, 1, 1], [], []>} : vector<32x32xbf16>, vector<32x96xbf16>, vector<32x96xf32> -> vector<32x96xf32>
    %c0_91 = arith.constant 0 : index
    %c0_92 = arith.constant 0 : index
    %305 = vector.load %arg20[%c0_91, %c0_92] : memref<1x96xf32, #tpu.memory_space<vmem>>, vector<1x96xf32>
    %306 = vector.broadcast %305 : vector<1x96xf32> to vector<32x96xf32>
    %307 = arith.addf %304, %306 : vector<32x96xf32>
    %308 = vector.extract_strided_slice %307 {offsets = [0, 0], sizes = [8, 96], strides = [1, 1]} : vector<32x96xf32> to vector<8x96xf32>
    %c0_93 = arith.constant 0 : index
    %c0_94 = arith.constant 0 : index
    %c0_95 = arith.constant 0 : index
    %309 = vector.load %arg23[%c0_93, %c0_94, %c0_95] : memref<8x4x96xf32, #tpu.memory_space<vmem>>, vector<8x1x96xf32>
    %310 = vector.shape_cast %309 : vector<8x1x96xf32> to vector<8x96xf32>
    %311 = vector.shape_cast %308 : vector<8x96xf32> to vector<8x1x96xf32>
    tpu.vector_store %arg23[%c0_93, %c0_94, %c0_95], %311 {strides = array<i32>} : memref<8x4x96xf32, #tpu.memory_space<vmem>>, vector<8x1x96xf32>,
    %312 = vector.extract_strided_slice %307 {offsets = [8, 0], sizes = [8, 96], strides = [1, 1]} : vector<32x96xf32> to vector<8x96xf32>
    %c0_96 = arith.constant 0 : index
    %c1 = arith.constant 1 : index
    %c0_97 = arith.constant 0 : index
    %313 = vector.load %arg23[%c0_96, %c1, %c0_97] : memref<8x4x96xf32, #tpu.memory_space<vmem>>, vector<8x1x96xf32>
    %314 = vector.shape_cast %313 : vector<8x1x96xf32> to vector<8x96xf32>
    %315 = vector.shape_cast %312 : vector<8x96xf32> to vector<8x1x96xf32>
    tpu.vector_store %arg23[%c0_96, %c1, %c0_97], %315 {strides = array<i32>} : memref<8x4x96xf32, #tpu.memory_space<vmem>>, vector<8x1x96xf32>,
    %316 = vector.extract_strided_slice %307 {offsets = [16, 0], sizes = [8, 96], strides = [1, 1]} : vector<32x96xf32> to vector<8x96xf32>
    %c0_98 = arith.constant 0 : index
    %c2 = arith.constant 2 : index
    %c0_99 = arith.constant 0 : index
    %317 = vector.load %arg23[%c0_98, %c2, %c0_99] : memref<8x4x96xf32, #tpu.memory_space<vmem>>, vector<8x1x96xf32>
    %318 = vector.shape_cast %317 : vector<8x1x96xf32> to vector<8x96xf32>
    %319 = vector.shape_cast %316 : vector<8x96xf32> to vector<8x1x96xf32>
    tpu.vector_store %arg23[%c0_98, %c2, %c0_99], %319 {strides = array<i32>} : memref<8x4x96xf32, #tpu.memory_space<vmem>>, vector<8x1x96xf32>,
    %320 = vector.extract_strided_slice %307 {offsets = [24, 0], sizes = [8, 96], strides = [1, 1]} : vector<32x96xf32> to vector<8x96xf32>
    %c0_100 = arith.constant 0 : index
    %c3 = arith.constant 3 : index
    %c0_101 = arith.constant 0 : index
    %321 = vector.load %arg23[%c0_100, %c3, %c0_101] : memref<8x4x96xf32, #tpu.memory_space<vmem>>, vector<8x1x96xf32>
    %322 = vector.shape_cast %321 : vector<8x1x96xf32> to vector<8x96xf32>
    %323 = vector.shape_cast %320 : vector<8x96xf32> to vector<8x1x96xf32>
    tpu.vector_store %arg23[%c0_100, %c3, %c0_101], %323 {strides = array<i32>} : memref<8x4x96xf32, #tpu.memory_space<vmem>>, vector<8x1x96xf32>,
    %c0_102 = arith.constant 0 : index
    %c0_103 = arith.constant 0 : index
    %324 = vector.load %arg19[%c0_102, %c0_103] : memref<32x96xbf16, #tpu.memory_space<vmem>>, vector<32x96xbf16>
    %c0_104 = arith.constant 0 : index
    %c0_105 = arith.constant 0 : index
    %325 = vector.load %arg21[%c0_104, %c0_105] : memref<1x32xf32, #tpu.memory_space<vmem>>, vector<1x32xf32>
    %326 = vector.shape_cast %325 : vector<1x32xf32> to vector<1x32xf32>
    %327 = vector.broadcast %326 : vector<1x32xf32> to vector<4x32xf32>
    %cst_106 = arith.constant 0.000000e+00 : f32
    %328 = vector.broadcast %cst_106 : f32 to vector<4x32xf32>
    %329 = arith.truncf %328 : vector<4x32xf32> to vector<4x32xbf16>
    %cst_107 = arith.constant dense<0.000000e+00> : vector<4x96xf32>
    %330 = tpu.matmul %329, %324, %cst_107 {dimension_numbers = #tpu.dot_dimension_numbers<[1], [0], [0], [1], [0, 0, 1, 1], [], []>} : vector<4x32xbf16>, vector<32x96xbf16>, vector<4x96xf32> -> vector<4x96xf32>
    %c0_108 = arith.constant 0 : index
    %c0_109 = arith.constant 0 : index
    %c0_110 = arith.constant 0 : index
    %331 = vector.load %arg23[%c0_108, %c0_109, %c0_110] : memref<8x4x96xf32, #tpu.memory_space<vmem>>, vector<1x4x96xf32>
    %332 = vector.shape_cast %331 : vector<1x4x96xf32> to vector<4x96xf32>
    %333 = vector.extract_strided_slice %332 {offsets = [0, 0], sizes = [4, 32], strides = [1, 1]} : vector<4x96xf32> to vector<4x32xf32>
    %334 = vector.extract_strided_slice %330 {offsets = [0, 0], sizes = [4, 32], strides = [1, 1]} : vector<4x96xf32> to vector<4x32xf32>
    %335 = arith.addf %333, %334 : vector<4x32xf32>
    %336 = arith.negf %335 : vector<4x32xf32>
    %337 = math.exp %336 : vector<4x32xf32>
    %cst_111 = arith.constant 1.000000e+00 : f32
    %338 = vector.broadcast %cst_111 : f32 to vector<4x32xf32>
    %339 = arith.addf %338, %337 : vector<4x32xf32>
    %340 = arith.divf %338, %339 : vector<4x32xf32>
    %341 = vector.extract_strided_slice %332 {offsets = [0, 32], sizes = [4, 32], strides = [1, 1]} : vector<4x96xf32> to vector<4x32xf32>
    %342 = vector.extract_strided_slice %330 {offsets = [0, 32], sizes = [4, 32], strides = [1, 1]} : vector<4x96xf32> to vector<4x32xf32>
    %343 = arith.addf %341, %342 : vector<4x32xf32>
    %344 = arith.negf %343 : vector<4x32xf32>
    %345 = math.exp %344 : vector<4x32xf32>
    %cst_112 = arith.constant 1.000000e+00 : f32
    %346 = vector.broadcast %cst_112 : f32 to vector<4x32xf32>
    %347 = arith.addf %346, %345 : vector<4x32xf32>
    %348 = arith.divf %346, %347 : vector<4x32xf32>
    %349 = vector.extract_strided_slice %332 {offsets = [0, 64], sizes = [4, 32], strides = [1, 1]} : vector<4x96xf32> to vector<4x32xf32>
    %350 = vector.extract_strided_slice %330 {offsets = [0, 64], sizes = [4, 32], strides = [1, 1]} : vector<4x96xf32> to vector<4x32xf32>
    %351 = arith.addf %350, %327 : vector<4x32xf32>
    %352 = arith.mulf %340, %351 : vector<4x32xf32>
    %353 = arith.addf %349, %352 : vector<4x32xf32>
    %354 = math.tanh %353 : vector<4x32xf32>
    %cst_113 = arith.constant 1.000000e+00 : f32
    %355 = vector.broadcast %cst_113 : f32 to vector<4x32xf32>
    %356 = arith.subf %355, %348 : vector<4x32xf32>
    %357 = arith.mulf %356, %354 : vector<4x32xf32>
    %358 = arith.mulf %348, %328 : vector<4x32xf32>
    %359 = arith.addf %357, %358 : vector<4x32xf32>
    %360 = arith.truncf %359 : vector<4x32xf32> to vector<4x32xbf16>
    %cst_114 = arith.constant dense<0.000000e+00> : vector<4x96xf32>
    %361 = tpu.matmul %360, %324, %cst_114 {dimension_numbers = #tpu.dot_dimension_numbers<[1], [0], [0], [1], [0, 0, 1, 1], [], []>} : vector<4x32xbf16>, vector<32x96xbf16>, vector<4x96xf32> -> vector<4x96xf32>
    %c1_115 = arith.constant 1 : index
    %c0_116 = arith.constant 0 : index
    %c0_117 = arith.constant 0 : index
    %362 = vector.load %arg23[%c1_115, %c0_116, %c0_117] : memref<8x4x96xf32, #tpu.memory_space<vmem>>, vector<1x4x96xf32>
    %363 = vector.shape_cast %362 : vector<1x4x96xf32> to vector<4x96xf32>
    %364 = vector.extract_strided_slice %363 {offsets = [0, 0], sizes = [4, 32], strides = [1, 1]} : vector<4x96xf32> to vector<4x32xf32>
    %365 = vector.extract_strided_slice %361 {offsets = [0, 0], sizes = [4, 32], strides = [1, 1]} : vector<4x96xf32> to vector<4x32xf32>
    %366 = arith.addf %364, %365 : vector<4x32xf32>
    %367 = arith.negf %366 : vector<4x32xf32>
    %368 = math.exp %367 : vector<4x32xf32>
    %cst_118 = arith.constant 1.000000e+00 : f32
    %369 = vector.broadcast %cst_118 : f32 to vector<4x32xf32>
    %370 = arith.addf %369, %368 : vector<4x32xf32>
    %371 = arith.divf %369, %370 : vector<4x32xf32>
    %372 = vector.extract_strided_slice %363 {offsets = [0, 32], sizes = [4, 32], strides = [1, 1]} : vector<4x96xf32> to vector<4x32xf32>
    %373 = vector.extract_strided_slice %361 {offsets = [0, 32], sizes = [4, 32], strides = [1, 1]} : vector<4x96xf32> to vector<4x32xf32>
    %374 = arith.addf %372, %373 : vector<4x32xf32>
    %375 = arith.negf %374 : vector<4x32xf32>
    %376 = math.exp %375 : vector<4x32xf32>
    %cst_119 = arith.constant 1.000000e+00 : f32
    %377 = vector.broadcast %cst_119 : f32 to vector<4x32xf32>
    %378 = arith.addf %377, %376 : vector<4x32xf32>
    %379 = arith.divf %377, %378 : vector<4x32xf32>
    %380 = vector.extract_strided_slice %363 {offsets = [0, 64], sizes = [4, 32], strides = [1, 1]} : vector<4x96xf32> to vector<4x32xf32>
    %381 = vector.extract_strided_slice %361 {offsets = [0, 64], sizes = [4, 32], strides = [1, 1]} : vector<4x96xf32> to vector<4x32xf32>
    %382 = arith.addf %381, %327 : vector<4x32xf32>
    %383 = arith.mulf %371, %382 : vector<4x32xf32>
    %384 = arith.addf %380, %383 : vector<4x32xf32>
    %385 = math.tanh %384 : vector<4x32xf32>
    %cst_120 = arith.constant 1.000000e+00 : f32
    %386 = vector.broadcast %cst_120 : f32 to vector<4x32xf32>
    %387 = arith.subf %386, %379 : vector<4x32xf32>
    %388 = arith.mulf %387, %385 : vector<4x32xf32>
    %389 = arith.mulf %379, %359 : vector<4x32xf32>
    %390 = arith.addf %388, %389 : vector<4x32xf32>
    %391 = arith.truncf %390 : vector<4x32xf32> to vector<4x32xbf16>
    %cst_121 = arith.constant dense<0.000000e+00> : vector<4x96xf32>
    %392 = tpu.matmul %391, %324, %cst_121 {dimension_numbers = #tpu.dot_dimension_numbers<[1], [0], [0], [1], [0, 0, 1, 1], [], []>} : vector<4x32xbf16>, vector<32x96xbf16>, vector<4x96xf32> -> vector<4x96xf32>
    %c2_122 = arith.constant 2 : index
    %c0_123 = arith.constant 0 : index
    %c0_124 = arith.constant 0 : index
    %393 = vector.load %arg23[%c2_122, %c0_123, %c0_124] : memref<8x4x96xf32, #tpu.memory_space<vmem>>, vector<1x4x96xf32>
    %394 = vector.shape_cast %393 : vector<1x4x96xf32> to vector<4x96xf32>
    %395 = vector.extract_strided_slice %394 {offsets = [0, 0], sizes = [4, 32], strides = [1, 1]} : vector<4x96xf32> to vector<4x32xf32>
    %396 = vector.extract_strided_slice %392 {offsets = [0, 0], sizes = [4, 32], strides = [1, 1]} : vector<4x96xf32> to vector<4x32xf32>
    %397 = arith.addf %395, %396 : vector<4x32xf32>
    %398 = arith.negf %397 : vector<4x32xf32>
    %399 = math.exp %398 : vector<4x32xf32>
    %cst_125 = arith.constant 1.000000e+00 : f32
    %400 = vector.broadcast %cst_125 : f32 to vector<4x32xf32>
    %401 = arith.addf %400, %399 : vector<4x32xf32>
    %402 = arith.divf %400, %401 : vector<4x32xf32>
    %403 = vector.extract_strided_slice %394 {offsets = [0, 32], sizes = [4, 32], strides = [1, 1]} : vector<4x96xf32> to vector<4x32xf32>
    %404 = vector.extract_strided_slice %392 {offsets = [0, 32], sizes = [4, 32], strides = [1, 1]} : vector<4x96xf32> to vector<4x32xf32>
    %405 = arith.addf %403, %404 : vector<4x32xf32>
    %406 = arith.negf %405 : vector<4x32xf32>
    %407 = math.exp %406 : vector<4x32xf32>
    %cst_126 = arith.constant 1.000000e+00 : f32
    %408 = vector.broadcast %cst_126 : f32 to vector<4x32xf32>
    %409 = arith.addf %408, %407 : vector<4x32xf32>
    %410 = arith.divf %408, %409 : vector<4x32xf32>
    %411 = vector.extract_strided_slice %394 {offsets = [0, 64], sizes = [4, 32], strides = [1, 1]} : vector<4x96xf32> to vector<4x32xf32>
    %412 = vector.extract_strided_slice %392 {offsets = [0, 64], sizes = [4, 32], strides = [1, 1]} : vector<4x96xf32> to vector<4x32xf32>
    %413 = arith.addf %412, %327 : vector<4x32xf32>
    %414 = arith.mulf %402, %413 : vector<4x32xf32>
    %415 = arith.addf %411, %414 : vector<4x32xf32>
    %416 = math.tanh %415 : vector<4x32xf32>
    %cst_127 = arith.constant 1.000000e+00 : f32
    %417 = vector.broadcast %cst_127 : f32 to vector<4x32xf32>
    %418 = arith.subf %417, %410 : vector<4x32xf32>
    %419 = arith.mulf %418, %416 : vector<4x32xf32>
    %420 = arith.mulf %410, %390 : vector<4x32xf32>
    %421 = arith.addf %419, %420 : vector<4x32xf32>
    %422 = arith.truncf %421 : vector<4x32xf32> to vector<4x32xbf16>
    %cst_128 = arith.constant dense<0.000000e+00> : vector<4x96xf32>
    %423 = tpu.matmul %422, %324, %cst_128 {dimension_numbers = #tpu.dot_dimension_numbers<[1], [0], [0], [1], [0, 0, 1, 1], [], []>} : vector<4x32xbf16>, vector<32x96xbf16>, vector<4x96xf32> -> vector<4x96xf32>
    %c3_129 = arith.constant 3 : index
    %c0_130 = arith.constant 0 : index
    %c0_131 = arith.constant 0 : index
    %424 = vector.load %arg23[%c3_129, %c0_130, %c0_131] : memref<8x4x96xf32, #tpu.memory_space<vmem>>, vector<1x4x96xf32>
    %425 = vector.shape_cast %424 : vector<1x4x96xf32> to vector<4x96xf32>
    %426 = vector.extract_strided_slice %425 {offsets = [0, 0], sizes = [4, 32], strides = [1, 1]} : vector<4x96xf32> to vector<4x32xf32>
    %427 = vector.extract_strided_slice %423 {offsets = [0, 0], sizes = [4, 32], strides = [1, 1]} : vector<4x96xf32> to vector<4x32xf32>
    %428 = arith.addf %426, %427 : vector<4x32xf32>
    %429 = arith.negf %428 : vector<4x32xf32>
    %430 = math.exp %429 : vector<4x32xf32>
    %cst_132 = arith.constant 1.000000e+00 : f32
    %431 = vector.broadcast %cst_132 : f32 to vector<4x32xf32>
    %432 = arith.addf %431, %430 : vector<4x32xf32>
    %433 = arith.divf %431, %432 : vector<4x32xf32>
    %434 = vector.extract_strided_slice %425 {offsets = [0, 32], sizes = [4, 32], strides = [1, 1]} : vector<4x96xf32> to vector<4x32xf32>
    %435 = vector.extract_strided_slice %423 {offsets = [0, 32], sizes = [4, 32], strides = [1, 1]} : vector<4x96xf32> to vector<4x32xf32>
    %436 = arith.addf %434, %435 : vector<4x32xf32>
    %437 = arith.negf %436 : vector<4x32xf32>
    %438 = math.exp %437 : vector<4x32xf32>
    %cst_133 = arith.constant 1.000000e+00 : f32
    %439 = vector.broadcast %cst_133 : f32 to vector<4x32xf32>
    %440 = arith.addf %439, %438 : vector<4x32xf32>
    %441 = arith.divf %439, %440 : vector<4x32xf32>
    %442 = vector.extract_strided_slice %425 {offsets = [0, 64], sizes = [4, 32], strides = [1, 1]} : vector<4x96xf32> to vector<4x32xf32>
    %443 = vector.extract_strided_slice %423 {offsets = [0, 64], sizes = [4, 32], strides = [1, 1]} : vector<4x96xf32> to vector<4x32xf32>
    %444 = arith.addf %443, %327 : vector<4x32xf32>
    %445 = arith.mulf %433, %444 : vector<4x32xf32>
    %446 = arith.addf %442, %445 : vector<4x32xf32>
    %447 = math.tanh %446 : vector<4x32xf32>
    %cst_134 = arith.constant 1.000000e+00 : f32
    %448 = vector.broadcast %cst_134 : f32 to vector<4x32xf32>
    %449 = arith.subf %448, %441 : vector<4x32xf32>
    %450 = arith.mulf %449, %447 : vector<4x32xf32>
    %451 = arith.mulf %441, %421 : vector<4x32xf32>
    %452 = arith.addf %450, %451 : vector<4x32xf32>
    %453 = arith.truncf %452 : vector<4x32xf32> to vector<4x32xbf16>
    %cst_135 = arith.constant dense<0.000000e+00> : vector<4x96xf32>
    %454 = tpu.matmul %453, %324, %cst_135 {dimension_numbers = #tpu.dot_dimension_numbers<[1], [0], [0], [1], [0, 0, 1, 1], [], []>} : vector<4x32xbf16>, vector<32x96xbf16>, vector<4x96xf32> -> vector<4x96xf32>
    %c4 = arith.constant 4 : index
    %c0_136 = arith.constant 0 : index
    %c0_137 = arith.constant 0 : index
    %455 = vector.load %arg23[%c4, %c0_136, %c0_137] : memref<8x4x96xf32, #tpu.memory_space<vmem>>, vector<1x4x96xf32>
    %456 = vector.shape_cast %455 : vector<1x4x96xf32> to vector<4x96xf32>
    %457 = vector.extract_strided_slice %456 {offsets = [0, 0], sizes = [4, 32], strides = [1, 1]} : vector<4x96xf32> to vector<4x32xf32>
    %458 = vector.extract_strided_slice %454 {offsets = [0, 0], sizes = [4, 32], strides = [1, 1]} : vector<4x96xf32> to vector<4x32xf32>
    %459 = arith.addf %457, %458 : vector<4x32xf32>
    %460 = arith.negf %459 : vector<4x32xf32>
    %461 = math.exp %460 : vector<4x32xf32>
    %cst_138 = arith.constant 1.000000e+00 : f32
    %462 = vector.broadcast %cst_138 : f32 to vector<4x32xf32>
    %463 = arith.addf %462, %461 : vector<4x32xf32>
    %464 = arith.divf %462, %463 : vector<4x32xf32>
    %465 = vector.extract_strided_slice %456 {offsets = [0, 32], sizes = [4, 32], strides = [1, 1]} : vector<4x96xf32> to vector<4x32xf32>
    %466 = vector.extract_strided_slice %454 {offsets = [0, 32], sizes = [4, 32], strides = [1, 1]} : vector<4x96xf32> to vector<4x32xf32>
    %467 = arith.addf %465, %466 : vector<4x32xf32>
    %468 = arith.negf %467 : vector<4x32xf32>
    %469 = math.exp %468 : vector<4x32xf32>
    %cst_139 = arith.constant 1.000000e+00 : f32
    %470 = vector.broadcast %cst_139 : f32 to vector<4x32xf32>
    %471 = arith.addf %470, %469 : vector<4x32xf32>
    %472 = arith.divf %470, %471 : vector<4x32xf32>
    %473 = vector.extract_strided_slice %456 {offsets = [0, 64], sizes = [4, 32], strides = [1, 1]} : vector<4x96xf32> to vector<4x32xf32>
    %474 = vector.extract_strided_slice %454 {offsets = [0, 64], sizes = [4, 32], strides = [1, 1]} : vector<4x96xf32> to vector<4x32xf32>
    %475 = arith.addf %474, %327 : vector<4x32xf32>
    %476 = arith.mulf %464, %475 : vector<4x32xf32>
    %477 = arith.addf %473, %476 : vector<4x32xf32>
    %478 = math.tanh %477 : vector<4x32xf32>
    %cst_140 = arith.constant 1.000000e+00 : f32
    %479 = vector.broadcast %cst_140 : f32 to vector<4x32xf32>
    %480 = arith.subf %479, %472 : vector<4x32xf32>
    %481 = arith.mulf %480, %478 : vector<4x32xf32>
    %482 = arith.mulf %472, %452 : vector<4x32xf32>
    %483 = arith.addf %481, %482 : vector<4x32xf32>
    %484 = arith.truncf %483 : vector<4x32xf32> to vector<4x32xbf16>
    %cst_141 = arith.constant dense<0.000000e+00> : vector<4x96xf32>
    %485 = tpu.matmul %484, %324, %cst_141 {dimension_numbers = #tpu.dot_dimension_numbers<[1], [0], [0], [1], [0, 0, 1, 1], [], []>} : vector<4x32xbf16>, vector<32x96xbf16>, vector<4x96xf32> -> vector<4x96xf32>
    %c5 = arith.constant 5 : index
    %c0_142 = arith.constant 0 : index
    %c0_143 = arith.constant 0 : index
    %486 = vector.load %arg23[%c5, %c0_142, %c0_143] : memref<8x4x96xf32, #tpu.memory_space<vmem>>, vector<1x4x96xf32>
    %487 = vector.shape_cast %486 : vector<1x4x96xf32> to vector<4x96xf32>
    %488 = vector.extract_strided_slice %487 {offsets = [0, 0], sizes = [4, 32], strides = [1, 1]} : vector<4x96xf32> to vector<4x32xf32>
    %489 = vector.extract_strided_slice %485 {offsets = [0, 0], sizes = [4, 32], strides = [1, 1]} : vector<4x96xf32> to vector<4x32xf32>
    %490 = arith.addf %488, %489 : vector<4x32xf32>
    %491 = arith.negf %490 : vector<4x32xf32>
    %492 = math.exp %491 : vector<4x32xf32>
    %cst_144 = arith.constant 1.000000e+00 : f32
    %493 = vector.broadcast %cst_144 : f32 to vector<4x32xf32>
    %494 = arith.addf %493, %492 : vector<4x32xf32>
    %495 = arith.divf %493, %494 : vector<4x32xf32>
    %496 = vector.extract_strided_slice %487 {offsets = [0, 32], sizes = [4, 32], strides = [1, 1]} : vector<4x96xf32> to vector<4x32xf32>
    %497 = vector.extract_strided_slice %485 {offsets = [0, 32], sizes = [4, 32], strides = [1, 1]} : vector<4x96xf32> to vector<4x32xf32>
    %498 = arith.addf %496, %497 : vector<4x32xf32>
    %499 = arith.negf %498 : vector<4x32xf32>
    %500 = math.exp %499 : vector<4x32xf32>
    %cst_145 = arith.constant 1.000000e+00 : f32
    %501 = vector.broadcast %cst_145 : f32 to vector<4x32xf32>
    %502 = arith.addf %501, %500 : vector<4x32xf32>
    %503 = arith.divf %501, %502 : vector<4x32xf32>
    %504 = vector.extract_strided_slice %487 {offsets = [0, 64], sizes = [4, 32], strides = [1, 1]} : vector<4x96xf32> to vector<4x32xf32>
    %505 = vector.extract_strided_slice %485 {offsets = [0, 64], sizes = [4, 32], strides = [1, 1]} : vector<4x96xf32> to vector<4x32xf32>
    %506 = arith.addf %505, %327 : vector<4x32xf32>
    %507 = arith.mulf %495, %506 : vector<4x32xf32>
    %508 = arith.addf %504, %507 : vector<4x32xf32>
    %509 = math.tanh %508 : vector<4x32xf32>
    %cst_146 = arith.constant 1.000000e+00 : f32
    %510 = vector.broadcast %cst_146 : f32 to vector<4x32xf32>
    %511 = arith.subf %510, %503 : vector<4x32xf32>
    %512 = arith.mulf %511, %509 : vector<4x32xf32>
    %513 = arith.mulf %503, %483 : vector<4x32xf32>
    %514 = arith.addf %512, %513 : vector<4x32xf32>
    %515 = arith.truncf %514 : vector<4x32xf32> to vector<4x32xbf16>
    %cst_147 = arith.constant dense<0.000000e+00> : vector<4x96xf32>
    %516 = tpu.matmul %515, %324, %cst_147 {dimension_numbers = #tpu.dot_dimension_numbers<[1], [0], [0], [1], [0, 0, 1, 1], [], []>} : vector<4x32xbf16>, vector<32x96xbf16>, vector<4x96xf32> -> vector<4x96xf32>
    %c6 = arith.constant 6 : index
    %c0_148 = arith.constant 0 : index
    %c0_149 = arith.constant 0 : index
    %517 = vector.load %arg23[%c6, %c0_148, %c0_149] : memref<8x4x96xf32, #tpu.memory_space<vmem>>, vector<1x4x96xf32>
    %518 = vector.shape_cast %517 : vector<1x4x96xf32> to vector<4x96xf32>
    %519 = vector.extract_strided_slice %518 {offsets = [0, 0], sizes = [4, 32], strides = [1, 1]} : vector<4x96xf32> to vector<4x32xf32>
    %520 = vector.extract_strided_slice %516 {offsets = [0, 0], sizes = [4, 32], strides = [1, 1]} : vector<4x96xf32> to vector<4x32xf32>
    %521 = arith.addf %519, %520 : vector<4x32xf32>
    %522 = arith.negf %521 : vector<4x32xf32>
    %523 = math.exp %522 : vector<4x32xf32>
    %cst_150 = arith.constant 1.000000e+00 : f32
    %524 = vector.broadcast %cst_150 : f32 to vector<4x32xf32>
    %525 = arith.addf %524, %523 : vector<4x32xf32>
    %526 = arith.divf %524, %525 : vector<4x32xf32>
    %527 = vector.extract_strided_slice %518 {offsets = [0, 32], sizes = [4, 32], strides = [1, 1]} : vector<4x96xf32> to vector<4x32xf32>
    %528 = vector.extract_strided_slice %516 {offsets = [0, 32], sizes = [4, 32], strides = [1, 1]} : vector<4x96xf32> to vector<4x32xf32>
    %529 = arith.addf %527, %528 : vector<4x32xf32>
    %530 = arith.negf %529 : vector<4x32xf32>
    %531 = math.exp %530 : vector<4x32xf32>
    %cst_151 = arith.constant 1.000000e+00 : f32
    %532 = vector.broadcast %cst_151 : f32 to vector<4x32xf32>
    %533 = arith.addf %532, %531 : vector<4x32xf32>
    %534 = arith.divf %532, %533 : vector<4x32xf32>
    %535 = vector.extract_strided_slice %518 {offsets = [0, 64], sizes = [4, 32], strides = [1, 1]} : vector<4x96xf32> to vector<4x32xf32>
    %536 = vector.extract_strided_slice %516 {offsets = [0, 64], sizes = [4, 32], strides = [1, 1]} : vector<4x96xf32> to vector<4x32xf32>
    %537 = arith.addf %536, %327 : vector<4x32xf32>
    %538 = arith.mulf %526, %537 : vector<4x32xf32>
    %539 = arith.addf %535, %538 : vector<4x32xf32>
    %540 = math.tanh %539 : vector<4x32xf32>
    %cst_152 = arith.constant 1.000000e+00 : f32
    %541 = vector.broadcast %cst_152 : f32 to vector<4x32xf32>
    %542 = arith.subf %541, %534 : vector<4x32xf32>
    %543 = arith.mulf %542, %540 : vector<4x32xf32>
    %544 = arith.mulf %534, %514 : vector<4x32xf32>
    %545 = arith.addf %543, %544 : vector<4x32xf32>
    %546 = arith.truncf %545 : vector<4x32xf32> to vector<4x32xbf16>
    %cst_153 = arith.constant dense<0.000000e+00> : vector<4x96xf32>
    %547 = tpu.matmul %546, %324, %cst_153 {dimension_numbers = #tpu.dot_dimension_numbers<[1], [0], [0], [1], [0, 0, 1, 1], [], []>} : vector<4x32xbf16>, vector<32x96xbf16>, vector<4x96xf32> -> vector<4x96xf32>
    %c7 = arith.constant 7 : index
    %c0_154 = arith.constant 0 : index
    %c0_155 = arith.constant 0 : index
    %548 = vector.load %arg23[%c7, %c0_154, %c0_155] : memref<8x4x96xf32, #tpu.memory_space<vmem>>, vector<1x4x96xf32>
    %549 = vector.shape_cast %548 : vector<1x4x96xf32> to vector<4x96xf32>
    %550 = vector.extract_strided_slice %549 {offsets = [0, 0], sizes = [4, 32], strides = [1, 1]} : vector<4x96xf32> to vector<4x32xf32>
    %551 = vector.extract_strided_slice %547 {offsets = [0, 0], sizes = [4, 32], strides = [1, 1]} : vector<4x96xf32> to vector<4x32xf32>
    %552 = arith.addf %550, %551 : vector<4x32xf32>
    %553 = arith.negf %552 : vector<4x32xf32>
    %554 = math.exp %553 : vector<4x32xf32>
    %cst_156 = arith.constant 1.000000e+00 : f32
    %555 = vector.broadcast %cst_156 : f32 to vector<4x32xf32>
    %556 = arith.addf %555, %554 : vector<4x32xf32>
    %557 = arith.divf %555, %556 : vector<4x32xf32>
    %558 = vector.extract_strided_slice %549 {offsets = [0, 32], sizes = [4, 32], strides = [1, 1]} : vector<4x96xf32> to vector<4x32xf32>
    %559 = vector.extract_strided_slice %547 {offsets = [0, 32], sizes = [4, 32], strides = [1, 1]} : vector<4x96xf32> to vector<4x32xf32>
    %560 = arith.addf %558, %559 : vector<4x32xf32>
    %561 = arith.negf %560 : vector<4x32xf32>
    %562 = math.exp %561 : vector<4x32xf32>
    %cst_157 = arith.constant 1.000000e+00 : f32
    %563 = vector.broadcast %cst_157 : f32 to vector<4x32xf32>
    %564 = arith.addf %563, %562 : vector<4x32xf32>
    %565 = arith.divf %563, %564 : vector<4x32xf32>
    %566 = vector.extract_strided_slice %549 {offsets = [0, 64], sizes = [4, 32], strides = [1, 1]} : vector<4x96xf32> to vector<4x32xf32>
    %567 = vector.extract_strided_slice %547 {offsets = [0, 64], sizes = [4, 32], strides = [1, 1]} : vector<4x96xf32> to vector<4x32xf32>
    %568 = arith.addf %567, %327 : vector<4x32xf32>
    %569 = arith.mulf %557, %568 : vector<4x32xf32>
    %570 = arith.addf %566, %569 : vector<4x32xf32>
    %571 = math.tanh %570 : vector<4x32xf32>
    %cst_158 = arith.constant 1.000000e+00 : f32
    %572 = vector.broadcast %cst_158 : f32 to vector<4x32xf32>
    %573 = arith.subf %572, %565 : vector<4x32xf32>
    %574 = arith.mulf %573, %571 : vector<4x32xf32>
    %575 = arith.mulf %565, %545 : vector<4x32xf32>
    %576 = arith.addf %574, %575 : vector<4x32xf32>
    %c0_159 = arith.constant 0 : index
    %c0_160 = arith.constant 0 : index
    %c0_161 = arith.constant 0 : index
    %577 = vector.load %arg22[%c0_159, %c0_160, %c0_161] : memref<1x4x32xf32, #tpu.memory_space<vmem>>, vector<1x4x32xf32>
    %578 = vector.shape_cast %577 : vector<1x4x32xf32> to vector<4x32xf32>
    %579 = vector.shape_cast %576 : vector<4x32xf32> to vector<1x4x32xf32>
    tpu.vector_store %arg22[%c0_159, %c0_160, %c0_161], %579 {strides = array<i32>} : memref<1x4x32xf32, #tpu.memory_space<vmem>>, vector<1x4x32xf32>,
    return
  }
  func.func @transform_0(%arg0: i32, %arg1: memref<4xi32, #tpu.memory_space<smem>>) -> (i32, i32, i32) {
    %c0_i32 = arith.constant 0 : i32
    %c0_i32_0 = arith.constant 0 : i32
    %c0_i32_1 = arith.constant 0 : i32
    return %arg0, %c0_i32, %c0_i32_0 : i32, i32, i32
  }
  func.func @transform_1(%arg0: i32, %arg1: memref<4xi32, #tpu.memory_space<smem>>) -> (i32, i32, i32) {
    %c0_i32 = arith.constant 0 : i32
    %c0_i32_0 = arith.constant 0 : i32
    %c0_i32_1 = arith.constant 0 : i32
    return %arg0, %c0_i32, %c0_i32_0 : i32, i32, i32
  }
  func.func @transform_2(%arg0: i32, %arg1: memref<4xi32, #tpu.memory_space<smem>>) -> (i32, i32) {
    %c0_i32 = arith.constant 0 : i32
    %c0_i32_0 = arith.constant 0 : i32
    %c0_i32_1 = arith.constant 0 : i32
    return %c0_i32, %c0_i32_0 : i32, i32
  }
  func.func @transform_3(%arg0: i32, %arg1: memref<4xi32, #tpu.memory_space<smem>>) -> (i32, i32) {
    %c0_i32 = arith.constant 0 : i32
    %c0_i32_0 = arith.constant 0 : i32
    %c0_i32_1 = arith.constant 0 : i32
    return %c0_i32, %c0_i32_0 : i32, i32
  }
  func.func @transform_4(%arg0: i32, %arg1: memref<4xi32, #tpu.memory_space<smem>>) -> (i32, i32) {
    %c0_i32 = arith.constant 0 : i32
    %c0_i32_0 = arith.constant 0 : i32
    %c0_i32_1 = arith.constant 0 : i32
    return %c0_i32, %c0_i32_0 : i32, i32
  }
  func.func @transform_5(%arg0: i32, %arg1: memref<4xi32, #tpu.memory_space<smem>>) -> (i32, i32) {
    %c0_i32 = arith.constant 0 : i32
    %c0_i32_0 = arith.constant 0 : i32
    %c0_i32_1 = arith.constant 0 : i32
    return %c0_i32, %c0_i32_0 : i32, i32
  }
  func.func @transform_6(%arg0: i32, %arg1: memref<4xi32, #tpu.memory_space<smem>>) -> (i32, i32) {
    %c0_i32 = arith.constant 0 : i32
    %c0_i32_0 = arith.constant 0 : i32
    %c0_i32_1 = arith.constant 0 : i32
    return %c0_i32, %c0_i32_0 : i32, i32
  }
  func.func @transform_7(%arg0: i32, %arg1: memref<4xi32, #tpu.memory_space<smem>>) -> (i32, i32) {
    %c0_i32 = arith.constant 0 : i32
    %c0_i32_0 = arith.constant 0 : i32
    %c0_i32_1 = arith.constant 0 : i32
    return %c0_i32, %c0_i32_0 : i32, i32
  }
  func.func @transform_8(%arg0: i32, %arg1: memref<4xi32, #tpu.memory_space<smem>>) -> (i32, i32) {
    %c0_i32 = arith.constant 0 : i32
    %c0_i32_0 = arith.constant 0 : i32
    %c0_i32_1 = arith.constant 0 : i32
    return %c0_i32, %c0_i32_0 : i32, i32
  }
  func.func @transform_9(%arg0: i32, %arg1: memref<4xi32, #tpu.memory_space<smem>>) -> (i32, i32) {
    %c0_i32 = arith.constant 0 : i32
    %c0_i32_0 = arith.constant 0 : i32
    %c0_i32_1 = arith.constant 0 : i32
    return %c0_i32, %c0_i32_0 : i32, i32
  }
  func.func @transform_10(%arg0: i32, %arg1: memref<4xi32, #tpu.memory_space<smem>>) -> (i32, i32) {
    %c0_i32 = arith.constant 0 : i32
    %c0_i32_0 = arith.constant 0 : i32
    %c0_i32_1 = arith.constant 0 : i32
    return %c0_i32, %c0_i32_0 : i32, i32
  }
  func.func @transform_11(%arg0: i32, %arg1: memref<4xi32, #tpu.memory_space<smem>>) -> (i32, i32) {
    %c0_i32 = arith.constant 0 : i32
    %c0_i32_0 = arith.constant 0 : i32
    %c0_i32_1 = arith.constant 0 : i32
    return %c0_i32, %c0_i32_0 : i32, i32
  }
  func.func @transform_12(%arg0: i32, %arg1: memref<4xi32, #tpu.memory_space<smem>>) -> (i32, i32) {
    %c0_i32 = arith.constant 0 : i32
    %c0_i32_0 = arith.constant 0 : i32
    %c0_i32_1 = arith.constant 0 : i32
    return %c0_i32, %c0_i32_0 : i32, i32
  }
  func.func @transform_13(%arg0: i32, %arg1: memref<4xi32, #tpu.memory_space<smem>>) -> (i32, i32) {
    %c0_i32 = arith.constant 0 : i32
    %c0_i32_0 = arith.constant 0 : i32
    %c0_i32_1 = arith.constant 0 : i32
    return %c0_i32, %c0_i32_0 : i32, i32
  }
  func.func @transform_14(%arg0: i32, %arg1: memref<4xi32, #tpu.memory_space<smem>>) -> (i32, i32) {
    %c0_i32 = arith.constant 0 : i32
    %c0_i32_0 = arith.constant 0 : i32
    %c0_i32_1 = arith.constant 0 : i32
    return %c0_i32, %c0_i32_0 : i32, i32
  }
  func.func @transform_15(%arg0: i32, %arg1: memref<4xi32, #tpu.memory_space<smem>>) -> (i32, i32) {
    %c0_i32 = arith.constant 0 : i32
    %c0_i32_0 = arith.constant 0 : i32
    %c0_i32_1 = arith.constant 0 : i32
    return %c0_i32, %c0_i32_0 : i32, i32
  }
  func.func @transform_16(%arg0: i32, %arg1: memref<4xi32, #tpu.memory_space<smem>>) -> (i32, i32) {
    %c0_i32 = arith.constant 0 : i32
    %c0_i32_0 = arith.constant 0 : i32
    %c0_i32_1 = arith.constant 0 : i32
    return %c0_i32, %c0_i32_0 : i32, i32
  }
  func.func @transform_17(%arg0: i32, %arg1: memref<4xi32, #tpu.memory_space<smem>>) -> (i32, i32) {
    %c0_i32 = arith.constant 0 : i32
    %c0_i32_0 = arith.constant 0 : i32
    %c0_i32_1 = arith.constant 0 : i32
    return %c0_i32, %c0_i32_0 : i32, i32
  }
  func.func @transform_18(%arg0: i32, %arg1: memref<4xi32, #tpu.memory_space<smem>>) -> (i32, i32) {
    %c0_i32 = arith.constant 0 : i32
    %c0_i32_0 = arith.constant 0 : i32
    %c0_i32_1 = arith.constant 0 : i32
    return %c0_i32, %c0_i32_0 : i32, i32
  }
  func.func @transform_19(%arg0: i32, %arg1: memref<4xi32, #tpu.memory_space<smem>>) -> (i32, i32) {
    %c0_i32 = arith.constant 0 : i32
    %c0_i32_0 = arith.constant 0 : i32
    %c0_i32_1 = arith.constant 0 : i32
    return %c0_i32, %c0_i32_0 : i32, i32
  }
  func.func @transform_20(%arg0: i32, %arg1: memref<4xi32, #tpu.memory_space<smem>>) -> (i32, i32, i32) {
    %c0_i32 = arith.constant 0 : i32
    %c0_i32_0 = arith.constant 0 : i32
    %c0_i32_1 = arith.constant 0 : i32
    return %arg0, %c0_i32, %c0_i32_0 : i32, i32, i32
  }
}

</mosaic_0001>

<bundles_post_ra>
// kernel: tpu_custom_call.1
= control target key start
LH: loop header
LB: loop body
LE: loop exit
PB: predicated region body
PF: predicated region fallthrough
CT: control target
= control target key end

     0   :  { %s5234_s0 = inlined_call_operand.hbm [shape: s32[4], index: 0, kind: input, shape index: {}]   ;;  %s5235_s1 = inlined_call_operand.hbm [shape: f32[1,32,32], index: 1, kind: input, shape index: {}]   ;;  %s5236_s2 = inlined_call_operand.hbm [shape: f32[1,24,32], index: 2, kind: input, shape index: {}]   ;;  %s5237_s3 = inlined_call_operand.hbm [shape: bf16[32,32], index: 3, kind: input, shape index: {}]   ;;  %s5238_s4 = inlined_call_operand.hbm [shape: f32[1,32], index: 4, kind: input, shape index: {}]   ;;  %s5239_s5 = inlined_call_operand.hbm [shape: bf16[32,64], index: 5, kind: input, shape index: {}]   ;;  %s5240_s6 = inlined_call_operand.hbm [shape: f32[1,64], index: 6, kind: input, shape index: {}]   ;;  %s5241_s7 = inlined_call_operand.hbm [shape: bf16[32,32], index: 7, kind: input, shape index: {}]   ;;  %s5242_s8 = inlined_call_operand.hbm [shape: f32[1,32], index: 8, kind: input, shape index: {}]   ;;  %s5243_s9 = inlined_call_operand.hbm [shape: f32[1,32], index: 9, kind: input, shape index: {}]   ;;  %s5244_s10 = inlined_call_operand.hbm [shape: f32[1,32], index: 10, kind: input, shape index: {}]   ;;  %s5245_s11 = inlined_call_operand.vmem [shape: bf16[32,32], index: 11, kind: input, shape index: {}]   ;;  %s5246_s12 = inlined_call_operand.hbm [shape: f32[1,32], index: 12, kind: input, shape index: {}]   ;;  %s5247_s13 = inlined_call_operand.hbm [shape: bf16[32,32], index: 13, kind: input, shape index: {}]   ;;  %s5248_s14 = inlined_call_operand.hbm [shape: f32[1,32], index: 14, kind: input, shape index: {}]   ;;  %s5249_s15 = inlined_call_operand.hbm [shape: f32[1,32], index: 15, kind: input, shape index: {}]   ;;  %s5250_s16 = inlined_call_operand.hbm [shape: f32[1,32], index: 16, kind: input, shape index: {}]   ;;  %s5251_s17 = inlined_call_operand.hbm [shape: bf16[32,96], index: 17, kind: input, shape index: {}]   ;;  %s5252_s18 = inlined_call_operand.vmem [shape: bf16[32,96], index: 18, kind: input, shape index: {}]   ;;  %s5253_s19 = inlined_call_operand.vmem [shape: f32[1,96], index: 19, kind: input, shape index: {}]   ;;  %s5254_s20 = inlined_call_operand.vmem [shape: f32[1,32], index: 20, kind: input, shape index: {}]   ;;  %s5255_s21 = inlined_call_operand.hbm [shape: f32[1,4,32], index: 21, kind: output, shape index: {}]  }
   0x1   :  { %5257 = sst [smem:[#allocation43_spill]] %s5234_s0 }
   0x2   :  { %5258 = sst [smem:[#allocation44_spill]] %s5235_s1 }
   0x3   :  { %5259 = sst [smem:[#allocation45_spill]] %s5236_s2  ;;  %s4501_s2 = smov [#allocation4]  }
   0x4   :  { %5260 = sst [smem:[#allocation46_spill]] %s5237_s3 }
   0x5   :  { %5261 = sst [smem:[#allocation47_spill]] %s5238_s4 }
   0x6   :  { %5262 = sst [smem:[#allocation48_spill]] %s5239_s5 }
   0x7   :  { %5263 = sst [smem:[#allocation49_spill]] %s5245_s11 }
   0x8   :  { %s5264_s11 = sld [smem:[#allocation43_spill]] }
   0xe   :  { %27 = dma.hbm_to_smem %s5264_s11, 16, %s4501_s2, [#allocation3] }
   0xf   :  { %4479 = dma.done.wait [#allocation3], 16 }
  0x10   :  { %4480 = vsyncadd [#allocation3], 4294967280 }
  0x11   :  { %29 = sfence }
  0x12   :  { %30 = vsyncpa [#allocation6], 0 }
  0x13   :  { %31 = vsyncpa [#allocation9], 0 }
  0x14   :  { %32 = vsyncpa [#allocation12], 0 }
  0x15   :  { %33 = vsyncpa [#allocation15], 0 }
  0x16   :  { %34 = vsyncpa [#allocation18], 0 }
  0x17   :  { %35 = vsyncpa [#allocation21], 0 }
  0x18   :  { %36 = vsyncpa [#allocation24], 0 }
  0x19   :  { %37 = vsyncpa [#allocation27], 0 }
  0x1a   :  { %38 = vsyncpa [#allocation30], 0 }
  0x1b   :  { %39 = vsyncpa [#allocation7], 0  ;;  %s4502_s27 = smov [#allocation8]   ;;  %s4503_s28 = smov [#allocation11]  }
  0x1c   :  { %s57_s3 = sshll.u32 %s4502_s27, 4  ;;  %s82_s29 = sshll.u32 %s4503_s28, 4  ;;  %s58_s3 = int_to_ptr.vmem [resolvable:$true] %s57_s3  ;;  %s83_s29 = int_to_ptr.vmem [resolvable:$true] %s82_s29 }
  0x1d   :  { %s4147_s11 = scalar_lea.vmem %s58_s3, 384  ;;  %p4152_p1 = scmp.lt.s32.totalorder %s58_s3, %s58_s3 }
  0x1e   :  { %p4148_p0 = scmp.ne.s32.totalorder %s58_s3, %s4147_s11  ;;  %p4153_p2 = scmp.lt.s32.totalorder %s4147_s11, %s4147_s11 }
  0x20   :  { %p4154_p3 = por %p4153_p2, %p4152_p1 }
  0x22   :  { %p4155_p4 = pnand %p4154_p3, %p4148_p0 }
  0x24   :  { %4158 = shalt.err (!%p4155_p4)
}
  0x25   :  { %s4504_s0 = smov 128   ;;  %s4505_s4 = smov 8  }
  0x26   :  { %s5265_s22 = sld [smem:[#allocation45_spill]]  ;;  %s4167_s23 = scalar_lea.vmem %s83_s29, 16 }
  0x27   :  { %p4168_p5 = scmp.ne.s32.totalorder %s83_s29, %s4167_s23  ;;  %s4171_s1 = scalar_lea.vmem %s83_s29, 32 }
  0x28   :  { %p4172_p6 = scmp.lt.s32.totalorder %s83_s29, %s83_s29  ;;  %p4173_p7 = scmp.lt.s32.totalorder %s4171_s1, %s4167_s23 }
  0x2a   :  { %p4174_p8 = por %p4173_p7, %p4172_p6 }
  0x2c   :  { %63 = dma.hbm_to_vmem [thread:$0]  %s5265_s22, 384, %s58_s3, [#allocation9], %s4504_s0, %s4504_s0, %s4505_s4  }
  0x2d   :  { %p4175_p9 = pnand %p4174_p8, %p4168_p5 }
  0x2f   :  { %4178 = shalt.err (!%p4175_p9)
}
  0x30   :  { %s5266_s25 = sld [smem:[#allocation47_spill]]  ;;  %s4506_s26 = smov [#allocation14]  }
  0x31   :  { %s104_s27 = sshll.u32 %s4506_s26, 4  ;;  %s4507_s28 = smov [#allocation17]   ;;  %s105_s27 = int_to_ptr.vmem [resolvable:$true] %s104_s27 }
  0x32   :  { %s126_s11 = sshll.u32 %s4507_s28, 4  ;;  %s4187_s30 = scalar_lea.vmem %s105_s27, 16  ;;  %s127_s11 = int_to_ptr.vmem [resolvable:$true] %s126_s11 }
  0x33   :  { %p4188_p10 = scmp.ne.s32.totalorder %s105_s27, %s4187_s30  ;;  %s4191_s3 = scalar_lea.vmem %s105_s27, 32 }
  0x34   :  { %p4192_p11 = scmp.lt.s32.totalorder %s105_s27, %s105_s27  ;;  %p4193_p12 = scmp.lt.s32.totalorder %s4191_s3, %s4187_s30 }
  0x36   :  { %85 = dma.hbm_to_vmem [thread:$0]  %s5266_s25, 16, %s83_s29, [#allocation12]  }
  0x37   :  { %p4194_p13 = por %p4193_p12, %p4192_p11 }
  0x39   :  { %p4195_p0 = pnand %p4194_p13, %p4188_p10 }
  0x3b   :  { %4198 = shalt.err (!%p4195_p0)
}
  0x3c   :  { %107 = dma.hbm_to_vmem [thread:$0]  %s5240_s6, 16, %s105_s27, [#allocation15]  }
  0x3d   :  { %s4207_s23 = scalar_lea.vmem %s127_s11, 16  ;;  %s4211_s29 = scalar_lea.vmem %s127_s11, 32 }
  0x3e   :  { %p4208_p1 = scmp.ne.s32.totalorder %s127_s11, %s4207_s23  ;;  %p4212_p2 = scmp.lt.s32.totalorder %s127_s11, %s127_s11 }
  0x3f   :  { %p4213_p3 = scmp.lt.s32.totalorder %s4211_s29, %s4207_s23 }
  0x41   :  { %p4214_p4 = por %p4213_p3, %p4212_p2 }
  0x43   :  { %p4215_p5 = pnand %p4214_p4, %p4208_p1 }
  0x45   :  { %4218 = shalt.err (!%p4215_p5)
}
  0x46   :  { %129 = dma.hbm_to_vmem [thread:$0]  %s5242_s8, 16, %s127_s11, [#allocation18]  }
  0x47   :  { %s4508_s2 = smov [#allocation20]  }
  0x48   :  { %s146_s25 = sshll.u32 %s4508_s2, 4  ;;  %s147_s25 = int_to_ptr.vmem [resolvable:$true] %s146_s25 }
  0x49   :  { %s4227_s26 = scalar_lea.vmem %s147_s25, 16  ;;  %s4231_s28 = scalar_lea.vmem %s147_s25, 32 }
  0x4a   :  { %p4228_p6 = scmp.ne.s32.totalorder %s147_s25, %s4227_s26  ;;  %p4232_p7 = scmp.lt.s32.totalorder %s147_s25, %s147_s25 }
  0x4b   :  { %p4233_p8 = scmp.lt.s32.totalorder %s4231_s28, %s4227_s26 }
  0x4d   :  { %p4234_p9 = por %p4233_p8, %p4232_p7 }
  0x4f   :  { %p4235_p10 = pnand %p4234_p9, %p4228_p6 }
  0x51   :  { %4238 = shalt.err (!%p4235_p10)
}
  0x52   :  { %149 = dma.hbm_to_vmem [thread:$0]  %s5244_s10, 16, %s147_s25, [#allocation21]  }
  0x53   :  { %s4509_s30 = smov [#allocation23]   ;;  %s4510_s5 = smov [#allocation26]  }
  0x54   :  { %s167_s3 = sshll.u32 %s4509_s30, 4  ;;  %s190_s8 = sshll.u32 %s4510_s5, 4  ;;  %s168_s3 = int_to_ptr.vmem [resolvable:$true] %s167_s3  ;;  %s191_s8 = int_to_ptr.vmem [resolvable:$true] %s190_s8 }
  0x55   :  { %s4247_s11 = scalar_lea.vmem %s168_s3, 256  ;;  %p4252_p12 = scmp.lt.s32.totalorder %s168_s3, %s168_s3 }
  0x56   :  { %p4248_p11 = scmp.ne.s32.totalorder %s168_s3, %s4247_s11  ;;  %p4253_p13 = scmp.lt.s32.totalorder %s4247_s11, %s4247_s11 }
  0x58   :  { %p4254_p0 = por %p4253_p13, %p4252_p12 }
  0x5a   :  { %p4255_p1 = pnand %p4254_p0, %p4248_p11 }
  0x5c   :  { %4258 = shalt.err (!%p4255_p1)
}
  0x5d   :  { %s4511_s22 = smov 64   ;;  %s4512_s23 = smov 4  }
  0x5e   :  { %173 = dma.hbm_to_vmem [thread:$0]  %s5247_s13, 256, %s168_s3, [#allocation24], %s4511_s22, %s4511_s22, %s4512_s23  }
  0x5f   :  { %s4267_s10 = scalar_lea.vmem %s191_s8, 16  ;;  %s4271_s24 = scalar_lea.vmem %s191_s8, 32 }
  0x60   :  { %p4268_p2 = scmp.ne.s32.totalorder %s191_s8, %s4267_s10  ;;  %p4272_p3 = scmp.lt.s32.totalorder %s191_s8, %s191_s8 }
  0x61   :  { %p4273_p4 = scmp.lt.s32.totalorder %s4271_s24, %s4267_s10 }
  0x63   :  { %p4274_p5 = por %p4273_p4, %p4272_p3 }
  0x65   :  { %p4275_p6 = pnand %p4274_p5, %p4268_p2 }
  0x67   :  { %4278 = shalt.err (!%p4275_p6)
}
  0x68   :  { %193 = dma.hbm_to_vmem [thread:$0]  %s5249_s15, 16, %s191_s8, [#allocation27]  }
  0x69   :  { %s4513_s26 = smov [#allocation5]   ;;  %s4514_s6 = smov [#allocation10]  }
  0x6a   :  { %s45_s28 = sshll.u32 %s4513_s26, 4  ;;  %s69_s27 = sshll.u32 %s4514_s6, 4  ;;  %s46_s28 = int_to_ptr.vmem [resolvable:$true] %s45_s28  ;;  %s70_s27 = int_to_ptr.vmem [resolvable:$true] %s69_s27 }
  0x6b   :  { %s4287_s30 = scalar_lea.vmem %s46_s28, 512  ;;  %p4292_p8 = scmp.lt.s32.totalorder %s46_s28, %s46_s28 }
  0x6c   :  { %p4288_p7 = scmp.ne.s32.totalorder %s46_s28, %s4287_s30  ;;  %p4293_p9 = scmp.lt.s32.totalorder %s4287_s30, %s4287_s30 }
  0x6e   :  { %p4294_p10 = por %p4293_p9, %p4292_p8 }
  0x70   :  { %p4295_p11 = pnand %p4294_p10, %p4288_p7 }
  0x72   :  { %4298 = shalt.err (!%p4295_p11)
}
  0x73   :  { %s5267_s5 = sld [smem:[#allocation44_spill]]  ;;  %s4307_s15 = scalar_lea.vmem %s70_s27, 256 }
  0x74   :  { %p4308_p12 = scmp.ne.s32.totalorder %s70_s27, %s4307_s15  ;;  %p4312_p13 = scmp.lt.s32.totalorder %s70_s27, %s70_s27 }
  0x75   :  { %p4313_p0 = scmp.lt.s32.totalorder %s4307_s15, %s4307_s15 }
  0x77   :  { %p4314_p1 = por %p4313_p0, %p4312_p13 }
  0x79   :  { %51 = dma.hbm_to_vmem [thread:$0]  %s5267_s5, 512, %s46_s28, [#allocation6], %s4504_s0, %s4504_s0, %s4505_s4  }
  0x7a   :  { %p4315_p2 = pnand %p4314_p1, %p4308_p12 }
  0x7c   :  { %4318 = shalt.err (!%p4315_p2)
}
  0x7d   :  { %s5268_s29 = sld [smem:[#allocation46_spill]]  ;;  %s4515_s1 = smov [#allocation13]  }
  0x7e   :  { %s91_s10 = sshll.u32 %s4515_s1, 4  ;;  %s4516_s24 = smov [#allocation16]   ;;  %s92_s10 = int_to_ptr.vmem [resolvable:$true] %s91_s10 }
  0x7f   :  { %s113_s0 = sshll.u32 %s4516_s24, 4  ;;  %s4327_s4 = scalar_lea.vmem %s92_s10, 256  ;;  %s114_s0 = int_to_ptr.vmem [resolvable:$true] %s113_s0 }
  0x80   :  { %p4328_p3 = scmp.ne.s32.totalorder %s92_s10, %s4327_s4  ;;  %p4332_p4 = scmp.lt.s32.totalorder %s92_s10, %s92_s10 }
  0x81   :  { %p4333_p5 = scmp.lt.s32.totalorder %s4327_s4, %s4327_s4 }
  0x83   :  { %75 = dma.hbm_to_vmem [thread:$0]  %s5268_s29, 256, %s70_s27, [#allocation9], %s4511_s22, %s4511_s22, %s4512_s23  }
  0x84   :  { %p4334_p6 = por %p4333_p5, %p4332_p4 }
  0x86   :  { %p4335_p7 = pnand %p4334_p6, %p4328_p3 }
  0x88   :  { %4338 = shalt.err (!%p4335_p7)
}
  0x89   :  { %s5269_s26 = sld [smem:[#allocation48_spill]]  ;;  %s4347_s28 = scalar_lea.vmem %s114_s0, 256 }
  0x8a   :  { %p4348_p8 = scmp.ne.s32.totalorder %s114_s0, %s4347_s28  ;;  %p4352_p9 = scmp.lt.s32.totalorder %s114_s0, %s114_s0 }
  0x8b   :  { %p4353_p10 = scmp.lt.s32.totalorder %s4347_s28, %s4347_s28 }
  0x8d   :  { %p4354_p11 = por %p4353_p10, %p4352_p9 }
  0x8f   :  { %97 = dma.hbm_to_vmem [thread:$0]  %s5269_s26, 256, %s92_s10, [#allocation12], %s4511_s22, %s4511_s22, %s4512_s23  }
  0x90   :  { %p4355_p12 = pnand %p4354_p11, %p4348_p8 }
  0x92   :  { %4358 = shalt.err (!%p4355_p12)
}
  0x93   :  { %119 = dma.hbm_to_vmem [thread:$0]  %s5241_s7, 256, %s114_s0, [#allocation15], %s4511_s22, %s4511_s22, %s4512_s23  }
  0x94   :  { %s4517_s30 = smov [#allocation19]   ;;  %s4518_s3 = smov [#allocation22]  }
  0x95   :  { %s136_s13 = sshll.u32 %s4517_s30, 4  ;;  %s158_s5 = sshll.u32 %s4518_s3, 4  ;;  %s137_s13 = int_to_ptr.vmem [resolvable:$true] %s136_s13  ;;  %s159_s5 = int_to_ptr.vmem [resolvable:$true] %s158_s5 }
  0x96   :  { %s4367_s15 = scalar_lea.vmem %s137_s13, 16  ;;  %s4371_s8 = scalar_lea.vmem %s137_s13, 32 }
  0x97   :  { %p4368_p13 = scmp.ne.s32.totalorder %s137_s13, %s4367_s15  ;;  %p4372_p0 = scmp.lt.s32.totalorder %s137_s13, %s137_s13 }
  0x98   :  { %p4373_p1 = scmp.lt.s32.totalorder %s4371_s8, %s4367_s15 }
  0x9a   :  { %p4374_p2 = por %p4373_p1, %p4372_p0 }
  0x9c   :  { %p4375_p3 = pnand %p4374_p2, %p4368_p13 }
  0x9e   :  { %4378 = shalt.err (!%p4375_p3)
}
  0x9f   :  { %139 = dma.hbm_to_vmem [thread:$0]  %s5243_s9, 16, %s137_s13, [#allocation18]  }
  0xa0   :  { %s4387_s1 = scalar_lea.vmem %s159_s5, 16  ;;  %s4391_s7 = scalar_lea.vmem %s159_s5, 32 }
  0xa1   :  { %p4388_p4 = scmp.ne.s32.totalorder %s159_s5, %s4387_s1  ;;  %p4392_p5 = scmp.lt.s32.totalorder %s159_s5, %s159_s5 }
  0xa2   :  { %p4393_p6 = scmp.lt.s32.totalorder %s4391_s7, %s4387_s1 }
  0xa4   :  { %p4394_p7 = por %p4393_p6, %p4392_p5 }
  0xa6   :  { %p4395_p8 = pnand %p4394_p7, %p4388_p4 }
  0xa8   :  { %4398 = shalt.err (!%p4395_p8)
}
  0xa9   :  { %161 = dma.hbm_to_vmem [thread:$0]  %s5246_s12, 16, %s159_s5, [#allocation21]  }
  0xaa   :  { %s4519_s0 = smov [#allocation25]   ;;  %s4520_s2 = smov [#allocation28]  }
  0xab   :  { %s180_s4 = sshll.u32 %s4519_s0, 4  ;;  %s200_s25 = sshll.u32 %s4520_s2, 4  ;;  %s181_s4 = int_to_ptr.vmem [resolvable:$true] %s180_s4  ;;  %s201_s25 = int_to_ptr.vmem [resolvable:$true] %s200_s25 }
  0xac   :  { %s4407_s26 = scalar_lea.vmem %s181_s4, 16  ;;  %s4411_s9 = scalar_lea.vmem %s181_s4, 32 }
  0xad   :  { %p4408_p9 = scmp.ne.s32.totalorder %s181_s4, %s4407_s26  ;;  %p4412_p10 = scmp.lt.s32.totalorder %s181_s4, %s181_s4 }
  0xae   :  { %p4413_p11 = scmp.lt.s32.totalorder %s4411_s9, %s4407_s26 }
  0xb0   :  { %p4414_p12 = por %p4413_p11, %p4412_p10 }
  0xb2   :  { %p4415_p13 = pnand %p4414_p12, %p4408_p9 }
  0xb4   :  { %4418 = shalt.err (!%p4415_p13)
}
  0xb5   :  { %183 = dma.hbm_to_vmem [thread:$0]  %s5248_s14, 16, %s181_s4, [#allocation24]  }
  0xb6   :  { %s4427_s27 = scalar_lea.vmem %s201_s25, 16  ;;  %s4431_s12 = scalar_lea.vmem %s201_s25, 32 }
  0xb7   :  { %p4428_p0 = scmp.ne.s32.totalorder %s201_s25, %s4427_s27  ;;  %p4432_p1 = scmp.lt.s32.totalorder %s201_s25, %s201_s25 }
  0xb8   :  { %p4433_p2 = scmp.lt.s32.totalorder %s4431_s12, %s4427_s27 }
  0xba   :  { %p4434_p3 = por %p4433_p2, %p4432_p1 }
  0xbc   :  { %p4435_p4 = pnand %p4434_p3, %p4428_p0 }
  0xbe   :  { %4438 = shalt.err (!%p4435_p4)
}
  0xbf   :  { %203 = dma.hbm_to_vmem [thread:$0]  %s5250_s16, 16, %s201_s25, [#allocation27]  }
  0xc0   :  { %s4521_s3 = smov [#allocation29]  }
  0xc1   :  { %s209_s5 = sshll.u32 %s4521_s3, 4  ;;  %s210_s5 = int_to_ptr.vmem [resolvable:$true] %s209_s5 }
  0xc2   :  { %s4447_s15 = scalar_lea.vmem %s210_s5, 256  ;;  %p4452_p6 = scmp.lt.s32.totalorder %s210_s5, %s210_s5 }
  0xc3   :  { %p4448_p5 = scmp.ne.s32.totalorder %s210_s5, %s4447_s15  ;;  %p4453_p7 = scmp.lt.s32.totalorder %s4447_s15, %s4447_s15 }
  0xc5   :  { %p4454_p8 = por %p4453_p7, %p4452_p6 }
  0xc7   :  { %p4455_p9 = pnand %p4454_p8, %p4448_p5 }
  0xc9   :  { %4458 = shalt.err (!%p4455_p9)
}
  0xca   :  { %215 = dma.hbm_to_vmem [thread:$0]  %s5251_s17, 256, %s210_s5, [#allocation30], %s4511_s22, %s4511_s22, %s4512_s23  }
  0xcb   :  { %4481 = dma.done.wait [#allocation6], 512  }
  0xcc   :  { %4482 = vsyncadd [#allocation6], 4294966784 }
  0xcd   :  { %4483 = dma.done.wait [#allocation9], 640  }
  0xce   :  { %4484 = vsyncadd [#allocation9], 4294966656 }
  0xcf   :  { %4485 = dma.done.wait [#allocation12], 272  }
  0xd0   :  { %4486 = vsyncadd [#allocation12], 4294967024 }
  0xd1   :  { %4487 = dma.done.wait [#allocation15], 272  }
  0xd2   :  { %4488 = vsyncadd [#allocation15], 4294967024 }
  0xd3   :  { %4489 = dma.done.wait [#allocation18], 32  }
  0xd4   :  { %4490 = vsyncadd [#allocation18], 4294967264 }
  0xd5   :  { %4491 = dma.done.wait [#allocation21], 32  }
  0xd6   :  { %4492 = vsyncadd [#allocation21], 4294967264 }
  0xd7   :  { %4493 = dma.done.wait [#allocation24], 272  }
  0xd8   :  { %4494 = vsyncadd [#allocation24], 4294967024 }
  0xd9   :  { %4495 = dma.done.wait [#allocation27], 32  }
  0xda   :  { %4496 = vsyncadd [#allocation27], 4294967264 }
  0xdb   :  { %4497 = dma.done.wait [#allocation30], 256  }
  0xdc   :  { %4498 = vsyncadd [#allocation30], 4294967040  ;;  %v4717_v0 = vld [vmem:[#allocation13 + $0x8] sm:$0xff]   ;;  %v4719_v1 = vld [vmem:[#allocation10 + $0x8] sm:$0xff]   ;;  %vm369_vm0 = vcmask 261120   ;;  %s4522_s16 = smov 96   ;;  %v296_v41 = vlaneseq }
  0xdd   :  { %3658 = vmatprep.subr.bf16.mxu1 %v4717_v0  ;;  %v4722_v2 = vld [vmem:[#allocation13] sm:$0xff]   ;;  %3650 = vmatprep.subr.bf16.mxu0 %v4719_v1  ;;  %v4726_v3 = vld [vmem:[#allocation10] sm:$0xff]   ;;  %v277_v4 = vld [vmem:[#allocation8] sm:$0xff]  ;;  %vm558_vm1 = vcmask 64512   ;;  %v4523_v38 = vmov 0   ;;  %vm628_vm7 = vcmask 195584  }
  0xde   :  { %3659 = vmatpush3.bf16.msra.mxu1 %v4717_v0  ;;  %3651 = vmatpush3.bf16.msra.mxu0 %v4719_v1  ;;  %v278_v5 = vld [vmem:[#allocation8 + $0x8] sm:$0xff]  ;;  %v279_v6 = vld [vmem:[#allocation8 + $0x10] sm:$0xff]  ;;  %v271_v8 = vld [vmem:[#allocation5] sm:$0xff]  ;;  %v302_v42 = vand.u32 127, %v296_v41  ;;  %v4524_v49 = vmov -1e+30  }
  0xdf   :  { %3660 = vmatprep.subr.bf16.mxu1 %v4722_v2  ;;  %3652 = vmatprep.subr.bf16.mxu0 %v4726_v3  ;;  %v4731_v7 = vpack.c.bf16 %v278_v5, %v277_v4  ;;  %v272_v9 = vld [vmem:[#allocation5 + $0x8] sm:$0xff]  ;;  %v273_v10 = vld [vmem:[#allocation5 + $0x10] sm:$0xff]  ;;  %v4733_v11 = vpack.c.bf16 %v279_v6, %v279_v6  ;;  %v274_v13 = vld [vmem:[#allocation5 + $0x18] sm:$0xff]  ;;  %s4525_s17 = smov 120   ;;  %vm683_vm10 = vcmask 1043456   ;;  %s4526_s23 = smov 88  }
  0xe0   :  { %v4735_v12 = vpack.c.bf16 %v272_v9, %v271_v8  ;;  %v4740_v14 = vpack.c.bf16 %v274_v13, %v273_v10  ;;  %499 = vrot.lane.b32.xlu0 %v4717_v0, %s4522_s16  ;;  %v4755_v15 = vld [vmem:[#allocation14] ss:$0 sm:$0xff]  ;;  %v4758_v21 = vld [vmem:[#allocation11] ss:$0 sm:$0xff]  ;;  %3978 = vset.pattern.permute.xlu1 %v4523_v38  ;;  %vm311_vm2 = vcmp.ge.s32.totalorder %v302_v42, 6  ;;  %vm325_vm3 = vcmp.ge.s32.totalorder %v302_v42, 12 }
  0xe1   :  { %3662 = vmatprep.mubr.msk.bf16.mxu1 %vm369_vm0, %v4731_v7  ;;  %3972 = vset.pattern.permute.xlu0 %v4523_v38  ;;  %v312_v43 = vsel %vm311_vm2, 1, %v4523_v38  ;;  %v326_v44 = vsel %vm325_vm3, 1, %v4523_v38  ;;  %vm340_vm4 = vcmp.ge.s32.totalorder %v302_v42, 18  ;;  %s4527_s11 = smov 112   ;;  %s4528_s29 = smov 80   ;;  %vm4532_vm11 = vmmov 0  }
  0xe2   :  { %3661 = vmatpush3.bf16.msra.mxu1 %v4722_v2  ;;  %3653 = vmatpush3.bf16.msra.mxu0 %v4726_v3  ;;  %v327_v45 = vadd.s32 %v326_v44, %v312_v43  ;;  %v341_v46 = vsel %vm340_vm4, 1, %v4523_v38  ;;  %s4529_s1 = smov 104   ;;  %s4530_s7 = smov 72  }
  0xe3   :  { %3654 = vmatprep.mubr.msk.bf16.mxu0 %vm369_vm0, %v4735_v12  ;;  %s5270_s0 = sld [smem:[#allocation49_spill]] }
  0xe4   :  { %497 = vrot.lane.b32.xlu0 %v4722_v2, %s4522_s16  ;;  %v342_v47 = vadd.s32 %v341_v46, %v327_v45  ;;  %s3493_s6 = sld [smem:[#allocation4 + $0x1]] }
  0xe5   :  { %3663 = vmatmul.mubr.msk.bf16.vlgmr.msra.gmra.mxu1 %vm369_vm0, %v4733_v11  ;;  %3655 = vmatmul.mubr.msk.bf16.vlgmr.msra.gmra.mxu0 %vm369_vm0, %v4740_v14  ;;  %s3495_s27 = sld [smem:[#allocation4 + $0x2]] }
  0xe6   :  { %3670 = vmatprep.mubr.msk.bf16.mxu0 %vm369_vm0, %v4731_v7  ;;  %vm3421_vm5 = vcmp.eq.s32.totalorder %v342_v47, 2  ;;  %vm3419_vm6 = vcmp.eq.s32.totalorder %v342_v47, 0  ;;  %vm3420_vm8 = vcmp.eq.s32.totalorder %v342_v47, 1  ;;  %vm3422_vm9 = vcmp.eq.s32.totalorder %v342_v47, 3  ;;  %s3497_s12 = sld [smem:[#allocation4 + $0x3]] }
  0xe7   :  { %v4782_v50 = vsel %vm3421_vm5, 0.0, %v4524_v49  ;;  %v4784_v53 = vsel %vm3419_vm6, 0.0, %v4524_v49  ;;  %v4789_v60 = vsel %vm3420_vm8, 0.0, %v4524_v49  ;;  %v4792_v4 = vsel %vm3422_vm9, 0.0, %v4524_v49 }
 0x152   :  { %v500_v39 = vpop.permute.xlu0 %499 }
 0x153   :  { %3666 = vmatprep.subr.bf16.mxu0 %v500_v39 }
 0x154   :  { %3667 = vmatpush3.bf16.msra.mxu0 %v500_v39 }
 0x156   :  { %v498_v40 = vpop.permute.xlu0 %497 }
 0x157   :  { %3668 = vmatprep.subr.bf16.mxu0 %v498_v40 }
 0x158   :  { %3669 = vmatpush3.bf16.msra.mxu0 %v498_v40 }
 0x15b   :  { %3671 = vmatmul.mubr.msk.bf16.vlgmr.msra.gmra.mxu0 %vm369_vm0, %v4733_v11 }
 0x1a5   :  { %v3664_v16 = vpop.f32.mrf.mxu1  ;;  %v3656_v18 = vpop.f32.mrf.mxu0 }
 0x1a6   :  { %v492_v17 = vadd.f32 %v3664_v16, %v4755_v15  ;;  %v419_v35 = vadd.f32 %v3656_v18, %v4758_v21 }
 0x1a7   :  { %v483_v19 = vpop.f32.mrf.mxu1  ;;  %v410_v22 = vpop.f32.mrf.mxu0 }
 0x1a8   :  { %v557_v20 = vpack.c.bf16 %v492_v17, %v492_v17  ;;  %v411_v26 = vadd.f32 %v4758_v21, %v410_v22  ;;  %v484_v28 = vadd.f32 %v4755_v15, %v483_v19 }
 0x1a9   :  { %v3665_v23 = vpop.f32.mrf.mxu1  ;;  %v3657_v25 = vpop.f32.mrf.mxu0 }
 0x1aa   :  { %v569_v24 = vsel %vm558_vm1, %v557_v20, 0  ;;  %3922 = vmatprep.subr.msk.bf16.mxu1 %vm558_vm1, %v557_v20  ;;  %v422_v36 = vadd.f32 %v3657_v25, %v4758_v21 }
 0x1ab   :  { %v486_v27 = vpop.f32.mrf.mxu1  ;;  %3675 = vmatpush3.bf16.xpose.msra.mxu1 %v569_v24  ;;  %v413_v30 = vpop.f32.mrf.mxu0 }
 0x1ac   :  { %v487_v29 = vadd.f32 %v4755_v15, %v486_v27  ;;  %v414_v31 = vadd.f32 %v4758_v21, %v413_v30  ;;  %v555_v37 = vpack.c.bf16 %v422_v36, %v419_v35 }
 0x1ae   :  { %v556_v32 = vpack.c.bf16 %v487_v29, %v484_v28  ;;  %v554_v33 = vpack.c.bf16 %v414_v31, %v411_v26 }
 0x1b0   :  { %3923 = vmatprep.subr.msk.bf16.mxu1 %vm558_vm1, %v556_v32  ;;  %3678 = vmatprep.mubr.msk.bf16.mxu1 %vm558_vm1, %v554_v33  ;;  %v566_v34 = vsel %vm558_vm1, %v556_v32, 0 }
 0x1b3   :  { %3677 = vmatpush3.bf16.xpose.msra.mxu1 %v566_v34 }
 0x1ba   :  { %3679 = vmatmul.mubr.msk.bf16.vlgmr.msra.gmra.mxu1 %vm558_vm1, %v555_v37 }
 0x1bb   :  { %3702 = vmatprep.mubr.msk.bf16.mxu1 %vm369_vm0, %v4731_v7 }
 0x21b   :  { %v3672_v10 = vpop.f32.mrf.mxu0 }
 0x21d   :  { %v540_v13 = vpop.f32.mrf.mxu0 }
 0x21f   :  { %v3673_v16 = vpop.f32.mrf.mxu0 }
 0x221   :  { %v543_v29 = vpop.f32.mrf.mxu0 }
 0x27a   :  { %v3680_v48 = vpop.f32.mrf.mxu1 }
 0x27b   :  { %v622_v51 = vmul.f32 0.35355338, %v3680_v48 }
 0x27c   :  { %v605_v52 = vpop.f32.mrf.mxu1 }
 0x27d   :  { %v620_v54 = vmul.f32 0.35355338, %v605_v52  ;;  %v626_v55 = vadd.f32 %v622_v51, %v4782_v50 }
 0x27e   :  { %v3681_v56 = vpop.f32.mrf.mxu1 }
 0x27f   :  { %v635_v57 = vsel %vm628_vm7, %v626_v55, -inf  ;;  %v624_v58 = vadd.f32 %v620_v54, %v4784_v53  ;;  %v623_v61 = vmul.f32 0.35355338, %v3681_v56 }
 0x280   :  { %636 = vmax.xlane.f32.xlu0 %v635_v57  ;;  %v608_v59 = vpop.f32.mrf.mxu1 }
 0x281   :  { %v621_v62 = vmul.f32 0.35355338, %v608_v59  ;;  %v629_v63 = vsel %vm628_vm7, %v624_v58, -inf  ;;  %v627_v8 = vadd.f32 %v623_v61, %v4792_v4 }
 0x282   :  { %630 = vmax.xlane.f32.xlu1 %v629_v63 }
 0x283   :  { %v625_v5 = vadd.f32 %v621_v62, %v4789_v60  ;;  %v638_v9 = vsel %vm628_vm7, %v627_v8, -inf }
 0x285   :  { %v632_v6 = vsel %vm628_vm7, %v625_v5, -inf }
 0x286   :  { %633 = vmax.xlane.f32.xlu1 %v632_v6 }
 0x28a   :  { %639 = vmax.xlane.f32.xlu1 %v638_v9 }
 0x296   :  { %798 = vrot.lane.b32.xlu0 %v4717_v0, %s4525_s17 }
 0x29a   :  { %744 = vrot.lane.b32.xlu0 %v4758_v21, %s4525_s17 }
 0x29b   :  { %503 = vrot.lane.b32.xlu1 %v4755_v15, %s4522_s16 }
 0x29e   :  { %853 = vrot.lane.b32.xlu0 %v4722_v2, %s4526_s23 }
 0x29f   :  { %796 = vrot.lane.b32.xlu1 %v4722_v2, %s4525_s17 }
 0x2a3   :  { %740 = vrot.lane.b32.xlu1 %v4719_v1, %s4525_s17 }
 0x309   :  { %v637_v17 = vpop.xlane.xlu0 %636 }
 0x30a   :  { %v643_v18 = vsub.f32 %v626_v55, %v637_v17 }
 0x30b   :  { %v631_v19 = vpop.xlane.xlu1 %630 }
 0x30c   :  { %v649_v20 = vmul.f32 1.442695, %v643_v18  ;;  %v641_v22 = vsub.f32 %v624_v58, %v631_v19 }
 0x30d   :  { %v799_v23 = vpop.permute.xlu0 %798 }
 0x30e   :  { %3996 = vpow2.f32 %v649_v20  ;;  %v645_v24 = vmul.f32 1.442695, %v641_v22  ;;  %3698 = vmatprep.subr.bf16.mxu1 %v799_v23 }
 0x30f   :  { %v634_v25 = vpop.xlane.xlu1 %633  ;;  %3699 = vmatpush3.bf16.msra.mxu1 %v799_v23 }
 0x310   :  { %3998 = vpow2.f32 %v645_v24  ;;  %v642_v26 = vsub.f32 %v625_v5, %v634_v25 }
 0x312   :  { %v647_v30 = vmul.f32 1.442695, %v642_v26 }
 0x313   :  { %v640_v27 = vpop.xlane.xlu1 %639 }
 0x314   :  { %v644_v28 = vsub.f32 %v627_v8, %v640_v27 }
 0x316   :  { %v651_v31 = vmul.f32 1.442695, %v644_v28  ;;  %v290_v28 = vld [vmem:[#allocation16] sm:$0xf] }
 0x317   :  { %v504_v32 = vpop.permute.xlu1 %503 }
 0x318   :  { %4000 = vpow2.f32 %v651_v31  ;;  %v549_v33 = vadd.f32 %v3672_v10, %v504_v32  ;;  %v541_v34 = vadd.f32 %v540_v13, %v504_v32  ;;  %v544_v35 = vadd.f32 %v543_v29, %v504_v32 }
 0x319   :  { %4002 = vpow2.f32 %v647_v30 }
 0x31a   :  { %v676_v36 = vpack.c.bf16 %v549_v33, %v549_v33  ;;  %v675_v37 = vpack.c.bf16 %v544_v35, %v541_v34 }
 0x31b   :  { %v3997_v39 = vpop.eup %3996  ;;  %v797_v40 = vpop.permute.xlu1 %796 }
 0x31c   :  { %v659_v42 = vsel %vm628_vm7, %v3997_v39, 0.0  ;;  %3924 = vmatprep.subr.msk.bf16.mxu0 %vm683_vm10, %v676_v36  ;;  %v685_v43 = vsel %vm683_vm10, %v676_v36, 0  ;;  %3700 = vmatprep.subr.bf16.mxu1 %v797_v40  ;;  %v745_v36 = vpop.permute.xlu0 %744 }
 0x31d   :  { %v3999_v44 = vpop.eup %3998  ;;  %660 = vadd.xlane.f32.xlu1 %v659_v42  ;;  %3683 = vmatpush3.bf16.msra.mxu0 %v685_v43 }
 0x31e   :  { %3684 = vmatprep.subr.bf16.mxu0 %v675_v37  ;;  %3701 = vmatpush3.bf16.msra.mxu1 %v797_v40  ;;  %v653_v46 = vsel %vm628_vm7, %v3999_v44, 0.0 }
 0x31f   :  { %v741_v45 = vpop.permute.xlu1 %740 }
 0x321   :  { %654 = vadd.xlane.f32.xlu1 %v653_v46  ;;  %3685 = vmatpush3.bf16.msra.mxu0 %v675_v37  ;;  %v1156_v46 = vsel %vm683_vm10, %v290_v28, 0 }
 0x322   :  { %3690 = vmatprep.subr.bf16.mxu0 %v741_v45  ;;  %3703 = vmatmul.mubr.msk.bf16.vlgmr.msra.gmra.mxu1 %vm369_vm0, %v4733_v11 }
 0x325   :  { %v4001_v47 = vpop.eup %4000 }
 0x326   :  { %v662_v48 = vsel %vm628_vm7, %v4001_v47, 0.0  ;;  %v4003_v49 = vpop.eup %4002 }
 0x327   :  { %663 = vadd.xlane.f32.xlu1 %v662_v48  ;;  %v656_v51 = vsel %vm628_vm7, %v4003_v49, 0.0 }
 0x32b   :  { %657 = vadd.xlane.f32.xlu1 %v656_v51  ;;  %v854_v51 = vpop.permute.xlu0 %853 }
 0x33c   :  { %738 = vrot.lane.b32.xlu1 %v4726_v3, %s4525_s17 }
 0x340   :  { %802 = vrot.lane.b32.xlu1 %v4755_v15, %s4525_s17 }
 0x344   :  { %855 = vrot.lane.b32.xlu1 %v4717_v0, %s4526_s23 }
 0x3a6   :  { %v661_v52 = vpop.xlane.xlu1 %660 }
 0x3aa   :  { %v655_v54 = vpop.xlane.xlu1 %654 }
 0x3b0   :  { %v664_v55 = vpop.xlane.xlu1 %663 }
 0x3b1   :  { %4004 = vrcp.f32 %v664_v55 }
 0x3b2   :  { %4006 = vrcp.f32 %v655_v54 }
 0x3b3   :  { %4008 = vrcp.f32 %v661_v52 }
 0x3b4   :  { %v658_v56 = vpop.xlane.xlu1 %657 }
 0x3b5   :  { %4010 = vrcp.f32 %v658_v56 }
 0x3b8   :  { %v739_v10 = vpop.permute.xlu1 %738 }
 0x3bc   :  { %v803_v13 = vpop.permute.xlu1 %802 }
 0x3be   :  { %v4005_v57 = vpop.eup %4004 }
 0x3bf   :  { %v4007_v58 = vpop.eup %4006  ;;  %v672_v62 = vmul.f32 %v4005_v57, %v4001_v47 }
 0x3c0   :  { %v4009_v59 = vpop.eup %4008  ;;  %v669_v63 = vmul.f32 %v4007_v58, %v3999_v44 }
 0x3c1   :  { %v671_v6 = vmul.f32 %v4009_v59, %v3997_v39 }
 0x3c2   :  { %v4011_v61 = vpop.eup %4010 }
 0x3c3   :  { %v670_v5 = vmul.f32 %v4011_v61, %v4003_v49  ;;  %v674_v9 = vpack.c.bf16 %v672_v62, %v671_v6  ;;  %v856_v49 = vpop.permute.xlu1 %855 }
 0x3c5   :  { %v673_v8 = vpack.c.bf16 %v670_v5, %v669_v63 }
 0x3c7   :  { %3686 = vmatprep.mubr.msk.bf16.mxu0 %vm628_vm7, %v673_v8 }
 0x3c8   :  { %3687 = vmatmul.mubr.msk.bf16.vlgmr.msra.gmra.mxu0 %vm628_vm7, %v674_v9 }
 0x3c9   :  { %3691 = vmatpush3.bf16.msra.mxu0 %v741_v45  ;;  %3694 = vmatprep.mubr.msk.bf16.mxu0 %vm369_vm0, %v4735_v12 }
 0x3ca   :  { %3692 = vmatprep.subr.bf16.mxu0 %v739_v10 }
 0x3cd   :  { %3693 = vmatpush3.bf16.msra.mxu0 %v739_v10 }
 0x3ce   :  { %3706 = vmatprep.subr.bf16.mxu0 %v856_v49 }
 0x3d0   :  { %3695 = vmatmul.mubr.msk.bf16.vlgmr.msra.gmra.mxu0 %vm369_vm0, %v4740_v14 }
 0x3d1   :  { %3710 = vmatprep.mubr.msk.bf16.mxu0 %vm369_vm0, %v4731_v7  ;;  %3707 = vmatpush3.bf16.msra.mxu0 %v856_v49 }
 0x3d2   :  { %3708 = vmatprep.subr.bf16.mxu0 %v854_v51 }
 0x3d5   :  { %3709 = vmatpush3.bf16.msra.mxu0 %v854_v51 }
 0x3d8   :  { %3711 = vmatmul.mubr.msk.bf16.vlgmr.msra.gmra.mxu0 %vm369_vm0, %v4733_v11 }
 0x3e2   :  { %v3704_v16 = vpop.f32.mrf.mxu1 }
 0x3e3   :  { %v848_v17 = vadd.f32 %v3704_v16, %v803_v13 }
 0x3e4   :  { %v839_v18 = vpop.f32.mrf.mxu1 }
 0x3e5   :  { %v913_v19 = vpack.c.bf16 %v848_v17, %v848_v17  ;;  %v840_v22 = vadd.f32 %v839_v18, %v803_v13 }
 0x3e6   :  { %v3705_v20 = vpop.f32.mrf.mxu1 }
 0x3e7   :  { %3925 = vmatprep.subr.msk.bf16.mxu1 %vm558_vm1, %v913_v19  ;;  %v924_v23 = vsel %vm558_vm1, %v913_v19, 0 }
 0x3e8   :  { %3715 = vmatpush3.bf16.xpose.msra.mxu1 %v924_v23  ;;  %v842_v24 = vpop.f32.mrf.mxu1 }
 0x3e9   :  { %v843_v25 = vadd.f32 %v842_v24, %v803_v13 }
 0x3eb   :  { %v912_v26 = vpack.c.bf16 %v843_v25, %v840_v22 }
 0x3ed   :  { %3926 = vmatprep.subr.msk.bf16.mxu1 %vm558_vm1, %v912_v26  ;;  %v921_v27 = vsel %vm558_vm1, %v912_v26, 0 }
 0x3f0   :  { %3717 = vmatpush3.bf16.xpose.msra.mxu1 %v921_v27 }
 0x3f1   :  { %3929 = vmatprep.subr.msk.bf16.mxu1 %vm683_vm10, %v290_v28 }
 0x488   :  { %v3688_v29 = vpop.f32.mrf.mxu0 }
 0x48a   :  { %v721_v30 = vpop.f32.mrf.mxu0 }
 0x48c   :  { %v3689_v31 = vpop.f32.mrf.mxu0 }
 0x48d   :  { %v737_v48 = vpack.c.bf16 %v3689_v31, %v3688_v29 }
 0x48e   :  { %v724_v32 = vpop.f32.mrf.mxu0 }
 0x48f   :  { %v736_v47 = vpack.c.bf16 %v724_v32, %v721_v30 }
 0x490   :  { %v3696_v33 = vpop.f32.mrf.mxu0 }
 0x491   :  { %v790_v43 = vadd.f32 %v3696_v33, %v745_v36 }
 0x492   :  { %v781_v34 = vpop.f32.mrf.mxu0 }
 0x493   :  { %v782_v40 = vadd.f32 %v781_v34, %v745_v36 }
 0x494   :  { %v3697_v35 = vpop.f32.mrf.mxu0 }
 0x495   :  { %v793_v37 = vadd.f32 %v3697_v35, %v745_v36 }
 0x496   :  { %v784_v39 = vpop.f32.mrf.mxu0 }
 0x497   :  { %v785_v42 = vadd.f32 %v784_v39, %v745_v36  ;;  %v911_v45 = vpack.c.bf16 %v793_v37, %v790_v43 }
 0x498   :  { %v3712_v37 = vpop.f32.mrf.mxu0 }
 0x499   :  { %v910_v44 = vpack.c.bf16 %v785_v42, %v782_v40 }
 0x49a   :  { %v896_v39 = vpop.f32.mrf.mxu0 }
 0x49b   :  { %3718 = vmatprep.mubr.msk.bf16.mxu1 %vm558_vm1, %v910_v44 }
 0x49c   :  { %3719 = vmatmul.mubr.msk.bf16.vlgmr.msra.gmra.mxu1 %vm558_vm1, %v911_v45  ;;  %v3713_v40 = vpop.f32.mrf.mxu0 }
 0x49d   :  { %3738 = vmatprep.mubr.msk.bf16.mxu1 %vm558_vm1, %v736_v47  ;;  %3737 = vmatpush3.bf16.msra.mxu1 %v1156_v46 }
 0x49e   :  { %v899_v46 = vpop.f32.mrf.mxu0 }
 0x4a4   :  { %3739 = vmatmul.mubr.msk.bf16.vlgmr.msra.gmra.mxu1 %vm558_vm1, %v737_v48 }
 0x4a5   :  { %3754 = vmatprep.mubr.msk.bf16.mxu1 %vm369_vm0, %v4731_v7 }
 0x55c   :  { %v3720_v52 = vpop.f32.mrf.mxu1 }
 0x55d   :  { %v977_v61 = vmul.f32 0.35355338, %v3720_v52 }
 0x55e   :  { %v960_v54 = vpop.f32.mrf.mxu1 }
 0x55f   :  { %v975_v55 = vmul.f32 0.35355338, %v960_v54  ;;  %v981_v10 = vadd.f32 %v977_v61, %v4782_v50 }
 0x560   :  { %v3721_v56 = vpop.f32.mrf.mxu1 }
 0x561   :  { %v978_v57 = vmul.f32 0.35355338, %v3721_v56  ;;  %v979_v58 = vadd.f32 %v975_v55, %v4784_v53  ;;  %v989_v13 = vsel %vm628_vm7, %v981_v10, -inf }
 0x562   :  { %v963_v59 = vpop.f32.mrf.mxu1 }
 0x563   :  { %v976_v62 = vmul.f32 0.35355338, %v963_v59  ;;  %v983_v63 = vsel %vm628_vm7, %v979_v58, -inf  ;;  %v982_v5 = vadd.f32 %v978_v57, %v4792_v4 }
 0x564   :  { %984 = vmax.xlane.f32.xlu1 %v983_v63 }
 0x565   :  { %v980_v6 = vadd.f32 %v976_v62, %v4789_v60  ;;  %v992_v8 = vsel %vm628_vm7, %v982_v5, -inf }
 0x567   :  { %v986_v9 = vsel %vm628_vm7, %v980_v6, -inf }
 0x568   :  { %993 = vmax.xlane.f32.xlu1 %v992_v8  ;;  %987 = vmax.xlane.f32.xlu0 %v986_v9 }
 0x56c   :  { %990 = vmax.xlane.f32.xlu0 %v989_v13  ;;  %v291_v13 = vld [vmem:[#allocation16 + $0x4] sm:$0xf] }
 0x5ed   :  { %v985_v16 = vpop.xlane.xlu1 %984 }
 0x5ee   :  { %v995_v22 = vsub.f32 %v979_v58, %v985_v16  ;;  %v1098_v16 = vsel %vm683_vm10, %v291_v13, 0 }
 0x5f0   :  { %v999_v27 = vmul.f32 1.442695, %v995_v22 }
 0x5f1   :  { %v988_v17 = vpop.xlane.xlu0 %987  ;;  %v994_v18 = vpop.xlane.xlu1 %993 }
 0x5f2   :  { %v996_v19 = vsub.f32 %v980_v6, %v988_v17  ;;  %v998_v20 = vsub.f32 %v982_v5, %v994_v18  ;;  %v4874_v18 = vpop.f32.mrf.mxu1 }
 0x5f4   :  { %v1001_v23 = vmul.f32 1.442695, %v996_v19  ;;  %v1005_v24 = vmul.f32 1.442695, %v998_v20  ;;  %v4876_v19 = vpop.f32.mrf.mxu1 }
 0x5f5   :  { %v991_v25 = vpop.xlane.xlu0 %990 }
 0x5f6   :  { %4012 = vpow2.f32 %v1001_v23  ;;  %v997_v26 = vsub.f32 %v981_v10, %v991_v25  ;;  %v4878_v20 = vpop.f32.mrf.mxu1 }
 0x5f7   :  { %4014 = vpow2.f32 %v1005_v24 }
 0x5f8   :  { %v1003_v28 = vmul.f32 1.442695, %v997_v26  ;;  %v4880_v22 = vpop.f32.mrf.mxu1 }
 0x5fa   :  { %4016 = vpow2.f32 %v1003_v28 }
 0x5fb   :  { %4018 = vpow2.f32 %v999_v27 }
 0x603   :  { %v4013_v29 = vpop.eup %4012 }
 0x604   :  { %v1010_v30 = vsel %vm628_vm7, %v4013_v29, 0.0  ;;  %v4015_v31 = vpop.eup %4014 }
 0x605   :  { %1011 = vadd.xlane.f32.xlu1 %v1010_v30  ;;  %v1016_v34 = vsel %vm628_vm7, %v4015_v31, 0.0 }
 0x607   :  { %v4017_v32 = vpop.eup %4016 }
 0x608   :  { %v1013_v33 = vsel %vm628_vm7, %v4017_v32, 0.0  ;;  %v4019_v35 = vpop.eup %4018 }
 0x609   :  { %1014 = vadd.xlane.f32.xlu0 %v1013_v33  ;;  %1017 = vadd.xlane.f32.xlu1 %v1016_v34  ;;  %v1007_v36 = vsel %vm628_vm7, %v4019_v35, 0.0 }
 0x60d   :  { %1008 = vadd.xlane.f32.xlu0 %v1007_v36 }
 0x61a   :  { %1267 = vrot.lane.b32.xlu1 %v4717_v0, %s4527_s11 }
 0x61e   :  { %1265 = vrot.lane.b32.xlu1 %v4722_v2, %s4527_s11 }
 0x622   :  { %1207 = vrot.lane.b32.xlu1 %v4726_v3, %s4527_s11 }
 0x623   :  { %859 = vrot.lane.b32.xlu0 %v4755_v15, %s4526_s23 }
 0x626   :  { %1213 = vrot.lane.b32.xlu1 %v4758_v21, %s4527_s11 }
 0x627   :  { %1209 = vrot.lane.b32.xlu0 %v4719_v1, %s4527_s11 }
 0x62a   :  { %1322 = vrot.lane.b32.xlu1 %v4722_v2, %s4528_s29 }
 0x62b   :  { %1271 = vrot.lane.b32.xlu0 %v4755_v15, %s4527_s11 }
 0x62f   :  { %1324 = vrot.lane.b32.xlu0 %v4717_v0, %s4528_s29 }
 0x68e   :  { %v1012_v42 = vpop.xlane.xlu1 %1011 }
 0x692   :  { %v1015_v43 = vpop.xlane.xlu0 %1014  ;;  %v1018_v44 = vpop.xlane.xlu1 %1017 }
 0x693   :  { %4020 = vrcp.f32 %v1015_v43 }
 0x694   :  { %4022 = vrcp.f32 %v1018_v44 }
 0x695   :  { %4024 = vrcp.f32 %v1012_v42 }
 0x696   :  { %v1009_v45 = vpop.xlane.xlu0 %1008  ;;  %v1268_v55 = vpop.permute.xlu1 %1267 }
 0x697   :  { %4026 = vrcp.f32 %v1009_v45  ;;  %3750 = vmatprep.subr.bf16.mxu1 %v1268_v55 }
 0x698   :  { %3751 = vmatpush3.bf16.msra.mxu1 %v1268_v55 }
 0x69a   :  { %v860_v47 = vpop.permute.xlu0 %859  ;;  %v1266_v59 = vpop.permute.xlu1 %1265 }
 0x69b   :  { %v897_v48 = vadd.f32 %v896_v39, %v860_v47  ;;  %v905_v49 = vadd.f32 %v3712_v37, %v860_v47  ;;  %v900_v51 = vadd.f32 %v899_v46, %v860_v47  ;;  %3752 = vmatprep.subr.bf16.mxu1 %v1266_v59 }
 0x69c   :  { %3753 = vmatpush3.bf16.msra.mxu1 %v1266_v59 }
 0x69d   :  { %v1030_v52 = vpack.c.bf16 %v905_v49, %v905_v49  ;;  %v1029_v54 = vpack.c.bf16 %v900_v51, %v897_v48 }
 0x69e   :  { %v1210_v17 = vpop.permute.xlu0 %1209  ;;  %v1208_v42 = vpop.permute.xlu1 %1207 }
 0x69f   :  { %3927 = vmatprep.subr.msk.bf16.mxu0 %vm683_vm10, %v1030_v52  ;;  %v1038_v56 = vsel %vm683_vm10, %v1030_v52, 0  ;;  %3755 = vmatmul.mubr.msk.bf16.vlgmr.msra.gmra.mxu1 %vm369_vm0, %v4733_v11 }
 0x6a0   :  { %v4021_v57 = vpop.eup %4020  ;;  %3723 = vmatpush3.bf16.msra.mxu0 %v1038_v56 }
 0x6a1   :  { %v4023_v58 = vpop.eup %4022  ;;  %3724 = vmatprep.subr.bf16.mxu0 %v1029_v54  ;;  %v1025_v63 = vmul.f32 %v4021_v57, %v4017_v32 }
 0x6a2   :  { %v4025_v61 = vpop.eup %4024  ;;  %v1026_v5 = vmul.f32 %v4023_v58, %v4015_v31  ;;  %v1272_v23 = vpop.permute.xlu0 %1271 }
 0x6a3   :  { %v1024_v8 = vmul.f32 %v4025_v61, %v4013_v29  ;;  %v1214_v52 = vpop.permute.xlu1 %1213 }
 0x6a4   :  { %v4027_v62 = vpop.eup %4026  ;;  %3725 = vmatpush3.bf16.msra.mxu0 %v1029_v54  ;;  %v1028_v10 = vpack.c.bf16 %v1026_v5, %v1025_v63 }
 0x6a5   :  { %v1023_v6 = vmul.f32 %v4027_v62, %v4019_v35  ;;  %3928 = vmatprep.subr.msk.bf16.mxu0 %vm683_vm10, %v291_v13 }
 0x6a6   :  { %v1325_v62 = vpop.permute.xlu0 %1324 }
 0x6a7   :  { %v1027_v9 = vpack.c.bf16 %v1024_v8, %v1023_v6  ;;  %v1323_v63 = vpop.permute.xlu1 %1322 }
 0x6a9   :  { %3726 = vmatprep.mubr.msk.bf16.mxu0 %vm628_vm7, %v1027_v9 }
 0x6aa   :  { %3727 = vmatmul.mubr.msk.bf16.vlgmr.msra.gmra.mxu0 %vm628_vm7, %v1028_v10 }
 0x6ab   :  { %3731 = vmatpush3.bf16.msra.mxu0 %v1098_v16 }
 0x6ac   :  { %3742 = vmatprep.subr.bf16.mxu0 %v1210_v17 }
 0x75f   :  { %v3756_v24 = vpop.f32.mrf.mxu1 }
 0x760   :  { %v1317_v25 = vadd.f32 %v3756_v24, %v1272_v23 }
 0x761   :  { %v1308_v26 = vpop.f32.mrf.mxu1 }
 0x762   :  { %v1382_v27 = vpack.c.bf16 %v1317_v25, %v1317_v25  ;;  %v1309_v31 = vadd.f32 %v1308_v26, %v1272_v23 }
 0x763   :  { %v3757_v29 = vpop.f32.mrf.mxu1 }
 0x764   :  { %v1393_v30 = vsel %vm558_vm1, %v1382_v27, 0  ;;  %3930 = vmatprep.subr.msk.bf16.mxu1 %vm558_vm1, %v1382_v27 }
 0x765   :  { %3767 = vmatpush3.bf16.xpose.msra.mxu1 %v1393_v30  ;;  %v1311_v33 = vpop.f32.mrf.mxu1 }
 0x766   :  { %v1312_v34 = vadd.f32 %v1311_v33, %v1272_v23 }
 0x768   :  { %v1381_v36 = vpack.c.bf16 %v1312_v34, %v1309_v31 }
 0x76a   :  { %v3728_v28 = vpop.f32.mrf.mxu0  ;;  %3931 = vmatprep.subr.msk.bf16.mxu1 %vm558_vm1, %v1381_v36  ;;  %v1390_v43 = vsel %vm558_vm1, %v1381_v36, 0 }
 0x76c   :  { %v1074_v32 = vpop.f32.mrf.mxu0 }
 0x76d   :  { %3769 = vmatpush3.bf16.xpose.msra.mxu1 %v1390_v43 }
 0x76e   :  { %v3729_v35 = vpop.f32.mrf.mxu0 }
 0x76f   :  { %v1090_v40 = vpack.c.bf16 %v3729_v35, %v3728_v28 }
 0x770   :  { %v1077_v37 = vpop.f32.mrf.mxu0 }
 0x771   :  { %v1089_v39 = vpack.c.bf16 %v1077_v37, %v1074_v32 }
 0x773   :  { %3732 = vmatprep.mubr.msk.bf16.mxu0 %vm558_vm1, %v1089_v39 }
 0x774   :  { %3733 = vmatmul.mubr.msk.bf16.vlgmr.msra.gmra.mxu0 %vm558_vm1, %v1090_v40 }
 0x775   :  { %3743 = vmatpush3.bf16.msra.mxu0 %v1210_v17  ;;  %3746 = vmatprep.mubr.msk.bf16.mxu0 %vm369_vm0, %v4735_v12 }
 0x776   :  { %3744 = vmatprep.subr.bf16.mxu0 %v1208_v42 }
 0x779   :  { %3745 = vmatpush3.bf16.msra.mxu0 %v1208_v42 }
 0x77a   :  { %3758 = vmatprep.subr.bf16.mxu0 %v1325_v62 }
 0x77c   :  { %3747 = vmatmul.mubr.msk.bf16.vlgmr.msra.gmra.mxu0 %vm369_vm0, %v4740_v14 }
 0x77d   :  { %3762 = vmatprep.mubr.msk.bf16.mxu0 %vm369_vm0, %v4731_v7  ;;  %3759 = vmatpush3.bf16.msra.mxu0 %v1325_v62 }
 0x77e   :  { %3760 = vmatprep.subr.bf16.mxu0 %v1323_v63 }
 0x781   :  { %3761 = vmatpush3.bf16.msra.mxu0 %v1323_v63 }
 0x784   :  { %3763 = vmatmul.mubr.msk.bf16.vlgmr.msra.gmra.mxu0 %vm369_vm0, %v4733_v11 }
 0x834   :  { %v4898_v44 = vpop.f32.mrf.mxu0 }
 0x836   :  { %v4900_v45 = vpop.f32.mrf.mxu0 }
 0x838   :  { %v4902_v46 = vpop.f32.mrf.mxu0 }
 0x83a   :  { %v4904_v47 = vpop.f32.mrf.mxu0 }
 0x83c   :  { %v3748_v48 = vpop.f32.mrf.mxu0 }
 0x83d   :  { %v1259_v58 = vadd.f32 %v3748_v48, %v1214_v52 }
 0x83e   :  { %v1250_v49 = vpop.f32.mrf.mxu0 }
 0x83f   :  { %v1251_v56 = vadd.f32 %v1250_v49, %v1214_v52 }
 0x840   :  { %v3749_v51 = vpop.f32.mrf.mxu0 }
 0x841   :  { %v1262_v54 = vadd.f32 %v3749_v51, %v1214_v52 }
 0x842   :  { %v1253_v55 = vpop.f32.mrf.mxu0 }
 0x843   :  { %v1254_v57 = vadd.f32 %v1253_v55, %v1214_v52  ;;  %v1380_v61 = vpack.c.bf16 %v1262_v54, %v1259_v58 }
 0x844   :  { %v3764_v58 = vpop.f32.mrf.mxu0 }
 0x845   :  { %v1379_v59 = vpack.c.bf16 %v1254_v57, %v1251_v56 }
 0x847   :  { %3770 = vmatprep.mubr.msk.bf16.mxu1 %vm558_vm1, %v1379_v59  ;;  %v1365_v59 = vpop.f32.mrf.mxu0 }
 0x848   :  { %3771 = vmatmul.mubr.msk.bf16.vlgmr.msra.gmra.mxu1 %vm558_vm1, %v1380_v61 }
 0x849   :  { %3792 = vmatprep.mubr.msk.bf16.mxu1 %vm369_vm0, %v4735_v12  ;;  %v3765_v61 = vpop.f32.mrf.mxu0 }
 0x908   :  { %v3772_v5 = vpop.f32.mrf.mxu1 }
 0x909   :  { %v1446_v8 = vmul.f32 0.35355338, %v3772_v5 }
 0x90a   :  { %v1429_v6 = vpop.f32.mrf.mxu1 }
 0x90b   :  { %v1444_v9 = vmul.f32 0.35355338, %v1429_v6  ;;  %v1450_v24 = vadd.f32 %v1446_v8, %v4782_v50  ;;  %v1368_v8 = vpop.f32.mrf.mxu0 }
 0x90c   :  { %v3773_v10 = vpop.f32.mrf.mxu1 }
 0x90d   :  { %v1448_v13 = vadd.f32 %v1444_v9, %v4784_v53  ;;  %v1447_v17 = vmul.f32 0.35355338, %v3773_v10  ;;  %v1458_v26 = vsel %vm628_vm7, %v1450_v24, -inf }
 0x90e   :  { %v1432_v16 = vpop.f32.mrf.mxu1 }
 0x90f   :  { %v1445_v23 = vmul.f32 0.35355338, %v1432_v16  ;;  %v1452_v12 = vsel %vm628_vm7, %v1448_v13, -inf  ;;  %v1451_v28 = vadd.f32 %v1447_v17, %v4792_v4 }
 0x910   :  { %1453 = vmax.xlane.f32.xlu0 %v1452_v12 }
 0x911   :  { %v1449_v25 = vadd.f32 %v1445_v23, %v4789_v60  ;;  %v1461_v29 = vsel %vm628_vm7, %v1451_v28, -inf }
 0x913   :  { %v1455_v27 = vsel %vm628_vm7, %v1449_v25, -inf }
 0x914   :  { %1459 = vmax.xlane.f32.xlu0 %v1458_v26  ;;  %1456 = vmax.xlane.f32.xlu1 %v1455_v27 }
 0x918   :  { %1462 = vmax.xlane.f32.xlu0 %v1461_v29 }
 0x999   :  { %v1454_v30 = vpop.xlane.xlu0 %1453 }
 0x99a   :  { %v1464_v31 = vsub.f32 %v1448_v13, %v1454_v30 }
 0x99c   :  { %v1468_v36 = vmul.f32 1.442695, %v1464_v31 }
 0x99d   :  { %v1460_v32 = vpop.xlane.xlu0 %1459  ;;  %v1457_v33 = vpop.xlane.xlu1 %1456 }
 0x99e   :  { %v1466_v34 = vsub.f32 %v1450_v24, %v1460_v32  ;;  %v1465_v35 = vsub.f32 %v1449_v25, %v1457_v33 }
 0x9a0   :  { %v1472_v37 = vmul.f32 1.442695, %v1466_v34  ;;  %v1470_v39 = vmul.f32 1.442695, %v1465_v35 }
 0x9a1   :  { %v1463_v40 = vpop.xlane.xlu0 %1462 }
 0x9a2   :  { %4028 = vpow2.f32 %v1472_v37  ;;  %v1467_v42 = vsub.f32 %v1451_v28, %v1463_v40  ;;  %v292_v28 = vld [vmem:[#allocation16 + $0x8] sm:$0xf] }
 0x9a3   :  { %4030 = vpow2.f32 %v1470_v39  ;;  %v1567_v29 = vsel %vm683_vm10, %v292_v28, 0 }
 0x9a4   :  { %4032 = vpow2.f32 %v1468_v36  ;;  %v1474_v43 = vmul.f32 1.442695, %v1467_v42 }
 0x9a6   :  { %4034 = vpow2.f32 %v1474_v43 }
 0x9af   :  { %v4029_v48 = vpop.eup %4028 }
 0x9b0   :  { %v4031_v49 = vpop.eup %4030  ;;  %v1482_v51 = vsel %vm628_vm7, %v4029_v48, 0.0 }
 0x9b1   :  { %v4033_v52 = vpop.eup %4032  ;;  %1483 = vadd.xlane.f32.xlu1 %v1482_v51  ;;  %v1479_v54 = vsel %vm628_vm7, %v4031_v49, 0.0 }
 0x9b2   :  { %1480 = vadd.xlane.f32.xlu0 %v1479_v54  ;;  %v1476_v56 = vsel %vm628_vm7, %v4033_v52, 0.0 }
 0x9b3   :  { %v4035_v55 = vpop.eup %4034 }
 0x9b4   :  { %v1485_v57 = vsel %vm628_vm7, %v4035_v55, 0.0 }
 0x9b5   :  { %1477 = vadd.xlane.f32.xlu1 %v1476_v56 }
 0x9b6   :  { %1486 = vadd.xlane.f32.xlu0 %v1485_v57 }
 0x9c6   :  { %1328 = vrot.lane.b32.xlu1 %v4755_v15, %s4528_s29 }
 0x9ca   :  { %1680 = vrot.lane.b32.xlu1 %v4722_v2, %s4529_s1 }
 0x9cc   :  { %1682 = vrot.lane.b32.xlu0 %v4717_v0, %s4529_s1 }
 0x9ce   :  { %1624 = vrot.lane.b32.xlu1 %v4719_v1, %s4529_s1 }
 0x9d0   :  { %1622 = vrot.lane.b32.xlu0 %v4726_v3, %s4529_s1 }
 0x9d2   :  { %1686 = vrot.lane.b32.xlu1 %v4755_v15, %s4529_s1 }
 0x9d4   :  { %1628 = vrot.lane.b32.xlu0 %v4758_v21, %s4529_s1 }
 0xa3a   :  { %v1484_v62 = vpop.xlane.xlu1 %1483 }
 0xa3b   :  { %v1481_v63 = vpop.xlane.xlu0 %1480 }
 0xa3c   :  { %4036 = vrcp.f32 %v1481_v63 }
 0xa3d   :  { %4038 = vrcp.f32 %v1484_v62  ;;  %v1193_v62 = vadd.f32 %v4876_v19, %v4900_v45 }
 0xa3e   :  { %v1478_v5 = vpop.xlane.xlu1 %1477 }
 0xa3f   :  { %v1487_v6 = vpop.xlane.xlu0 %1486  ;;  %4040 = vrcp.f32 %v1478_v5 }
 0xa40   :  { %4042 = vrcp.f32 %v1487_v6  ;;  %v1204_v6 = vadd.f32 %v4878_v20, %v4902_v46 }
 0xa42   :  { %v1329_v2 = vpop.permute.xlu1 %1328 }
 0xa43   :  { %v1366_v9 = vadd.f32 %v1365_v59, %v1329_v2  ;;  %v1374_v0 = vadd.f32 %v3764_v58, %v1329_v2  ;;  %v1369_v10 = vadd.f32 %v1368_v8, %v1329_v2  ;;  %v1683_v30 = vpop.permute.xlu0 %1682  ;;  %v4124_v58 = vld [vmem:[#allocation13 + $0x8] sm:$0xff]   ;;  %v1201_v59 = vadd.f32 %v4874_v18, %v4898_v44 }
 0xa44   :  { %1739 = vrot.lane.b32.xlu1 %v4124_v58, %s4530_s7 }
 0xa45   :  { %v1499_v1 = vpack.c.bf16 %v1374_v0, %v1374_v0  ;;  %v1498_v13 = vpack.c.bf16 %v1369_v10, %v1366_v9  ;;  %v1196_v9 = vadd.f32 %v4880_v22, %v4904_v47 }
 0xa46   :  { %v1681_v31 = vpop.permute.xlu1 %1680 }
 0xa47   :  { %3932 = vmatprep.subr.msk.bf16.mxu0 %vm683_vm10, %v1499_v1  ;;  %v1507_v3 = vsel %vm683_vm10, %v1499_v1, 0  ;;  %v1623_v33 = vpop.permute.xlu0 %1622 }
 0xa48   :  { %3775 = vmatpush3.bf16.msra.mxu0 %v1507_v3 }
 0xa49   :  { %3776 = vmatprep.subr.bf16.mxu0 %v1498_v13  ;;  %v4037_v15 = vpop.eup %4036 }
 0xa4a   :  { %v4039_v21 = vpop.eup %4038  ;;  %v1493_v12 = vmul.f32 %v4037_v15, %v4031_v49  ;;  %v1625_v32 = vpop.permute.xlu1 %1624 }
 0xa4b   :  { %v1494_v24 = vmul.f32 %v4039_v21, %v4029_v48  ;;  %3788 = vmatprep.subr.bf16.mxu1 %v1625_v32  ;;  %v1629_v48 = vpop.permute.xlu0 %1628 }
 0xa4c   :  { %v4041_v16 = vpop.eup %4040  ;;  %3777 = vmatpush3.bf16.msra.mxu0 %v1498_v13  ;;  %3789 = vmatpush3.bf16.msra.mxu1 %v1625_v32 }
 0xa4d   :  { %v4043_v17 = vpop.eup %4042  ;;  %v1492_v23 = vmul.f32 %v4041_v16, %v4033_v52  ;;  %3933 = vmatprep.subr.msk.bf16.mxu0 %vm683_vm10, %v292_v28  ;;  %3790 = vmatprep.subr.bf16.mxu1 %v1623_v33 }
 0xa4e   :  { %v1495_v25 = vmul.f32 %v4043_v17, %v4035_v55  ;;  %v1687_v18 = vpop.permute.xlu1 %1686 }
 0xa4f   :  { %v1496_v26 = vpack.c.bf16 %v1493_v12, %v1492_v23 }
 0xa50   :  { %v1497_v27 = vpack.c.bf16 %v1495_v25, %v1494_v24  ;;  %3791 = vmatpush3.bf16.msra.mxu1 %v1623_v33 }
 0xa51   :  { %3778 = vmatprep.mubr.msk.bf16.mxu0 %vm628_vm7, %v1496_v26 }
 0xa52   :  { %3779 = vmatmul.mubr.msk.bf16.vlgmr.msra.gmra.mxu0 %vm628_vm7, %v1497_v27 }
 0xa53   :  { %3783 = vmatpush3.bf16.msra.mxu0 %v1567_v29  ;;  %3793 = vmatmul.mubr.msk.bf16.vlgmr.msra.gmra.mxu1 %vm369_vm0, %v4740_v14 }
 0xa54   :  { %3796 = vmatprep.subr.bf16.mxu0 %v1683_v30  ;;  %3808 = vmatprep.mubr.msk.bf16.mxu1 %vm369_vm0, %v4731_v7 }
 0xab6   :  { %v1740_v16 = vpop.permute.xlu1 %1739 }
 0xab7   :  { %3804 = vmatprep.subr.bf16.mxu1 %v1740_v16 }
 0xab8   :  { %3805 = vmatpush3.bf16.msra.mxu1 %v1740_v16 }
 0xb12   :  { %v3780_v34 = vpop.f32.mrf.mxu0 }
 0xb13   :  { %v3794_v14 = vpop.f32.mrf.mxu1 }
 0xb14   :  { %v1543_v35 = vpop.f32.mrf.mxu0  ;;  %v1674_v49 = vadd.f32 %v3794_v14, %v1629_v48 }
 0xb15   :  { %v1665_v42 = vpop.f32.mrf.mxu1 }
 0xb16   :  { %v3781_v36 = vpop.f32.mrf.mxu0  ;;  %v1666_v52 = vadd.f32 %v1665_v42, %v1629_v48 }
 0xb17   :  { %v1559_v40 = vpack.c.bf16 %v3781_v36, %v3780_v34  ;;  %v3795_v43 = vpop.f32.mrf.mxu1 }
 0xb18   :  { %v1546_v37 = vpop.f32.mrf.mxu0  ;;  %v1677_v51 = vadd.f32 %v3795_v43, %v1629_v48 }
 0xb19   :  { %v1558_v39 = vpack.c.bf16 %v1546_v37, %v1543_v35  ;;  %v1668_v54 = vpop.f32.mrf.mxu1 }
 0xb1a   :  { %v1669_v55 = vadd.f32 %v1668_v54, %v1629_v48  ;;  %v1795_v56 = vpack.c.bf16 %v1677_v51, %v1674_v49 }
 0xb1b   :  { %3784 = vmatprep.mubr.msk.bf16.mxu0 %vm558_vm1, %v1558_v39 }
 0xb1c   :  { %3785 = vmatmul.mubr.msk.bf16.vlgmr.msra.gmra.mxu0 %vm558_vm1, %v1559_v40  ;;  %v1794_v57 = vpack.c.bf16 %v1669_v55, %v1666_v52 }
 0xb1d   :  { %3797 = vmatpush3.bf16.msra.mxu0 %v1683_v30  ;;  %3800 = vmatprep.mubr.msk.bf16.mxu0 %vm369_vm0, %v4731_v7  ;;  %v4125_v7 = vld [vmem:[#allocation13] sm:$0xff]  }
 0xb1e   :  { %3798 = vmatprep.subr.bf16.mxu0 %v1681_v31  ;;  %1737 = vrot.lane.b32.xlu0 %v4125_v7, %s4530_s7 }
 0xb21   :  { %3799 = vmatpush3.bf16.msra.mxu0 %v1681_v31 }
 0xb24   :  { %3801 = vmatmul.mubr.msk.bf16.vlgmr.msra.gmra.mxu0 %vm369_vm0, %v4733_v11 }
 0xb25   :  { %3816 = vmatprep.mubr.msk.bf16.mxu0 %vm558_vm1, %v1794_v57 }
 0xb90   :  { %v1738_v17 = vpop.permute.xlu0 %1737 }
 0xb91   :  { %3806 = vmatprep.subr.bf16.mxu1 %v1738_v17 }
 0xb92   :  { %3807 = vmatpush3.bf16.msra.mxu1 %v1738_v17 }
 0xb95   :  { %3809 = vmatmul.mubr.msk.bf16.vlgmr.msra.gmra.mxu1 %vm369_vm0, %v4733_v11 }
 0xbdc   :  { %v3786_v61 = vpop.f32.mrf.mxu0 }
 0xbdd   :  { %v4955_v63 = vadd.f32 %v3786_v61, %v1201_v59 }
 0xbde   :  { %v1603_v5 = vpop.f32.mrf.mxu0 }
 0xbdf   :  { %v4959_v8 = vadd.f32 %v1603_v5, %v1193_v62  ;;  %v4126_v5 = vld [vmem:[#allocation14] ss:$0 sm:$0xff] }
 0xbe0   :  { %v3787_v2 = vpop.f32.mrf.mxu0 }
 0xbe1   :  { %v4963_v0 = vadd.f32 %v3787_v2, %v1204_v6 }
 0xbe2   :  { %v1606_v10 = vpop.f32.mrf.mxu0 }
 0xbe3   :  { %v4965_v44 = vadd.f32 %v1606_v10, %v1196_v9 }
 0xbe4   :  { %v3802_v1 = vpop.f32.mrf.mxu0 }
 0xbe5   :  { %v1732_v19 = vadd.f32 %v3802_v1, %v1687_v18 }
 0xbe6   :  { %v1723_v45 = vpop.f32.mrf.mxu0 }
 0xbe7   :  { %v1797_v13 = vpack.c.bf16 %v1732_v19, %v1732_v19  ;;  %v1724_v15 = vadd.f32 %v1723_v45, %v1687_v18 }
 0xbe8   :  { %v3803_v3 = vpop.f32.mrf.mxu0 }
 0xbe9   :  { %3934 = vmatprep.subr.msk.bf16.mxu0 %vm558_vm1, %v1797_v13  ;;  %v1808_v20 = vsel %vm558_vm1, %v1797_v13, 0 }
 0xbea   :  { %v1726_v46 = vpop.f32.mrf.mxu0  ;;  %3813 = vmatpush3.bf16.xpose.msra.mxu0 %v1808_v20 }
 0xbeb   :  { %v1727_v21 = vadd.f32 %v1726_v46, %v1687_v18 }
 0xbed   :  { %v1796_v22 = vpack.c.bf16 %v1727_v21, %v1724_v15 }
 0xbef   :  { %3935 = vmatprep.subr.msk.bf16.mxu0 %vm558_vm1, %v1796_v22  ;;  %v1805_v47 = vsel %vm558_vm1, %v1796_v22, 0 }
 0xbf2   :  { %3815 = vmatpush3.bf16.xpose.msra.mxu0 %v1805_v47 }
 0xbf9   :  { %3817 = vmatmul.mubr.msk.bf16.vlgmr.msra.gmra.mxu0 %vm558_vm1, %v1795_v56 }
 0xc55   :  { %v3810_v59 = vpop.f32.mrf.mxu1 }
 0xc57   :  { %v1780_v61 = vpop.f32.mrf.mxu1 }
 0xc59   :  { %v3811_v62 = vpop.f32.mrf.mxu1 }
 0xc5b   :  { %v1783_v18 = vpop.f32.mrf.mxu1 }
 0xcb9   :  { %v3818_v23 = vpop.f32.mrf.mxu0 }
 0xcba   :  { %v1861_v29 = vmul.f32 0.35355338, %v3818_v23 }
 0xcbb   :  { %v1844_v12 = vpop.f32.mrf.mxu0 }
 0xcbc   :  { %v1859_v24 = vmul.f32 0.35355338, %v1844_v12  ;;  %v1865_v35 = vadd.f32 %v1861_v29, %v4782_v50 }
 0xcbd   :  { %v3819_v25 = vpop.f32.mrf.mxu0 }
 0xcbe   :  { %v1862_v26 = vmul.f32 0.35355338, %v3819_v25  ;;  %v1863_v27 = vadd.f32 %v1859_v24, %v4784_v53  ;;  %v1873_v53 = vsel %vm628_vm7, %v1865_v35, -inf }
 0xcbf   :  { %v1847_v28 = vpop.f32.mrf.mxu0 }
 0xcc0   :  { %v1860_v30 = vmul.f32 0.35355338, %v1847_v28  ;;  %v1867_v31 = vsel %vm628_vm7, %v1863_v27, -inf  ;;  %v1866_v32 = vadd.f32 %v1862_v26, %v4792_v4  ;;  %v293_v26 = vld [vmem:[#allocation16 + $0xc] sm:$0xf] }
 0xcc1   :  { %1868 = vmax.xlane.f32.xlu1 %v1867_v31 }
 0xcc2   :  { %v1864_v33 = vadd.f32 %v1860_v30, %v4789_v60  ;;  %v1876_v34 = vsel %vm628_vm7, %v1866_v32, -inf }
 0xcc4   :  { %v1870_v11 = vsel %vm628_vm7, %v1864_v33, -inf }
 0xcc5   :  { %1877 = vmax.xlane.f32.xlu1 %v1876_v34  ;;  %1871 = vmax.xlane.f32.xlu0 %v1870_v11  ;;  %v3477_v11 = vld [vmem:[#allocation17] ss:$0 sm:$0xff] }
 0xcc9   :  { %1874 = vmax.xlane.f32.xlu0 %v1873_v53 }
 0xd4a   :  { %v1869_v36 = vpop.xlane.xlu1 %1868 }
 0xd4b   :  { %v1879_v4 = vsub.f32 %v1863_v27, %v1869_v36  ;;  %v1982_v27 = vsel %vm683_vm10, %v293_v26, 0 }
 0xd4d   :  { %v1883_v49 = vmul.f32 1.442695, %v1879_v4 }
 0xd4e   :  { %v1872_v37 = vpop.xlane.xlu0 %1871  ;;  %v1878_v39 = vpop.xlane.xlu1 %1877 }
 0xd4f   :  { %v1880_v40 = vsub.f32 %v1864_v33, %v1872_v37  ;;  %v1882_v14 = vsub.f32 %v1866_v32, %v1878_v39 }
 0xd51   :  { %v1885_v42 = vmul.f32 1.442695, %v1880_v40  ;;  %v1889_v43 = vmul.f32 1.442695, %v1882_v14  ;;  %v4127_v14 = vld [vmem:[#allocation5 + $0x10] sm:$0xff] }
 0xd52   :  { %v1875_v60 = vpop.xlane.xlu0 %1874 }
 0xd53   :  { %4044 = vpow2.f32 %v1885_v42  ;;  %v1881_v48 = vsub.f32 %v1865_v35, %v1875_v60 }
 0xd54   :  { %4046 = vpow2.f32 %v1889_v43 }
 0xd55   :  { %v1887_v51 = vmul.f32 1.442695, %v1881_v48 }
 0xd57   :  { %4048 = vpow2.f32 %v1887_v51 }
 0xd58   :  { %4050 = vpow2.f32 %v1883_v49  ;;  %v4128_v49 = vld [vmem:[#allocation5] sm:$0xff] }
 0xd60   :  { %v4045_v50 = vpop.eup %4044 }
 0xd61   :  { %v1894_v52 = vsel %vm628_vm7, %v4045_v50, 0.0  ;;  %v4047_v54 = vpop.eup %4046 }
 0xd62   :  { %1895 = vadd.xlane.f32.xlu1 %v1894_v52  ;;  %v1900_v57 = vsel %vm628_vm7, %v4047_v54, 0.0 }
 0xd64   :  { %v4049_v55 = vpop.eup %4048 }
 0xd65   :  { %v1897_v56 = vsel %vm628_vm7, %v4049_v55, 0.0  ;;  %v4051_v58 = vpop.eup %4050 }
 0xd66   :  { %1898 = vadd.xlane.f32.xlu0 %v1897_v56  ;;  %1901 = vadd.xlane.f32.xlu1 %v1900_v57  ;;  %v1891_v7 = vsel %vm628_vm7, %v4051_v58, 0.0  ;;  %v4130_v56 = vld [vmem:[#allocation5 + $0x18] sm:$0xff] }
 0xd6a   :  { %1892 = vadd.xlane.f32.xlu0 %v1891_v7 }
 0xd80   :  { %1743 = vrot.lane.b32.xlu0 %v4126_v5, %s4530_s7 }
 0xdeb   :  { %v1896_v6 = vpop.xlane.xlu1 %1895 }
 0xdef   :  { %v1899_v2 = vpop.xlane.xlu0 %1898  ;;  %v1902_v9 = vpop.xlane.xlu1 %1901 }
 0xdf0   :  { %4052 = vrcp.f32 %v1899_v2 }
 0xdf1   :  { %4054 = vrcp.f32 %v1902_v9 }
 0xdf2   :  { %4056 = vrcp.f32 %v1896_v6 }
 0xdf3   :  { %v1893_v10 = vpop.xlane.xlu0 %1892 }
 0xdf4   :  { %4058 = vrcp.f32 %v1893_v10 }
 0xdf7   :  { %v1744_v1 = vpop.permute.xlu0 %1743 }
 0xdf8   :  { %v1781_v19 = vadd.f32 %v1780_v61, %v1744_v1  ;;  %v1789_v45 = vadd.f32 %v3810_v59, %v1744_v1  ;;  %v1784_v13 = vadd.f32 %v1783_v18, %v1744_v1 }
 0xdfa   :  { %v1914_v3 = vpack.c.bf16 %v1789_v45, %v1789_v45  ;;  %v1913_v20 = vpack.c.bf16 %v1784_v13, %v1781_v19 }
 0xdfc   :  { %3936 = vmatprep.subr.msk.bf16.mxu1 %vm683_vm10, %v1914_v3  ;;  %v1922_v46 = vsel %vm683_vm10, %v1914_v3, 0 }
 0xdfd   :  { %v4053_v15 = vpop.eup %4052  ;;  %3821 = vmatpush3.bf16.msra.mxu1 %v1922_v46 }
 0xdfe   :  { %v4055_v21 = vpop.eup %4054  ;;  %3822 = vmatprep.subr.bf16.mxu1 %v1913_v20  ;;  %v1909_v16 = vmul.f32 %v4053_v15, %v4049_v55 }
 0xdff   :  { %v4057_v22 = vpop.eup %4056  ;;  %v1910_v17 = vmul.f32 %v4055_v21, %v4047_v54  ;;  %v4129_v54 = vld [vmem:[#allocation5 + $0x8] sm:$0xff] }
 0xe00   :  { %v1908_v12 = vmul.f32 %v4057_v22, %v4045_v50  ;;  %v3988_v21 = vld [vmem:[%s5270_s0 + $0x8] sm:$0xff]   ;;  %v3989_v22 = vld [vmem:[%s5270_s0] sm:$0xff]  }
 0xe01   :  { %v4059_v47 = vpop.eup %4058  ;;  %3823 = vmatpush3.bf16.msra.mxu1 %v1913_v20  ;;  %v1912_v25 = vpack.c.bf16 %v1910_v17, %v1909_v16  ;;  %3834 = vmatprep.subr.bf16.mxu0 %v3988_v21 }
 0xe02   :  { %v1907_v23 = vmul.f32 %v4059_v47, %v4051_v58  ;;  %3937 = vmatprep.subr.msk.bf16.mxu1 %vm683_vm10, %v293_v26  ;;  %3835 = vmatpush3.bf16.msra.mxu0 %v3988_v21 }
 0xe03   :  { %3836 = vmatprep.subr.bf16.mxu0 %v3989_v22 }
 0xe04   :  { %v1911_v24 = vpack.c.bf16 %v1908_v12, %v1907_v23 }
 0xe06   :  { %3824 = vmatprep.mubr.msk.bf16.mxu1 %vm628_vm7, %v1911_v24  ;;  %3837 = vmatpush3.bf16.msra.mxu0 %v3989_v22 }
 0xe07   :  { %3825 = vmatmul.mubr.msk.bf16.vlgmr.msra.gmra.mxu1 %vm628_vm7, %v1912_v25 }
 0xe08   :  { %3829 = vmatpush3.bf16.msra.mxu1 %v1982_v27 }
 0xec7   :  { %v3826_v28 = vpop.f32.mrf.mxu1 }
 0xec9   :  { %v1958_v29 = vpop.f32.mrf.mxu1 }
 0xecb   :  { %v3827_v30 = vpop.f32.mrf.mxu1 }
 0xecc   :  { %v1974_v33 = vpack.c.bf16 %v3827_v30, %v3826_v28 }
 0xecd   :  { %v1961_v31 = vpop.f32.mrf.mxu1 }
 0xece   :  { %v1973_v32 = vpack.c.bf16 %v1961_v31, %v1958_v29 }
 0xed0   :  { %3830 = vmatprep.mubr.msk.bf16.mxu1 %vm558_vm1, %v1973_v32 }
 0xed1   :  { %3831 = vmatmul.mubr.msk.bf16.vlgmr.msra.gmra.mxu1 %vm558_vm1, %v1974_v33  ;;  %vm2555_vm1 = vcmask 778240  }
 0xf91   :  { %v3832_v34 = vpop.f32.mrf.mxu1 }
 0xf92   :  { %v2035_v35 = vadd.f32 %v3832_v34, %v4955_v63 }
 0xf93   :  { %v2018_v53 = vpop.f32.mrf.mxu1 }
 0xf94   :  { %v2046_v36 = vadd.f32 %v3477_v11, %v2035_v35  ;;  %v2033_v37 = vadd.f32 %v2018_v53, %v4959_v8 }
 0xf95   :  { %v3833_v39 = vpop.f32.mrf.mxu1 }
 0xf96   :  { %v2044_v40 = vadd.f32 %v3477_v11, %v2033_v37  ;;  %v2050_v4 = vadd.f32 %v4127_v14, %v2046_v36  ;;  %v2036_v43 = vadd.f32 %v3833_v39, %v4963_v0 }
 0xf97   :  { %v2021_v42 = vpop.f32.mrf.mxu1 }
 0xf98   :  { %v2034_v60 = vadd.f32 %v2021_v42, %v4965_v44  ;;  %v2060_v48 = vsel %vm369_vm0, %v2050_v4, 0.0  ;;  %v2048_v51 = vadd.f32 %v4128_v49, %v2044_v40  ;;  %v2047_v63 = vadd.f32 %v3477_v11, %v2036_v43  ;;  %v3479_v40 = vld [vmem:[#allocation20] ss:$0 sm:$0xff] }
 0xf99   :  { %2061 = vadd.xlane.f32.xlu1 %v2060_v48 }
 0xf9a   :  { %v2045_v50 = vadd.f32 %v3477_v11, %v2034_v60  ;;  %v2054_v52 = vsel %vm369_vm0, %v2048_v51, 0.0  ;;  %v2051_v57 = vadd.f32 %v4130_v56, %v2047_v63  ;;  %v3478_v11 = vld [vmem:[#allocation19] ss:$0 sm:$0xff]  ;;  %v3990_v63 = vld [vmem:[#allocation23 + $0x8] sm:$0xff]  }
 0xf9b   :  { %3842 = vmatprep.subr.bf16.mxu1 %v3990_v63 }
 0xf9c   :  { %v2049_v8 = vadd.f32 %v4129_v54, %v2045_v50  ;;  %v2063_v0 = vsel %vm369_vm0, %v2051_v57, 0.0  ;;  %3843 = vmatpush3.bf16.msra.mxu1 %v3990_v63  ;;  %v2389_v63 = vstv %s3497_s12 }
 0xf9d   :  { %2055 = vadd.xlane.f32.xlu1 %v2054_v52  ;;  %v3991_v52 = vld [vmem:[#allocation23] sm:$0xff]  }
 0xf9e   :  { %v2057_v55 = vsel %vm369_vm0, %v2049_v8, 0.0  ;;  %3844 = vmatprep.subr.bf16.mxu1 %v3991_v52 }
 0xfa0   :  { %3845 = vmatpush3.bf16.msra.mxu1 %v3991_v52 }
 0xfa1   :  { %2058 = vadd.xlane.f32.xlu1 %v2057_v55  ;;  %v3480_v55 = vld [vmem:[#allocation22] ss:$0 sm:$0xff] }
 0xfa5   :  { %2064 = vadd.xlane.f32.xlu1 %v2063_v0 }
0x1022   :  { %v2062_v44 = vpop.xlane.xlu1 %2061 }
0x1023   :  { %v2069_v58 = vmul.f32 0.03125, %v2062_v44 }
0x1025   :  { %v2073_v7 = vsub.f32 %v2050_v4, %v2069_v58 }
0x1026   :  { %v2056_v59 = vpop.xlane.xlu1 %2055 }
0x1027   :  { %v2067_v61 = vmul.f32 0.03125, %v2056_v59  ;;  %v2077_v62 = vmul.f32 %v2073_v7, %v2073_v7 }
0x1029   :  { %v2071_v5 = vsub.f32 %v2048_v51, %v2067_v61  ;;  %v2085_v6 = vsel %vm369_vm0, %v2077_v62, 0.0 }
0x102a   :  { %2086 = vadd.xlane.f32.xlu0 %v2085_v6  ;;  %v2059_v2 = vpop.xlane.xlu1 %2058 }
0x102b   :  { %v2068_v9 = vmul.f32 0.03125, %v2059_v2  ;;  %v2075_v10 = vmul.f32 %v2071_v5, %v2071_v5 }
0x102d   :  { %v2072_v18 = vsub.f32 %v2049_v8, %v2068_v9  ;;  %v2079_v1 = vsel %vm369_vm0, %v2075_v10, 0.0  ;;  %v3485_v9 = vld [vmem:[#allocation25] ss:$0 sm:$0xff] }
0x102e   :  { %2080 = vadd.xlane.f32.xlu1 %v2079_v1  ;;  %v2065_v19 = vpop.xlane.xlu1 %2064 }
0x102f   :  { %v2070_v45 = vmul.f32 0.03125, %v2065_v19  ;;  %v2076_v13 = vmul.f32 %v2072_v18, %v2072_v18 }
0x1031   :  { %v2074_v3 = vsub.f32 %v2051_v57, %v2070_v45  ;;  %v2082_v20 = vsel %vm369_vm0, %v2076_v13, 0.0 }
0x1032   :  { %2083 = vadd.xlane.f32.xlu1 %v2082_v20 }
0x1033   :  { %v2078_v46 = vmul.f32 %v2074_v3, %v2074_v3 }
0x1035   :  { %v2088_v15 = vsel %vm369_vm0, %v2078_v46, 0.0 }
0x1036   :  { %2089 = vadd.xlane.f32.xlu1 %v2088_v15 }
0x10b3   :  { %v2087_v47 = vpop.xlane.xlu0 %2086 }
0x10b4   :  { %v2093_v16 = vmul.f32 0.03125, %v2087_v47 }
0x10b6   :  { %v2097_v12 = vadd.f32 1e-05, %v2093_v16 }
0x10b7   :  { %v2081_v17 = vpop.xlane.xlu1 %2080 }
0x10b8   :  { %v2091_v23 = vmul.f32 0.03125, %v2081_v17 }
0x10ba   :  { %v2095_v24 = vadd.f32 1e-05, %v2091_v23 }
0x10bb   :  { %v2084_v25 = vpop.xlane.xlu1 %2083 }
0x10bc   :  { %4060 = vrsqrt.f32 %v2095_v24  ;;  %v2092_v26 = vmul.f32 0.03125, %v2084_v25  ;;  %v5025_v24 = vld [vmem:[%s5252_s18 + $0x8] sm:$0xff]   ;;  %v5033_v25 = vld [vmem:[%s5252_s18] sm:$0xff]   ;;  %s2370_s18 = sld [smem:[#allocation4]] }
0x10bd   :  { %4062 = vrsqrt.f32 %v2097_v12  ;;  %v4531_v12 = vmov 0.0  }
0x10be   :  { %v2096_v27 = vadd.f32 1e-05, %v2092_v26  ;;  %3858 = vmatprep.subr.bf16.mxu1 %v4531_v12 }
0x10bf   :  { %v2090_v28 = vpop.xlane.xlu1 %2089 }
0x10c0   :  { %4064 = vrsqrt.f32 %v2096_v27  ;;  %v2094_v29 = vmul.f32 0.03125, %v2090_v28 }
0x10c2   :  { %v2098_v30 = vadd.f32 1e-05, %v2094_v29 }
0x10c4   :  { %4066 = vrsqrt.f32 %v2098_v30 }
0x10c9   :  { %v4061_v31 = vpop.eup %4060 }
0x10ca   :  { %v2103_v32 = vmul.f32 %v4061_v31, %v2071_v5  ;;  %v4063_v33 = vpop.eup %4062 }
0x10cb   :  { %v2105_v35 = vmul.f32 %v4063_v33, %v2073_v7 }
0x10cc   :  { %v2113_v36 = vmul.f32 %v3478_v11, %v2103_v32 }
0x10cd   :  { %v4065_v34 = vpop.eup %4064  ;;  %v2115_v43 = vmul.f32 %v3478_v11, %v2105_v35 }
0x10ce   :  { %v2104_v53 = vmul.f32 %v4065_v34, %v2072_v18  ;;  %v2123_v4 = vadd.f32 %v3479_v40, %v2113_v36 }
0x10cf   :  { %v2125_v49 = vadd.f32 %v3479_v40, %v2115_v43 }
0x10d0   :  { %v2114_v37 = vmul.f32 %v3478_v11, %v2104_v53 }
0x10d1   :  { %v4067_v39 = vpop.eup %4066 }
0x10d2   :  { %v2106_v14 = vmul.f32 %v4067_v39, %v2074_v3  ;;  %v2124_v42 = vadd.f32 %v3479_v40, %v2114_v37 }
0x10d4   :  { %v2127_v60 = vpack.c.bf16 %v2124_v42, %v2123_v4  ;;  %v2116_v48 = vmul.f32 %v3478_v11, %v2106_v14  ;;  %v2371_v14 = vstv %s2370_s18 }
0x10d6   :  { %3838 = vmatprep.mubr.msk.bf16.mxu0 %vm369_vm0, %v2127_v60  ;;  %v2126_v51 = vadd.f32 %v3479_v40, %v2116_v48 }
0x10d8   :  { %v2128_v50 = vpack.c.bf16 %v2126_v51, %v2125_v49 }
0x10da   :  { %3839 = vmatmul.mubr.msk.bf16.vlgmr.msra.gmra.mxu0 %vm369_vm0, %v2128_v50  ;;  %v2383_v50 = vstv %s3495_s27 }
0x119a   :  { %v3840_v54 = vpop.f32.mrf.mxu0 }
0x119b   :  { %v2201_v44 = vadd.f32 %v3840_v54, %v3480_v55 }
0x119c   :  { %v2192_v8 = vpop.f32.mrf.mxu0 }
0x119d   :  { %v2193_v57 = vadd.f32 %v3480_v55, %v2192_v8  ;;  %v2209_v5 = vmax.f32 %v2201_v44, 0.0 }
0x119e   :  { %v3841_v56 = vpop.f32.mrf.mxu0 }
0x119f   :  { %v2204_v0 = vadd.f32 %v3841_v56, %v3480_v55  ;;  %v2207_v61 = vmax.f32 %v2193_v57, 0.0  ;;  %v3995_v56 = vld [vmem:[#allocation29] sm:$0xff]   ;;  %v3504_v57 = vld [vmem:[%s5254_s20] ss:$0 sm:$0xff] }
0x11a0   :  { %v2195_v58 = vpop.f32.mrf.mxu0 }
0x11a1   :  { %v2196_v7 = vadd.f32 %v3480_v55, %v2195_v58  ;;  %v2210_v59 = vmax.f32 %v2204_v0, 0.0  ;;  %v3994_v55 = vld [vmem:[#allocation29 + $0x8] sm:$0xff]  }
0x11a2   :  { %3850 = vmatprep.subr.bf16.mxu0 %v3994_v55 }
0x11a3   :  { %v2208_v62 = vmax.f32 %v2196_v7, 0.0  ;;  %v2212_v2 = vpack.c.bf16 %v2210_v59, %v2209_v5  ;;  %3851 = vmatpush3.bf16.msra.mxu0 %v3994_v55 }
0x11a4   :  { %3852 = vmatprep.subr.bf16.mxu0 %v3995_v56 }
0x11a5   :  { %v2211_v6 = vpack.c.bf16 %v2208_v62, %v2207_v61 }
0x11a7   :  { %3846 = vmatprep.mubr.msk.bf16.mxu1 %vm369_vm0, %v2211_v6  ;;  %3853 = vmatpush3.bf16.msra.mxu0 %v3995_v56 }
0x11a8   :  { %3847 = vmatmul.mubr.msk.bf16.vlgmr.msra.gmra.mxu1 %vm369_vm0, %v2212_v2  ;;  %3866 = vmatprep.subr.bf16.mxu0 %v4531_v12 }
0x11a9   :  { %3862 = vmatprep.mubr.msk.bf16.mxu1 %vm4532_vm11, %v4531_v12  ;;  %3859 = vmatpush3.bf16.msra.mxu1 %v5025_v24 }
0x11aa   :  { %3860 = vmatprep.subr.bf16.mxu1 %v4531_v12 }
0x11ad   :  { %3861 = vmatpush3.bf16.msra.mxu1 %v5033_v25 }
0x11ae   :  { %3874 = vmatprep.subr.bf16.mxu1 %v4531_v12 }
0x11b0   :  { %3863 = vmatmul.mubr.bf16.vlgmr.msra.gmra.mxu1 %v4523_v38 }
0x11b1   :  { %3875 = vmatpush3.bf16.msra.mxu1 %v5025_v24  ;;  %3878 = vmatprep.mubr.msk.bf16.mxu1 %vm4532_vm11, %v4531_v12 }
0x11b2   :  { %3876 = vmatprep.subr.bf16.mxu1 %v4531_v12 }
0x11b5   :  { %3877 = vmatpush3.bf16.msra.mxu1 %v5033_v25 }
0x11b6   :  { %3890 = vmatprep.subr.bf16.mxu1 %v4531_v12 }
0x1268   :  { %v3848_v10 = vpop.f32.mrf.mxu1 }
0x1269   :  { %v2285_v18 = vadd.f32 %v3848_v10, %v3485_v9 }
0x126a   :  { %v2276_v1 = vpop.f32.mrf.mxu1 }
0x126b   :  { %v2277_v19 = vadd.f32 %v3485_v9, %v2276_v1  ;;  %v2293_v45 = vadd.f32 %v2285_v18, %v2125_v49 }
0x126c   :  { %v3849_v13 = vpop.f32.mrf.mxu1 }
0x126d   :  { %v2303_v3 = vsel %vm369_vm0, %v2293_v45, 0.0  ;;  %v2291_v20 = vadd.f32 %v2277_v19, %v2123_v4  ;;  %v2288_v21 = vadd.f32 %v3849_v13, %v3485_v9  ;;  %v2377_v4 = vstv %s3493_s6 }
0x126e   :  { %2304 = vadd.xlane.f32.xlu1 %v2303_v3  ;;  %v2279_v46 = vpop.f32.mrf.mxu1 }
0x126f   :  { %v2280_v15 = vadd.f32 %v3485_v9, %v2279_v46  ;;  %v2297_v22 = vsel %vm369_vm0, %v2291_v20, 0.0  ;;  %v2294_v17 = vadd.f32 %v2288_v21, %v2126_v51 }
0x1270   :  { %v5077_v0 = vpop.f32.mrf.mxu1 }
0x1271   :  { %v2292_v47 = vadd.f32 %v2280_v15, %v2124_v42  ;;  %v2306_v23 = vsel %vm369_vm0, %v2294_v17, 0.0  ;;  %v5058_v42 = vshrl.u32 %v296_v41, 7 }
0x1272   :  { %2298 = vadd.xlane.f32.xlu1 %v2297_v22  ;;  %v3864_v44 = vpop.f32.mrf.mxu1  ;;  %v3490_v22 = vld [vmem:[#allocation26] ss:$0 sm:$0xff] }
0x1273   :  { %v2300_v16 = vsel %vm369_vm0, %v2292_v47, 0.0  ;;  %vm2372_vm12 = vcmp.lt.s32.totalorder %v5058_v42, %v2371_v14  ;;  %vm2378_vm13 = vcmp.lt.s32.totalorder %v5058_v42, %v2377_v4  ;;  %vm2384_vm14 = vcmp.lt.s32.totalorder %v5058_v42, %v2383_v50 }
0x1274   :  { %v3492_v49 = vsel %vm2372_vm12, 1.0, %v4531_v12  ;;  %v3494_v51 = vsel %vm2378_vm13, 1.0, %v4531_v12  ;;  %vm2390_vm15 = vcmp.lt.s32.totalorder %v5058_v42, %v2389_v63  ;;  %v3496_v52 = vsel %vm2384_vm14, 1.0, %v4531_v12  ;;  %v2824_v58 = vpop.f32.mrf.mxu1 }
0x1275   :  { %v3973_v41 = vpack.i.bf16 %v3494_v51, %v3492_v49  ;;  %v3498_v54 = vsel %vm2390_vm15, 1.0, %v4531_v12 }
0x1276   :  { %2301 = vadd.xlane.f32.xlu1 %v2300_v16  ;;  %v3979_v8 = vpack.i.bf16 %v3498_v54, %v3496_v52  ;;  %v3865_v7 = vpop.f32.mrf.mxu1 }
0x127a   :  { %2307 = vadd.xlane.f32.xlu1 %v2306_v23 }
0x12f7   :  { %v2305_v26 = vpop.xlane.xlu1 %2304 }
0x12f8   :  { %v2311_v27 = vmul.f32 0.03125, %v2305_v26 }
0x12fa   :  { %v5045_v28 = vsub.f32 %v2293_v45, %v2311_v27 }
0x12fb   :  { %v2299_v29 = vpop.xlane.xlu1 %2298 }
0x12fc   :  { %v2309_v30 = vmul.f32 0.03125, %v2299_v29  ;;  %v2319_v38 = vmul.f32 %v5045_v28, %v5045_v28 }
0x12fe   :  { %v5049_v31 = vsub.f32 %v2291_v20, %v2309_v30  ;;  %v2327_v32 = vsel %vm369_vm0, %v2319_v38, 0.0  ;;  %v3491_v38 = vld [vmem:[#allocation28] ss:$0 sm:$0xff] }
0x12ff   :  { %2328 = vadd.xlane.f32.xlu0 %v2327_v32  ;;  %v2302_v33 = vpop.xlane.xlu1 %2301 }
0x1300   :  { %v2317_v34 = vmul.f32 %v5049_v31, %v5049_v31  ;;  %v2310_v11 = vmul.f32 0.03125, %v2302_v33 }
0x1302   :  { %v2321_v35 = vsel %vm369_vm0, %v2317_v34, 0.0  ;;  %v5055_v37 = vsub.f32 %v2292_v47, %v2310_v11 }
0x1303   :  { %2322 = vadd.xlane.f32.xlu1 %v2321_v35  ;;  %v2308_v53 = vpop.xlane.xlu1 %2307 }
0x1304   :  { %v2312_v36 = vmul.f32 0.03125, %v2308_v53  ;;  %v2318_v60 = vmul.f32 %v5055_v37, %v5055_v37 }
0x1306   :  { %v2316_v39 = vsub.f32 %v2294_v17, %v2312_v36  ;;  %v2324_v48 = vsel %vm369_vm0, %v2318_v60, 0.0 }
0x1308   :  { %v2320_v40 = vmul.f32 %v2316_v39, %v2316_v39 }
0x130a   :  { %v2330_v43 = vsel %vm369_vm0, %v2320_v40, 0.0 }
0x130b   :  { %2331 = vadd.xlane.f32.xlu1 %v2330_v43 }
0x130f   :  { %2325 = vadd.xlane.f32.xlu1 %v2324_v48 }
0x1315   :  { %3974 = vperm.xlu0 %3972, %v3973_v41   ;;  %v3499_v41 = vld [vmem:[%s5253_s19] ss:$0 sm:$0xff]  ;;  %s4534_s19 = smov [#allocation31]  }
0x1316   :  { %s3402_s5 = sshll.u32 %s4534_s19, 4  ;;  %s3403_s5 = int_to_ptr.vmem [resolvable:$true] %s3402_s5 }
0x1317   :  { %p4464_p11 = scmp.lt.s32.totalorder %s3403_s5, %s3403_s5 }
0x1320   :  { %3980 = vperm.xlu1 %3978, %v3979_v8  }
0x1324   :  { %2835 = vrot.lane.b32.xlu1 %v3504_v57, %s4511_s22 }
0x1388   :  { %v2329_v59 = vpop.xlane.xlu0 %2328 }
0x1389   :  { %v2335_v5 = vmul.f32 0.03125, %v2329_v59 }
0x138b   :  { %v2339_v2 = vadd.f32 1e-05, %v2335_v5 }
0x138c   :  { %v2323_v61 = vpop.xlane.xlu1 %2322 }
0x138d   :  { %v2333_v62 = vmul.f32 0.03125, %v2323_v61 }
0x138f   :  { %v2337_v6 = vadd.f32 1e-05, %v2333_v62 }
0x1390   :  { %v3975_v29 = vpop.permute.xlu0 %3974 }
0x1391   :  { %4068 = vrsqrt.f32 %v2337_v6  ;;  %v3976_v34 = vunpack.i.l.bf16 %v3975_v29 }
0x1392   :  { %4070 = vrsqrt.f32 %v2339_v2 }
0x1394   :  { %v2332_v9 = vpop.xlane.xlu1 %2331 }
0x1395   :  { %v2336_v10 = vmul.f32 0.03125, %v2332_v9 }
0x1397   :  { %v2340_v18 = vadd.f32 1e-05, %v2336_v10 }
0x1398   :  { %v2326_v1 = vpop.xlane.xlu1 %2325 }
0x1399   :  { %4072 = vrsqrt.f32 %v2340_v18  ;;  %v2334_v19 = vmul.f32 0.03125, %v2326_v1 }
0x139b   :  { %v2338_v45 = vadd.f32 1e-05, %v2334_v19 }
0x139c   :  { %v3981_v20 = vpop.permute.xlu1 %3980 }
0x139d   :  { %4074 = vrsqrt.f32 %v2338_v45  ;;  %v3982_v36 = vunpack.i.l.bf16 %v3981_v20 }
0x139e   :  { %v4069_v13 = vpop.eup %4068 }
0x139f   :  { %v4071_v3 = vpop.eup %4070  ;;  %v2345_v46 = vmul.f32 %v4069_v13, %v5049_v31  ;;  %v3983_v31 = vunpack.i.h.bf16 %v3981_v20 }
0x13a0   :  { %v2347_v21 = vmul.f32 %v4071_v3, %v5045_v28  ;;  %v5081_v23 = vpop.permute.xlu1 %2835  ;;  %v3977_v28 = vunpack.i.h.bf16 %v3975_v29 }
0x13a1   :  { %v2355_v17 = vmul.f32 %v3490_v22, %v2345_v46  ;;  %v2838_v30 = vadd.f32 %v5081_v23, %v5077_v0 }
0x13a2   :  { %v2357_v27 = vmul.f32 %v3490_v22, %v2347_v21 }
0x13a3   :  { %2840 = vrot.lane.b32.xlu1 %v2838_v30, %s4511_s22  ;;  %v2365_v35 = vadd.f32 %v3491_v38, %v2355_v17 }
0x13a4   :  { %v2367_v53 = vadd.f32 %v3491_v38, %v2357_v27 }
0x13a5   :  { %v2413_v14 = vmul.f32 %v3976_v34, %v2365_v35 }
0x13a6   :  { %v4073_v15 = vpop.eup %4072  ;;  %v2415_v43 = vmul.f32 %v3982_v36, %v2367_v53 }
0x13a7   :  { %v2348_v47 = vmul.f32 %v4073_v15, %v2316_v39 }
0x13a9   :  { %v2358_v16 = vmul.f32 %v3490_v22, %v2348_v47 }
0x13aa   :  { %v4075_v26 = vpop.eup %4074 }
0x13ab   :  { %v2346_v32 = vmul.f32 %v4075_v26, %v5055_v37  ;;  %v2368_v33 = vadd.f32 %v3491_v38, %v2358_v16  ;;  %v4533_v37 = vmov 1966171168  }
0x13ac   :  { %v2500_v49 = vunpack.c.l.s4 %v4533_v37 }
0x13ad   :  { %v2356_v11 = vmul.f32 %v3490_v22, %v2346_v32  ;;  %v2416_v40 = vmul.f32 %v3983_v31, %v2368_v33 }
0x13ae   :  { %v2501_v51 = vunpack.c.0.s8 %v2500_v49 }
0x13af   :  { %v2366_v39 = vadd.f32 %v3491_v38, %v2356_v11  ;;  %v2418_v48 = vpack.c.bf16 %v2416_v40, %v2415_v43 }
0x13b0   :  { %v5099_v50 = vsub.s32 %v2501_v51, %v5058_v42 }
0x13b1   :  { %v2414_v4 = vmul.f32 %v3977_v28, %v2366_v39 }
0x13b3   :  { %v2417_v60 = vpack.c.bf16 %v2414_v4, %v2413_v14 }
0x13b5   :  { %3854 = vmatprep.mubr.msk.bf16.mxu0 %vm369_vm0, %v2417_v60 }
0x13b6   :  { %3855 = vmatmul.mubr.msk.bf16.vlgmr.msra.gmra.mxu0 %vm369_vm0, %v2418_v48 }
0x13b7   :  { %3867 = vmatpush3.bf16.msra.mxu0 %v5025_v24  ;;  %3870 = vmatprep.mubr.msk.bf16.mxu0 %vm4532_vm11, %v4531_v12 }
0x13b8   :  { %3868 = vmatprep.subr.bf16.mxu0 %v4531_v12 }
0x13bb   :  { %3869 = vmatpush3.bf16.msra.mxu0 %v5033_v25 }
0x13bc   :  { %3882 = vmatprep.subr.bf16.mxu0 %v4531_v12 }
0x1476   :  { %v3856_v63 = vpop.f32.mrf.mxu0 }
0x1477   :  { %v2491_v52 = vadd.f32 %v3856_v63, %v3499_v41 }
0x1478   :  { %v2482_v54 = vpop.f32.mrf.mxu0 }
0x1479   :  { %v2631_v8 = vcombine.high %v2491_v52, %v2491_v52  ;;  %v2638_v55 = vrot.slane %v2491_v52, %v5099_v50  ;;  %v2483_v56 = vadd.f32 %v3499_v41, %v2482_v54 }
0x147a   :  { %v3857_v57 = vpop.f32.mrf.mxu0 }
0x147b   :  { %v2645_v44 = vrot.slane %v2631_v8, %v5099_v50  ;;  %v2646_v58 = vcombine.high %v2638_v55, %v2638_v55  ;;  %v2654_v7 = vrot.slane %v2638_v55, %v5099_v50  ;;  %v2498_v59 = vcombine.high %v2483_v56, %v2483_v56 }
0x147c   :  { %v2505_v61 = vrot.slane %v2483_v56, %v5099_v50  ;;  %v2494_v62 = vadd.f32 %v3857_v57, %v3499_v41  ;;  %v2485_v20 = vpop.f32.mrf.mxu0  ;;  %v2841_v57 = vpop.permute.xlu1 %2840 }
0x147d   :  { %v2647_v42 = vcombine.high %v2645_v44, %v2645_v44  ;;  %v2661_v5 = vrot.slane %v2645_v44, %v5099_v50  ;;  %v2668_v6 = vrot.slane %v2646_v58, %v5099_v50  ;;  %v2676_v2 = vcombine.high %v2654_v7, %v2654_v7  ;;  %2688 = vst.msk [vmem:[#allocation2 + $0x2] sm:$0x1] %vm2555_vm1, %v2654_v7 }
0x147e   :  { %v2512_v9 = vrot.slane %v2498_v59, %v5099_v50  ;;  %v2513_v10 = vcombine.high %v2505_v61, %v2505_v61  ;;  %v2521_v18 = vrot.slane %v2505_v61, %v5099_v50  ;;  %v2697_v1 = vcombine.high %v2494_v62, %v2494_v62 }
0x147f   :  { %v2675_v19 = vrot.slane %v2647_v42, %v5099_v50  ;;  %v2677_v45 = vcombine.high %v2661_v5, %v2661_v5  ;;  %v2678_v13 = vcombine.high %v2668_v6, %v2668_v6  ;;  %2689 = vst.msk [vmem:[#allocation2 + $0x6] sm:$0x1] %vm2555_vm1, %v2668_v6  ;;  %2690 = vst.msk [vmem:[#allocation2 + $0xa] sm:$0x1] %vm2555_vm1, %v2676_v2 }
0x1480   :  { %2692 = vst.msk [vmem:[#allocation2 + $0x12] sm:$0x1] %vm2555_vm1, %v2661_v5  ;;  %v2704_v3 = vrot.slane %v2494_v62, %v5099_v50  ;;  %v2514_v46 = vcombine.high %v2512_v9, %v2512_v9  ;;  %v2528_v15 = vrot.slane %v2512_v9, %v5099_v50  ;;  %v2535_v21 = vrot.slane %v2513_v10, %v5099_v50 }
0x1481   :  { %v2543_v22 = vcombine.high %v2521_v18, %v2521_v18  ;;  %2556 = vst.msk [vmem:[#allocation2] sm:$0x1] %vm2555_vm1, %v2521_v18  ;;  %v2679_v47 = vcombine.high %v2675_v19, %v2675_v19  ;;  %2691 = vst.msk [vmem:[#allocation2 + $0xe] sm:$0x1] %vm2555_vm1, %v2678_v13  ;;  %v2711_v16 = vrot.slane %v2697_v1, %v5099_v50 }
0x1482   :  { %2693 = vst.msk [vmem:[#allocation2 + $0x16] sm:$0x1] %vm2555_vm1, %v2675_v19  ;;  %2694 = vst.msk [vmem:[#allocation2 + $0x1a] sm:$0x1] %vm2555_vm1, %v2677_v45  ;;  %v2712_v17 = vcombine.high %v2704_v3, %v2704_v3  ;;  %v2720_v26 = vrot.slane %v2704_v3, %v5099_v50  ;;  %v2542_v27 = vrot.slane %v2514_v46, %v5099_v50 }
0x1483   :  { %v2544_v29 = vcombine.high %v2528_v15, %v2528_v15  ;;  %v2545_v30 = vcombine.high %v2535_v21, %v2535_v21  ;;  %2557 = vst.msk [vmem:[#allocation2 + $0x4] sm:$0x1] %vm2555_vm1, %v2535_v21  ;;  %2558 = vst.msk [vmem:[#allocation2 + $0x8] sm:$0x1] %vm2555_vm1, %v2543_v22  ;;  %v2486_v38 = vadd.f32 %v3499_v41, %v2485_v20 }
0x1484   :  { %2560 = vst.msk [vmem:[#allocation2 + $0x10] sm:$0x1] %vm2555_vm1, %v2528_v15  ;;  %2695 = vst.msk [vmem:[#allocation2 + $0x1e] sm:$0x1] %vm2555_vm1, %v2679_v47  ;;  %v2713_v32 = vcombine.high %v2711_v16, %v2711_v16  ;;  %v2727_v33 = vrot.slane %v2711_v16, %v5099_v50  ;;  %v2734_v31 = vrot.slane %v2712_v17, %v5099_v50 }
0x1485   :  { %v2742_v28 = vcombine.high %v2720_v26, %v2720_v26  ;;  %2754 = vst.msk [vmem:[#allocation2 + $0x3] sm:$0x1] %vm2555_vm1, %v2720_v26  ;;  %v2546_v34 = vcombine.high %v2542_v27, %v2542_v27  ;;  %2559 = vst.msk [vmem:[#allocation2 + $0xc] sm:$0x1] %vm2555_vm1, %v2545_v30  ;;  %v2565_v11 = vcombine.high %v2486_v38, %v2486_v38 }
0x1486   :  { %2561 = vst.msk [vmem:[#allocation2 + $0x14] sm:$0x1] %vm2555_vm1, %v2542_v27  ;;  %2562 = vst.msk [vmem:[#allocation2 + $0x18] sm:$0x1] %vm2555_vm1, %v2544_v29  ;;  %v2572_v35 = vrot.slane %v2486_v38, %v5099_v50  ;;  %v2741_v53 = vrot.slane %v2713_v32, %v5099_v50  ;;  %v2743_v36 = vcombine.high %v2727_v33, %v2727_v33 }
0x1487   :  { %v2744_v39 = vcombine.high %v2734_v31, %v2734_v31  ;;  %2755 = vst.msk [vmem:[#allocation2 + $0x7] sm:$0x1] %vm2555_vm1, %v2734_v31  ;;  %2756 = vst.msk [vmem:[#allocation2 + $0xb] sm:$0x1] %vm2555_vm1, %v2742_v28  ;;  %v2579_v40 = vrot.slane %v2565_v11, %v5099_v50 }
0x1488   :  { %2758 = vst.msk [vmem:[#allocation2 + $0x13] sm:$0x1] %vm2555_vm1, %v2727_v33  ;;  %2563 = vst.msk [vmem:[#allocation2 + $0x1c] sm:$0x1] %vm2555_vm1, %v2546_v34  ;;  %v2580_v14 = vcombine.high %v2572_v35, %v2572_v35  ;;  %v2588_v4 = vrot.slane %v2572_v35, %v5099_v50  ;;  %v2745_v43 = vcombine.high %v2741_v53, %v2741_v53 }
0x1489   :  { %2757 = vst.msk [vmem:[#allocation2 + $0xf] sm:$0x1] %vm2555_vm1, %v2744_v39  ;;  %2759 = vst.msk [vmem:[#allocation2 + $0x17] sm:$0x1] %vm2555_vm1, %v2741_v53  ;;  %v2581_v60 = vcombine.high %v2579_v40, %v2579_v40  ;;  %v2595_v48 = vrot.slane %v2579_v40, %v5099_v50 }
0x148a   :  { %2760 = vst.msk [vmem:[#allocation2 + $0x1b] sm:$0x1] %vm2555_vm1, %v2743_v36  ;;  %v2602_v37 = vrot.slane %v2580_v14, %v5099_v50  ;;  %v2610_v49 = vcombine.high %v2588_v4, %v2588_v4  ;;  %2622 = vst.msk [vmem:[#allocation2 + $0x1] sm:$0x1] %vm2555_vm1, %v2588_v4 }
0x148b   :  { %2761 = vst.msk [vmem:[#allocation2 + $0x1f] sm:$0x1] %vm2555_vm1, %v2745_v43  ;;  %v2609_v51 = vrot.slane %v2581_v60, %v5099_v50  ;;  %v2611_v41 = vcombine.high %v2595_v48, %v2595_v48  ;;  %2626 = vst.msk [vmem:[#allocation2 + $0x11] sm:$0x1] %vm2555_vm1, %v2595_v48 }
0x148c   :  { %v2612_v63 = vcombine.high %v2602_v37, %v2602_v37  ;;  %2623 = vst.msk [vmem:[#allocation2 + $0x5] sm:$0x1] %vm2555_vm1, %v2602_v37  ;;  %2624 = vst.msk [vmem:[#allocation2 + $0x9] sm:$0x1] %vm2555_vm1, %v2610_v49 }
0x148d   :  { %v2613_v52 = vcombine.high %v2609_v51, %v2609_v51  ;;  %2627 = vst.msk [vmem:[#allocation2 + $0x15] sm:$0x1] %vm2555_vm1, %v2609_v51  ;;  %2628 = vst.msk [vmem:[#allocation2 + $0x19] sm:$0x1] %vm2555_vm1, %v2611_v41 }
0x148e   :  { %2625 = vst.msk [vmem:[#allocation2 + $0xd] sm:$0x1] %vm2555_vm1, %v2612_v63 }
0x148f   :  { %2629 = vst.msk [vmem:[#allocation2 + $0x1d] sm:$0x1] %vm2555_vm1, %v2613_v52 }
0x1491   :  { %v2827_v54 = vld [vmem:[#allocation2] sm:$0xf] }
0x1492   :  { %v2828_v50 = vadd.f32 %v2827_v54, %v5077_v0 }
0x1493   :  { %v2906_v13 = vld [vmem:[#allocation2 + $0x4] sm:$0xf]  ;;  %v2982_v36 = vld [vmem:[#allocation2 + $0x8] sm:$0xf] }
0x1494   :  { %v3507_v8 = vmul.f32 -1.442695, %v2828_v50 }
0x1496   :  { %4076 = vpow2.f32 %v3507_v8 }
0x14a3   :  { %v4077_v55 = vpop.eup %4076 }
0x14a4   :  { %v2832_v56 = vadd.f32 1.0, %v4077_v55 }
0x14a6   :  { %4078 = vrcp.f32 %v2832_v56 }
0x14b3   :  { %v4079_v44 = vpop.eup %4078 }
0x14b4   :  { %v2843_v58 = vmul.f32 %v4079_v44, %v2841_v57  ;;  %v2850_v62 = vsub.f32 1.0, %v4079_v44  ;;  %v2856_v5 = vmul.f32 0.0, %v4079_v44 }
0x14b6   :  { %2845 = vrot.lane.b32.xlu1 %v2843_v58, %s4511_s22 }
0x1528   :  { %v2846_v7 = vpop.permute.xlu1 %2845 }
0x1529   :  { %v2848_v59 = vadd.f32 %v2846_v7, %v2827_v54 }
0x152b   :  { %4080 = vtanh.f32 %v2848_v59  ;;  %v3058_v59 = vld [vmem:[#allocation2 + $0xc] sm:$0xf] }
0x1538   :  { %v4081_v61 = vpop.eup %4080 }
0x1539   :  { %2852 = vrot.lane.b32.xlu1 %v4081_v61, %s4522_s16 }
0x15ab   :  { %v2853_v42 = vpop.permute.xlu1 %2852 }
0x15ac   :  { %v2855_v0 = vmul.f32 %v2853_v42, %v2850_v62 }
0x15ae   :  { %v2857_v6 = vadd.f32 %v2856_v5, %v2855_v0 }
0x15b0   :  { %v2858_v2 = vpack.c.bf16 %v2857_v6, %v2857_v6 }
0x15b2   :  { %2860 = vrot.lane.b32.xlu1 %v2858_v2, %s4522_s16 }
0x1624   :  { %v2861_v9 = vpop.permute.xlu1 %2860 }
0x1625   :  { %3871 = vmatmul.mubr.msk.bf16.vlgmr.msra.gmra.mxu0 %vm369_vm0, %v2861_v9 }
0x1626   :  { %3883 = vmatpush3.bf16.msra.mxu0 %v5025_v24  ;;  %3886 = vmatprep.mubr.msk.bf16.mxu0 %vm4532_vm11, %v4531_v12 }
0x1627   :  { %3884 = vmatprep.subr.bf16.mxu0 %v4531_v12 }
0x162a   :  { %3885 = vmatpush3.bf16.msra.mxu0 %v5033_v25 }
0x162b   :  { %3898 = vmatprep.subr.bf16.mxu0 %v4531_v12 }
0x16e5   :  { %v2899_v10 = vpop.f32.mrf.mxu0 }
0x16e6   :  { %v2914_v18 = vadd.f32 %v2899_v10, %v5081_v23  ;;  %v2907_v3 = vadd.f32 %v2906_v13, %v2899_v10 }
0x16e7   :  { %v3872_v1 = vpop.f32.mrf.mxu0 }
0x16e8   :  { %2916 = vrot.lane.b32.xlu1 %v2914_v18, %s4511_s22  ;;  %v3509_v20 = vmul.f32 -1.442695, %v2907_v3 }
0x16e9   :  { %v2902_v19 = vpop.f32.mrf.mxu0 }
0x16ea   :  { %4082 = vpow2.f32 %v3509_v20 }
0x16eb   :  { %v3873_v45 = vpop.f32.mrf.mxu0 }
0x16f7   :  { %v4083_v46 = vpop.eup %4082 }
0x16f8   :  { %v2911_v15 = vadd.f32 1.0, %v4083_v46 }
0x16fa   :  { %4084 = vrcp.f32 %v2911_v15 }
0x1707   :  { %v4085_v21 = vpop.eup %4084 }
0x1708   :  { %v2926_v27 = vsub.f32 1.0, %v4085_v21  ;;  %v2932_v30 = vmul.f32 %v4085_v21, %v2857_v6 }
0x175a   :  { %v2917_v22 = vpop.permute.xlu1 %2916 }
0x175b   :  { %v2919_v47 = vmul.f32 %v4085_v21, %v2917_v22 }
0x175d   :  { %2921 = vrot.lane.b32.xlu1 %v2919_v47, %s4511_s22 }
0x17cf   :  { %v2922_v16 = vpop.permute.xlu1 %2921 }
0x17d0   :  { %v2924_v17 = vadd.f32 %v2922_v16, %v2906_v13 }
0x17d2   :  { %4086 = vtanh.f32 %v2924_v17  ;;  %v3134_v17 = vld [vmem:[#allocation2 + $0x10] sm:$0xf] }
0x17df   :  { %v4087_v26 = vpop.eup %4086 }
0x17e0   :  { %2928 = vrot.lane.b32.xlu0 %v4087_v26, %s4522_s16 }
0x1852   :  { %v2929_v29 = vpop.permute.xlu0 %2928 }
0x1853   :  { %v2931_v38 = vmul.f32 %v2929_v29, %v2926_v27 }
0x1855   :  { %v2933_v32 = vadd.f32 %v2932_v30, %v2931_v38 }
0x1857   :  { %v2934_v33 = vpack.c.bf16 %v2933_v32, %v2933_v32 }
0x1859   :  { %2936 = vrot.lane.b32.xlu1 %v2934_v33, %s4522_s16 }
0x18cb   :  { %v2937_v31 = vpop.permute.xlu1 %2936 }
0x18cc   :  { %3879 = vmatmul.mubr.msk.bf16.vlgmr.msra.gmra.mxu1 %vm369_vm0, %v2937_v31 }
0x18cd   :  { %3891 = vmatpush3.bf16.msra.mxu1 %v5025_v24  ;;  %3894 = vmatprep.mubr.msk.bf16.mxu1 %vm4532_vm11, %v4531_v12 }
0x18ce   :  { %3892 = vmatprep.subr.bf16.mxu1 %v4531_v12 }
0x18d1   :  { %3893 = vmatpush3.bf16.msra.mxu1 %v5033_v25 }
0x18d2   :  { %3906 = vmatprep.subr.bf16.mxu1 %v4531_v12 }
0x198c   :  { %v2975_v28 = vpop.f32.mrf.mxu1 }
0x198d   :  { %v2990_v34 = vadd.f32 %v2975_v28, %v5081_v23  ;;  %v2983_v39 = vadd.f32 %v2982_v36, %v2975_v28 }
0x198e   :  { %v3880_v11 = vpop.f32.mrf.mxu1 }
0x198f   :  { %2992 = vrot.lane.b32.xlu0 %v2990_v34, %s4511_s22  ;;  %v3511_v40 = vmul.f32 -1.442695, %v2983_v39 }
0x1990   :  { %v2978_v35 = vpop.f32.mrf.mxu1 }
0x1991   :  { %4088 = vpow2.f32 %v3511_v40 }
0x1992   :  { %v3881_v53 = vpop.f32.mrf.mxu1 }
0x199e   :  { %v4089_v14 = vpop.eup %4088 }
0x199f   :  { %v2987_v4 = vadd.f32 1.0, %v4089_v14 }
0x19a1   :  { %4090 = vrcp.f32 %v2987_v4 }
0x19ae   :  { %v4091_v43 = vpop.eup %4090 }
0x19af   :  { %v3002_v41 = vsub.f32 1.0, %v4091_v43  ;;  %v3008_v52 = vmul.f32 %v4091_v43, %v2933_v32 }
0x1a01   :  { %v2993_v60 = vpop.permute.xlu0 %2992 }
0x1a02   :  { %v2995_v48 = vmul.f32 %v4091_v43, %v2993_v60 }
0x1a04   :  { %2997 = vrot.lane.b32.xlu1 %v2995_v48, %s4511_s22 }
0x1a76   :  { %v2998_v37 = vpop.permute.xlu1 %2997 }
0x1a77   :  { %v3000_v49 = vadd.f32 %v2998_v37, %v2982_v36 }
0x1a79   :  { %4092 = vtanh.f32 %v3000_v49  ;;  %v3210_v49 = vld [vmem:[#allocation2 + $0x14] sm:$0xf] }
0x1a86   :  { %v4093_v51 = vpop.eup %4092 }
0x1a87   :  { %3004 = vrot.lane.b32.xlu0 %v4093_v51, %s4522_s16 }
0x1af9   :  { %v3005_v63 = vpop.permute.xlu0 %3004 }
0x1afa   :  { %v3007_v54 = vmul.f32 %v3005_v63, %v3002_v41 }
0x1afc   :  { %v3009_v50 = vadd.f32 %v3008_v52, %v3007_v54 }
0x1afe   :  { %v3010_v8 = vpack.c.bf16 %v3009_v50, %v3009_v50 }
0x1b00   :  { %3012 = vrot.lane.b32.xlu1 %v3010_v8, %s4522_s16 }
0x1b72   :  { %v3013_v55 = vpop.permute.xlu1 %3012 }
0x1b73   :  { %3887 = vmatmul.mubr.msk.bf16.vlgmr.msra.gmra.mxu0 %vm369_vm0, %v3013_v55 }
0x1b74   :  { %3899 = vmatpush3.bf16.msra.mxu0 %v5025_v24  ;;  %3902 = vmatprep.mubr.msk.bf16.mxu0 %vm4532_vm11, %v4531_v12 }
0x1b75   :  { %3900 = vmatprep.subr.bf16.mxu0 %v4531_v12 }
0x1b78   :  { %3901 = vmatpush3.bf16.msra.mxu0 %v5033_v25 }
0x1b79   :  { %3914 = vmatprep.subr.bf16.mxu0 %v4531_v12 }
0x1c33   :  { %v3051_v56 = vpop.f32.mrf.mxu0 }
0x1c34   :  { %v3066_v57 = vadd.f32 %v3051_v56, %v5081_v23  ;;  %v3059_v61 = vadd.f32 %v3058_v59, %v3051_v56 }
0x1c35   :  { %v3888_v44 = vpop.f32.mrf.mxu0 }
0x1c36   :  { %3068 = vrot.lane.b32.xlu0 %v3066_v57, %s4511_s22  ;;  %v3513_v62 = vmul.f32 -1.442695, %v3059_v61 }
0x1c37   :  { %v3054_v58 = vpop.f32.mrf.mxu0 }
0x1c38   :  { %4094 = vpow2.f32 %v3513_v62 }
0x1c39   :  { %v3889_v7 = vpop.f32.mrf.mxu0 }
0x1c45   :  { %v4095_v42 = vpop.eup %4094 }
0x1c46   :  { %v3063_v5 = vadd.f32 1.0, %v4095_v42 }
0x1c48   :  { %4096 = vrcp.f32 %v3063_v5 }
0x1c55   :  { %v4097_v0 = vpop.eup %4096 }
0x1c56   :  { %v3078_v1 = vsub.f32 1.0, %v4097_v0  ;;  %v3084_v45 = vmul.f32 %v4097_v0, %v3009_v50 }
0x1ca8   :  { %v3069_v6 = vpop.permute.xlu0 %3068 }
0x1ca9   :  { %v3071_v2 = vmul.f32 %v4097_v0, %v3069_v6  ;;  %v3286_v6 = vld [vmem:[#allocation2 + $0x18] sm:$0xf] }
0x1cab   :  { %3073 = vrot.lane.b32.xlu1 %v3071_v2, %s4511_s22 }
0x1d1d   :  { %v3074_v9 = vpop.permute.xlu1 %3073 }
0x1d1e   :  { %v3076_v10 = vadd.f32 %v3074_v9, %v3058_v59 }
0x1d20   :  { %4098 = vtanh.f32 %v3076_v10 }
0x1d2d   :  { %v4099_v18 = vpop.eup %4098 }
0x1d2e   :  { %3080 = vrot.lane.b32.xlu0 %v4099_v18, %s4522_s16 }
0x1da0   :  { %v3081_v19 = vpop.permute.xlu0 %3080 }
0x1da1   :  { %v3083_v13 = vmul.f32 %v3081_v19, %v3078_v1 }
0x1da3   :  { %v3085_v3 = vadd.f32 %v3084_v45, %v3083_v13 }
0x1da5   :  { %v3086_v20 = vpack.c.bf16 %v3085_v3, %v3085_v3 }
0x1da7   :  { %3088 = vrot.lane.b32.xlu1 %v3086_v20, %s4522_s16 }
0x1e19   :  { %v3089_v46 = vpop.permute.xlu1 %3088 }
0x1e1a   :  { %3895 = vmatmul.mubr.msk.bf16.vlgmr.msra.gmra.mxu1 %vm369_vm0, %v3089_v46 }
0x1e1b   :  { %3907 = vmatpush3.bf16.msra.mxu1 %v5025_v24  ;;  %3910 = vmatprep.mubr.msk.bf16.mxu1 %vm4532_vm11, %v4531_v12 }
0x1e1c   :  { %3908 = vmatprep.subr.bf16.mxu1 %v4531_v12 }
0x1e1f   :  { %3909 = vmatpush3.bf16.msra.mxu1 %v5033_v25 }
0x1eda   :  { %v3127_v15 = vpop.f32.mrf.mxu1 }
0x1edb   :  { %v3142_v21 = vadd.f32 %v3127_v15, %v5081_v23  ;;  %v3135_v26 = vadd.f32 %v3134_v17, %v3127_v15 }
0x1edc   :  { %v3896_v22 = vpop.f32.mrf.mxu1 }
0x1edd   :  { %3144 = vrot.lane.b32.xlu0 %v3142_v21, %s4511_s22  ;;  %v3515_v27 = vmul.f32 -1.442695, %v3135_v26 }
0x1ede   :  { %v3130_v47 = vpop.f32.mrf.mxu1 }
0x1edf   :  { %4100 = vpow2.f32 %v3515_v27 }
0x1ee0   :  { %v3897_v16 = vpop.f32.mrf.mxu1 }
0x1eec   :  { %v4101_v29 = vpop.eup %4100 }
0x1eed   :  { %v3139_v30 = vadd.f32 1.0, %v4101_v29 }
0x1eef   :  { %4102 = vrcp.f32 %v3139_v30 }
0x1efc   :  { %v4103_v38 = vpop.eup %4102 }
0x1efd   :  { %v3154_v11 = vsub.f32 1.0, %v4103_v38  ;;  %v3160_v53 = vmul.f32 %v4103_v38, %v3085_v3 }
0x1f4f   :  { %v3145_v32 = vpop.permute.xlu0 %3144 }
0x1f50   :  { %v3147_v33 = vmul.f32 %v4103_v38, %v3145_v32  ;;  %v3362_v32 = vld [vmem:[#allocation2 + $0x1c] sm:$0xf] }
0x1f52   :  { %3149 = vrot.lane.b32.xlu1 %v3147_v33, %s4511_s22 }
0x1fc4   :  { %v3150_v31 = vpop.permute.xlu1 %3149 }
0x1fc5   :  { %v3152_v28 = vadd.f32 %v3150_v31, %v3134_v17 }
0x1fc7   :  { %4104 = vtanh.f32 %v3152_v28 }
0x1fd4   :  { %v4105_v34 = vpop.eup %4104 }
0x1fd5   :  { %3156 = vrot.lane.b32.xlu0 %v4105_v34, %s4522_s16 }
0x2047   :  { %v3157_v35 = vpop.permute.xlu0 %3156 }
0x2048   :  { %v3159_v36 = vmul.f32 %v3157_v35, %v3154_v11 }
0x204a   :  { %v3161_v39 = vadd.f32 %v3160_v53, %v3159_v36 }
0x204c   :  { %v3162_v40 = vpack.c.bf16 %v3161_v39, %v3161_v39 }
0x204e   :  { %3164 = vrot.lane.b32.xlu1 %v3162_v40, %s4522_s16 }
0x20c0   :  { %v3165_v14 = vpop.permute.xlu1 %3164 }
0x20c1   :  { %3903 = vmatmul.mubr.msk.bf16.vlgmr.msra.gmra.mxu0 %vm369_vm0, %v3165_v14 }
0x20c2   :  { %3915 = vmatpush3.bf16.msra.mxu0 %v5025_v24  ;;  %3918 = vmatprep.mubr.msk.bf16.mxu0 %vm4532_vm11, %v4531_v12 }
0x20c3   :  { %3916 = vmatprep.subr.bf16.mxu0 %v4531_v12 }
0x20c6   :  { %3917 = vmatpush3.bf16.msra.mxu0 %v5033_v25 }
0x2181   :  { %v3203_v4 = vpop.f32.mrf.mxu0 }
0x2182   :  { %v3218_v43 = vadd.f32 %v3203_v4, %v5081_v23  ;;  %v3211_v51 = vadd.f32 %v3210_v49, %v3203_v4 }
0x2183   :  { %v3904_v60 = vpop.f32.mrf.mxu0 }
0x2184   :  { %3220 = vrot.lane.b32.xlu0 %v3218_v43, %s4511_s22  ;;  %v3517_v41 = vmul.f32 -1.442695, %v3211_v51 }
0x2185   :  { %v3206_v48 = vpop.f32.mrf.mxu0 }
0x2186   :  { %4106 = vpow2.f32 %v3517_v41 }
0x2187   :  { %v3905_v37 = vpop.f32.mrf.mxu0 }
0x2193   :  { %v4107_v24 = vpop.eup %4106 }
0x2194   :  { %v3215_v63 = vadd.f32 1.0, %v4107_v24 }
0x2196   :  { %4108 = vrcp.f32 %v3215_v63 }
0x21a3   :  { %v4109_v52 = vpop.eup %4108 }
0x21a4   :  { %v3230_v55 = vsub.f32 1.0, %v4109_v52  ;;  %v3236_v57 = vmul.f32 %v4109_v52, %v3161_v39 }
0x21f6   :  { %v3221_v54 = vpop.permute.xlu0 %3220 }
0x21f7   :  { %v3223_v12 = vmul.f32 %v4109_v52, %v3221_v54 }
0x21f9   :  { %3225 = vrot.lane.b32.xlu1 %v3223_v12, %s4511_s22 }
0x226b   :  { %v3226_v25 = vpop.permute.xlu1 %3225 }
0x226c   :  { %v3228_v50 = vadd.f32 %v3226_v25, %v3210_v49 }
0x226e   :  { %4110 = vtanh.f32 %v3228_v50 }
0x227b   :  { %v4111_v8 = vpop.eup %4110 }
0x227c   :  { %3232 = vrot.lane.b32.xlu0 %v4111_v8, %s4522_s16 }
0x22ee   :  { %v3233_v56 = vpop.permute.xlu0 %3232 }
0x22ef   :  { %v3235_v44 = vmul.f32 %v3233_v56, %v3230_v55 }
0x22f1   :  { %v3237_v58 = vadd.f32 %v3236_v57, %v3235_v44 }
0x22f3   :  { %v3238_v7 = vpack.c.bf16 %v3237_v58, %v3237_v58 }
0x22f5   :  { %3240 = vrot.lane.b32.xlu1 %v3238_v7, %s4522_s16 }
0x2367   :  { %v3241_v59 = vpop.permute.xlu1 %3240 }
0x2368   :  { %3911 = vmatmul.mubr.msk.bf16.vlgmr.msra.gmra.mxu1 %vm369_vm0, %v3241_v59 }
0x2428   :  { %v3279_v61 = vpop.f32.mrf.mxu1 }
0x2429   :  { %v3294_v62 = vadd.f32 %v3279_v61, %v5081_v23  ;;  %v3287_v2 = vadd.f32 %v3286_v6, %v3279_v61 }
0x242a   :  { %v3912_v42 = vpop.f32.mrf.mxu1 }
0x242b   :  { %3296 = vrot.lane.b32.xlu0 %v3294_v62, %s4511_s22  ;;  %v3519_v9 = vmul.f32 -1.442695, %v3287_v2 }
0x242c   :  { %v3282_v5 = vpop.f32.mrf.mxu1 }
0x242d   :  { %4112 = vpow2.f32 %v3519_v9 }
0x242e   :  { %v3913_v0 = vpop.f32.mrf.mxu1 }
0x243a   :  { %v4113_v10 = vpop.eup %4112 }
0x243b   :  { %v3291_v18 = vadd.f32 1.0, %v4113_v10 }
0x243d   :  { %4114 = vrcp.f32 %v3291_v18 }
0x244a   :  { %v4115_v1 = vpop.eup %4114 }
0x244b   :  { %v3306_v46 = vsub.f32 1.0, %v4115_v1  ;;  %v3312_v21 = vmul.f32 %v4115_v1, %v3237_v58 }
0x249d   :  { %v3297_v19 = vpop.permute.xlu0 %3296 }
0x249e   :  { %v3299_v45 = vmul.f32 %v4115_v1, %v3297_v19 }
0x24a0   :  { %3301 = vrot.lane.b32.xlu1 %v3299_v45, %s4511_s22 }
0x2512   :  { %v3302_v13 = vpop.permute.xlu1 %3301 }
0x2513   :  { %v3304_v3 = vadd.f32 %v3302_v13, %v3286_v6 }
0x2515   :  { %4116 = vtanh.f32 %v3304_v3 }
0x2522   :  { %v4117_v20 = vpop.eup %4116 }
0x2523   :  { %3308 = vrot.lane.b32.xlu0 %v4117_v20, %s4522_s16 }
0x2595   :  { %v3309_v15 = vpop.permute.xlu0 %3308 }
0x2596   :  { %v3311_v22 = vmul.f32 %v3309_v15, %v3306_v46 }
0x2598   :  { %v3313_v47 = vadd.f32 %v3312_v21, %v3311_v22 }
0x259a   :  { %v3314_v16 = vpack.c.bf16 %v3313_v47, %v3313_v47 }
0x259c   :  { %3316 = vrot.lane.b32.xlu1 %v3314_v16, %s4522_s16 }
0x260e   :  { %v3317_v17 = vpop.permute.xlu1 %3316 }
0x260f   :  { %3919 = vmatmul.mubr.msk.bf16.vlgmr.msra.gmra.mxu0 %vm369_vm0, %v3317_v17  ;;  %vm3394_vm0 = vcmask 257024  }
0x26cf   :  { %v3355_v26 = vpop.f32.mrf.mxu0 }
0x26d0   :  { %v3370_v27 = vadd.f32 %v3355_v26, %v5081_v23  ;;  %v3363_v33 = vadd.f32 %v3362_v32, %v3355_v26 }
0x26d1   :  { %v3920_v29 = vpop.f32.mrf.mxu0 }
0x26d2   :  { %3372 = vrot.lane.b32.xlu0 %v3370_v27, %s4511_s22  ;;  %v3521_v31 = vmul.f32 -1.442695, %v3363_v33 }
0x26d3   :  { %v3358_v30 = vpop.f32.mrf.mxu0 }
0x26d4   :  { %4118 = vpow2.f32 %v3521_v31 }
0x26d5   :  { %v3921_v38 = vpop.f32.mrf.mxu0 }
0x26e1   :  { %v4119_v28 = vpop.eup %4118 }
0x26e2   :  { %v3367_v34 = vadd.f32 1.0, %v4119_v28 }
0x26e4   :  { %4120 = vrcp.f32 %v3367_v34 }
0x26f1   :  { %v4121_v11 = vpop.eup %4120 }
0x26f2   :  { %v3382_v40 = vsub.f32 1.0, %v4121_v11  ;;  %v3388_v4 = vmul.f32 %v4121_v11, %v3313_v47 }
0x2744   :  { %v3373_v35 = vpop.permute.xlu0 %3372 }
0x2745   :  { %v3375_v53 = vmul.f32 %v4121_v11, %v3373_v35 }
0x2747   :  { %3377 = vrot.lane.b32.xlu1 %v3375_v53, %s4511_s22  ;;  %s4459_s22 = scalar_lea.vmem %s3403_s5, 64 }
0x2748   :  { %p4460_p10 = scmp.ne.s32.totalorder %s3403_s5, %s4459_s22  ;;  %p4465_p12 = scmp.lt.s32.totalorder %s4459_s22, %s4459_s22 }
0x274a   :  { %p4466_p13 = por %p4465_p12, %p4464_p11 }
0x274c   :  { %p4467_p0 = pnand %p4466_p13, %p4460_p10 }
0x27b9   :  { %v3378_v36 = vpop.permute.xlu1 %3377 }
0x27ba   :  { %v3380_v39 = vadd.f32 %v3378_v36, %v3362_v32 }
0x27bc   :  { %4122 = vtanh.f32 %v3380_v39 }
0x27c9   :  { %v4123_v23 = vpop.eup %4122 }
0x27ca   :  { %3384 = vrot.lane.b32.xlu0 %v4123_v23, %s4522_s16 }
0x283c   :  { %v3385_v14 = vpop.permute.xlu0 %3384 }
0x283d   :  { %v3387_v43 = vmul.f32 %v3385_v14, %v3382_v40 }
0x283f   :  { %v3389_v60 = vadd.f32 %v3388_v4, %v3387_v43 }
0x2841   :  { %3391 = vrot.lane.b32.xlu1 %v3389_v60, %s4522_s16 }
0x28b3   :  { %v3392_v48 = vpop.permute.xlu1 %3391 }
0x28b4   :  { %3395 = vst.msk [vmem:[#allocation31] sm:$0xf] %vm3394_vm0, %v3392_v48 }
0x28b5   :  { %4470 = shalt.err (!%p4467_p0)
}
0x28b6   :  { %3405 = dma.vmem_to_hbm [thread:$0]  %s3403_s5, 64, %s5255_s21, [#allocation7]  }
0x28b7   :  { %4499 = dma.done.wait [#allocation7], 64  }
0x28b8   :  { %4500 = vsyncadd [#allocation7], 4294967232 }
0x28b9   :  { %3409 = vsyncpa [#allocation6], 1 }
0x28ba   :  { %3410 = vsyncpa [#allocation9], 1 }
0x28bb   :  { %3411 = vsyncpa [#allocation12], 1 }
0x28bc   :  { %3412 = vsyncpa [#allocation15], 1 }
0x28bd   :  { %3413 = vsyncpa [#allocation18], 1 }
0x28be   :  { %3414 = vsyncpa [#allocation21], 1 }
0x28bf   :  { %3415 = vsyncpa [#allocation24], 1 }
0x28c0   :  { %3416 = vsyncpa [#allocation27], 1 }
0x28c1   :  { %3417 = vsyncpa [#allocation30], 1 }
0x28c2   :  { %3418 = vsyncpa [#allocation7], 1 }

</bundles_post_ra>
